<compile_context>
chip_gen: v5e
topology: v5e:2x2
jax: 0.10.0
libtpu: 0.0.40
codegen_flags: <defaults>
</compile_context>

<pallas_src>
import functools
import math

import jax
import jax.numpy as jnp
from jax.experimental import pallas as pl
from jax.experimental.pallas import tpu as pltpu

NUM_HEADS = 4
LN_EPS = 1e-5
_INV_SQRT2 = 0.7071067811865476
_LANE = 128


def _round_up(x, m):
    return (x + m - 1) // m * m


def _pick_tile(n, max_tile):
    if n <= max_tile:
        return n
    t = max_tile
    while t >= 16:
        if n % t == 0:
            return t
        t //= 2
    return n


def _ds_aligned(start, size):
    """pl.ds with an alignment hint when the start is a traced value."""
    if isinstance(start, int):
        return pl.ds(start, size)
    return pl.ds(pl.multiple_of(start, size), size)


def _layer_norm_padded(x, gamma, beta, inv_c):
    """LayerNorm over a zero-padded channel axis (PyTorch biased-var semantics).

    x: (rows, Cp) f32 where channels >= real C are exactly zero.
    gamma/beta: (1, Cp) f32, zero in padded channels, so padded output channels
    stay exactly zero (this invariant keeps the downstream LN/matmuls correct).
    """
    s1 = jnp.sum(x, axis=-1, keepdims=True)
    s2 = jnp.sum(x * x, axis=-1, keepdims=True)
    mean = s1 * inv_c
    var = s2 * inv_c - mean * mean   # one-pass; fine in f32 for unit-scale acts
    return (x - mean) * jax.lax.rsqrt(var + LN_EPS) * gamma + beta


def _gelu_exact(x):
    return 0.5 * x * (1.0 + jax.lax.erf(x * _INV_SQRT2))


def _self_attention_kernel(
    # inputs
    x_ref,                     # (S, Cp)    f32   full sequence of this batch elem
    ln1_g_ref, ln1_b_ref,      # (1, Cp)    f32
    wq_ref, bq_ref,            # (Cp, Dh)   bf16 / (1, Dh)  f32 (1/sqrt(dh) folded)
    wkT_ref,                   # (Dh, Cp)   bf16   (K bias dropped)
    wv_ref, bv_ref,            # (Cp, Dh)   bf16 / (1, Dh)  f32
    wo_ref, bo_ref,            # (Dh, Cp)   bf16 / (1, Cp)  f32
    ln2_g_ref, ln2_b_ref,      # (1, Cp)    f32
    w1_ref, b1_ref,            # (Cp, Cp)   bf16 / (1, Cp)  f32
    w2_ref, b2_ref,            # (Cp, Cp)   bf16 / (1, Cp)  f32
    # output
    o_ref,                     # (TQ, Cp)   f32
    # scratch (persists across the query-tile grid axis)
    kT_scr,                    # (NK, Dh, TK) bf16  K^T, key-tile blocked
    v_scr,                     # (NK, TK, Dh) bf16  V,   key-tile blocked
    *, c_real, num_heads, dhp, tk, unroll_k,
):
    S, Cp = x_ref.shape
    TQ = o_ref.shape[0]
    H = num_heads
    Dh = H * dhp
    nk = S // tk
    inv_c = 1.0 / float(c_real)
    f32, bf16 = jnp.float32, jnp.bfloat16
    qi = pl.program_id(1)
    single_tile = (TQ == S)

    def ln1(v):
        return _layer_norm_padded(v, ln1_g_ref[...], ln1_b_ref[...], inv_c)

    if single_tile:
        # One query tile per batch element (small S): Q/K/V share a single
        # LayerNorm pass and stay as values (no scratch round trip).
        x_q = x_ref[...]
        x_ln = ln1(x_q)
        x_q_ln_bf = x_ln.astype(bf16)
        wkT = wkT_ref[...]
        kT_all = jnp.dot(wkT, x_ln.T.astype(bf16),
                         preferred_element_type=f32).astype(bf16)        # (Dh, S)
        v_all = (jnp.dot(x_q_ln_bf, wv_ref[...], preferred_element_type=f32)
                 + bv_ref[...]).astype(bf16)                             # (S, Dh)

        def kT_blk(h, kt):
            return kT_all[h * dhp:(h + 1) * dhp, :]

        def v_blk(h, kt):
            return v_all[:, h * dhp:(h + 1) * dhp]
    else:
        # K^T / V projected once per batch element into key-tile-blocked VMEM
        # scratch; per-tile slices below are dynamic only on the leading axis.
        @pl.when(qi == 0)
        def _():
            wkT = wkT_ref[...]
            wv = wv_ref[...]
            bv = bv_ref[...]

            def kv_tile(kt):
                k0 = kt * tk
                x_t = x_ref[_ds_aligned(k0, tk), :]                      # (tk, Cp)
                x_ln_t = ln1(x_t)
                kT_scr[kt] = jnp.dot(
                    wkT, x_ln_t.T.astype(bf16),
                    preferred_element_type=f32).astype(bf16)             # (Dh, tk)
                v_scr[kt] = (jnp.dot(x_ln_t.astype(bf16), wv,
                                     preferred_element_type=f32)
                             + bv).astype(bf16)                          # (tk, Dh)

            if unroll_k:
                for kt in range(nk):
                    kv_tile(kt)
            else:
                pl.loop(0, nk)(kv_tile)

        q0 = pl.multiple_of(qi * TQ, TQ)
        x_q = x_ref[pl.ds(q0, TQ), :]                                    # (TQ, Cp)
        x_q_ln_bf = ln1(x_q).astype(bf16)

        def kT_blk(h, kt):
            return kT_scr[kt, h * dhp:(h + 1) * dhp, :]                  # (dhp, tk)

        def v_blk(h, kt):
            return v_scr[kt, :, h * dhp:(h + 1) * dhp]                   # (tk, dhp)

    # ---- Q projection (1/sqrt(dh) folded into the weights) ------------------
    q2 = jnp.dot(x_q_ln_bf, wq_ref[...], preferred_element_type=f32) + bq_ref[...]
    q_all = q2.astype(bf16)                                              # (TQ, Dh)

    # ---- flash attention: per-head plain 2-D matmuls over key tiles ---------
    def head_out(h):
        q_h = q_all[:, h * dhp:(h + 1) * dhp]                            # (TQ, dhp)

        if nk == 1:
            s = jnp.dot(q_h, kT_blk(h, 0), preferred_element_type=f32)
            s = s - jnp.max(s, axis=-1, keepdims=True)
            p = jnp.exp(s)
            l = jnp.sum(p, axis=-1, keepdims=True)
            o = jnp.dot(p.astype(bf16), v_blk(h, 0), preferred_element_type=f32)
            return o * pl.reciprocal(l, approx=True)

        def body(kt, carry):
            m_p, l_p, a_p = carry
            s = jnp.dot(q_h, kT_blk(h, kt), preferred_element_type=f32)  # (TQ, tk)
            m_n = jnp.maximum(m_p, jnp.max(s, axis=-1, keepdims=True))
            alpha = jnp.exp(m_p - m_n)
            p = jnp.exp(s - m_n)                                         # f32 (v5e-safe)
            l_n = alpha * l_p + jnp.sum(p, axis=-1, keepdims=True)
            a_n = alpha * a_p + jnp.dot(p.astype(bf16), v_blk(h, kt),
                                        preferred_element_type=f32)
            return m_n, l_n, a_n

        init = (jnp.full((TQ, 1), -jnp.inf, f32),
                jnp.zeros((TQ, 1), f32),
                jnp.zeros((TQ, dhp), f32))
        if unroll_k:
            carry = init
            for kt in range(nk):
                carry = body(kt, carry)
        else:
            carry = jax.lax.fori_loop(0, nk, body, init)
        _, l_f, a_f = carry
        return a_f * pl.reciprocal(l_f, approx=True)                     # (TQ, dhp)

    o2 = jnp.concatenate([head_out(h) for h in range(H)], axis=-1)       # (TQ, Dh)
    attn = jnp.dot(o2.astype(bf16), wo_ref[...],
                   preferred_element_type=f32) + bo_ref[...]             # (TQ, Cp)

    av = attn + x_q                                                      # residual

    # ---- feed-forward: LN -> Linear -> GELU(exact) -> Linear ----------------
    h_ln = _layer_norm_padded(av, ln2_g_ref[...], ln2_b_ref[...], inv_c)
    h1 = jnp.dot(h_ln.astype(bf16), w1_ref[...],
                 preferred_element_type=f32) + b1_ref[...]
    h2 = jnp.dot(_gelu_exact(h1).astype(bf16), w2_ref[...],
                 preferred_element_type=f32) + b2_ref[...]

    o_ref[...] = h2 + av


def _prep_params(params, *, channels, num_heads, c_pad, dh_pad):
    """Repack PyTorch-layout params into padded, pre-transposed, head-blocked
    kernel operands (weights bf16, LN params / biases f32).  All padded rows /
    columns are exactly zero — this invariant keeps the padded-channel
    LayerNorms and residuals correct."""
    C, H, Cp, dhp = channels, num_heads, c_pad, dh_pad
    dh = C // H
    Dh = H * dhp
    scale = 1.0 / math.sqrt(dh)
    f32, bf16 = jnp.float32, jnp.bfloat16

    def vec(v):
        v = jnp.asarray(v, f32).reshape(-1)
        return jnp.pad(v, (0, Cp - v.shape[0])).reshape(1, Cp)

    def headed_w(W, mult=1.0):
        # PyTorch Linear weight W (C_out, C_in); y = x @ W.T.
        Wt = jnp.asarray(W, f32).T * mult                  # (C_in, C_out)
        Wt = Wt.reshape(C, H, dh)
        Wt = jnp.pad(Wt, ((0, Cp - C), (0, 0), (0, dhp - dh)))
        return Wt.reshape(Cp, Dh).astype(bf16)

    def headed_b(b, mult=1.0):
        bb = jnp.asarray(b, f32).reshape(H, dh) * mult
        bb = jnp.pad(bb, ((0, 0), (0, dhp - dh)))
        return bb.reshape(1, Dh)

    def headed_wT(W):
        # Pre-transposed K projection: K^T = wkT @ x_ln^T.
        Wf = jnp.asarray(W, f32).reshape(H, dh, C)         # (C_out blocked, C_in)
        Wf = jnp.pad(Wf, ((0, 0), (0, dhp - dh), (0, Cp - C)))
        return Wf.reshape(Dh, Cp).astype(bf16)

    def dense_w(W):
        Wt = jnp.asarray(W, f32).T
        return jnp.pad(Wt, ((0, Cp - C), (0, Cp - C))).astype(bf16)

    W_in, b_in = params["in_w"], params["in_b"]
    Wq, Wk, Wv = W_in[:C], W_in[C:2 * C], W_in[2 * C:]
    bq, _bk, bv = b_in[:C], b_in[C:2 * C], b_in[2 * C:]
    # Note: the K input-projection bias adds a per-query constant to every
    # score in a row, to which softmax is invariant, so it is dropped.

    wq = headed_w(Wq, scale)                               # 1/sqrt(dh) folded in
    bq_p = headed_b(bq, scale)
    wkT = headed_wT(Wk)
    wv = headed_w(Wv)
    bv_p = headed_b(bv)

    # out-projection rows follow the head-blocked padded merged-head layout.
    Wot = jnp.asarray(params["out_w"], f32).T.reshape(H, dh, C)
    Wot = jnp.pad(Wot, ((0, 0), (0, dhp - dh), (0, Cp - C)))
    wo = Wot.reshape(Dh, Cp).astype(bf16)

    return (
        vec(params["ln1_g"]), vec(params["ln1_b"]),
        wq, bq_p,
        wkT,
        wv, bv_p,
        wo, vec(params["out_b"]),
        vec(params["ln2_g"]), vec(params["ln2_b"]),
        dense_w(params["fc1_w"]), vec(params["fc1_b"]),
        dense_w(params["fc2_w"]), vec(params["fc2_b"]),
    )


def self_attention_pallas(x_nchw, params, *, channels, size, num_heads=NUM_HEADS):
    """x_nchw: (B, C, size, size) f32 -> (B, C, size, size) f32."""
    B = x_nchw.shape[0]
    C = channels
    H = num_heads
    assert C % H == 0, "channels must be divisible by num_heads"
    S = size * size
    dh = C // H
    Cp = _round_up(max(C, _LANE), _LANE)     # lane-dense channel padding
    dhp = _round_up(dh, _LANE)               # per-head dim padded to full MXU depth
    Dh = H * dhp

    # Tile sizes + scoped-VMEM limit; shrink tiles on low-VMEM parts (v7x-class).
    tq_max, tk_max = 256, 512
    vmem_limit = 64 * 1024 * 1024
    try:
        cap = int(pltpu.get_tpu_info().vmem_capacity_bytes)
        vmem_limit = min(vmem_limit, (cap * 3) // 4)
        if cap <= 96 * 1024 * 1024:          # 64 MiB VMEM generation
            tq_max, tk_max = 128, 256
    except Exception:
        vmem_limit = 32 * 1024 * 1024

    TQ = _pick_tile(S, tq_max)
    NQ = S // TQ
    TK = S if NQ == 1 else _pick_tile(S, tk_max)
    NK = S // TK
    unroll_k = NK <= 4

    # NCHW -> (B, S, Cp).  Transpose + zero-pad fuse into one XLA pass.
    x_seq = jnp.transpose(x_nchw.reshape(B, C, S), (0, 2, 1)).astype(jnp.float32)
    if Cp != C:
        x_seq = jnp.pad(x_seq, ((0, 0), (0, 0), (0, Cp - C)))

    kparams = _prep_params(params, channels=C, num_heads=H, c_pad=Cp, dh_pad=dhp)

    x_spec = pl.BlockSpec((None, S, Cp), lambda b, q: (b, 0, 0))
    const_spec = lambda p: pl.BlockSpec(p.shape, lambda b, q: (0, 0))
    in_specs = [x_spec] + [const_spec(p) for p in kparams]
    out_spec = pl.BlockSpec((None, TQ, Cp), lambda b, q: (b, q, 0))

    kernel = functools.partial(
        _self_attention_kernel,
        c_real=C, num_heads=H, dhp=dhp, tk=TK, unroll_k=unroll_k)

    # Advisory cost estimate (whole call).
    proj_flops = 2 * B * S * (3 * Cp * Dh + Dh * Cp + 2 * Cp * Cp)
    attn_flops = 4 * B * S * S * Dh
    transcendentals = B * H * S * S + B * S * Cp
    bytes_accessed = 2 * B * S * Cp * 4 + sum(
        int(p.size) * p.dtype.itemsize for p in kparams)

    out_seq = pl.pallas_call(
        kernel,
        out_shape=jax.ShapeDtypeStruct((B, S, Cp), jnp.float32),
        grid_spec=pltpu.PrefetchScalarGridSpec(
            num_scalar_prefetch=0,
            grid=(B, NQ),
            in_specs=in_specs,
            out_specs=out_spec,
            scratch_shapes=[
                pltpu.VMEM((NK, Dh, TK), jnp.bfloat16),   # K^T, key-tile blocked
                pltpu.VMEM((NK, TK, Dh), jnp.bfloat16),   # V,   key-tile blocked
            ],
        ),
        compiler_params=pltpu.CompilerParams(
            dimension_semantics=("parallel", "arbitrary"),
            vmem_limit_bytes=int(vmem_limit),
        ),
        cost_estimate=pl.CostEstimate(
            flops=int(proj_flops + attn_flops),
            transcendentals=int(transcendentals),
            bytes_accessed=int(bytes_accessed),
        ),
    )(x_seq, *kparams)

    # (B, S, Cp) -> drop channel padding -> NCHW
    out_seq = out_seq[:, :, :C]
    return jnp.transpose(out_seq, (0, 2, 1)).reshape(B, C, size, size)


# ---------------- pure-JAX reference (correctness check) --------------------
def self_attention_ref(x_nchw, params, *, channels, size, num_heads=NUM_HEADS):
    B = x_nchw.shape[0]
    C = channels
    H = num_heads
    dh = C // H
    S = size * size
    x = jnp.transpose(x_nchw.reshape(B, C, S), (0, 2, 1))            # (B, S, C)

    def ln(v, g, b):
        m = jnp.mean(v, -1, keepdims=True)
        var = jnp.mean(jnp.square(v - m), -1, keepdims=True)
        return (v - m) / jnp.sqrt(var + LN_EPS) * g + b

    x_ln = ln(x, params["ln1_g"], params["ln1_b"])
    qkv = jnp.einsum("bsc,dc->bsd", x_ln, params["in_w"]) + params["in_b"]
    q, k, v = qkv[..., :C], qkv[..., C:2 * C], qkv[..., 2 * C:]
    q = q.reshape(B, S, H, dh) / math.sqrt(dh)
    k = k.reshape(B, S, H, dh)
    v = v.reshape(B, S, H, dh)
    s = jnp.einsum("bqhd,bkhd->bhqk", q, k)
    p = jax.nn.softmax(s, axis=-1)
    o = jnp.einsum("bhqk,bkhd->bqhd", p, v).reshape(B, S, C)
    attn = jnp.einsum("bsc,dc->bsd", o, params["out_w"]) + params["out_b"]
    av = attn + x
    h = ln(av, params["ln2_g"], params["ln2_b"])
    h = jnp.einsum("bsc,dc->bsd", h, params["fc1_w"]) + params["fc1_b"]
    h = 0.5 * h * (1.0 + jax.lax.erf(h * _INV_SQRT2))
    h = jnp.einsum("bsc,dc->bsd", h, params["fc2_w"]) + params["fc2_b"]
    out = h + av
    return jnp.transpose(out, (0, 2, 1)).reshape(B, C, size, size)


def make_params(key, channels):
    """Random parameters with PyTorch layouts (Linear: y = x @ W.T + b)."""
    C = channels
    shapes = {
        "ln1_g": (C,), "ln1_b": (C,),
        "in_w": (3 * C, C), "in_b": (3 * C,),
        "out_w": (C, C), "out_b": (C,),
        "ln2_g": (C,), "ln2_b": (C,),
        "fc1_w": (C, C), "fc1_b": (C,),
        "fc2_w": (C, C), "fc2_b": (C,),
    }
    keys = jax.random.split(key, len(shapes))
    params = {}
    for k, (name, shp) in zip(keys, shapes.items()):
        params[name] = (0.05 * jax.random.normal(k, shp)).astype(jnp.float32)
    params["ln1_g"] = params["ln1_g"] + 1.0
    params["ln2_g"] = params["ln2_g"] + 1.0
    return params


if __name__ == "__main__":
    key = jax.random.PRNGKey(0)

    # Small-shape analogs of the UNet's SelfAttention blocks, covering:
    #   single query tile, multiple query tiles (unrolled key loop),
    #   and many key tiles (fori_loop flash path).
    test_cases = [
        dict(B=2, C=8, SZ=8),     # S = 64    : single tile, fused Q/K/V LN
        dict(B=2, C=16, SZ=32),   # S = 1024  : multi query tiles, few key tiles
        dict(B=1, C=32, SZ=64),   # S = 4096  : flash fori_loop over key tiles
    ]

    for i, tc in enumerate(test_cases):
        B, C, SZ = tc["B"], tc["C"], tc["SZ"]
        kx, kp, key = jax.random.split(key, 3)
        x = jax.random.normal(kx, (B, C, SZ, SZ), dtype=jnp.float32)
        params = make_params(kp, C)

        run = jax.jit(functools.partial(self_attention_pallas, channels=C, size=SZ))
        out = jax.block_until_ready(run(x, params))

        ref = self_attention_ref(x, params, channels=C, size=SZ)
        assert out.shape == (B, C, SZ, SZ)
        err = float(jnp.max(jnp.abs(out - ref)))
        assert err < 1e-2, f"case {i}: max abs err {err}"

    print("KERNEL_OK")
</pallas_src>

<mosaic_0001>
module attributes {stable_mosaic.version = 11 : i64} {
  func.func @_self_attention_kernel(%arg0: i32, %arg1: i32, %arg2: memref<1x64x128xf32, #tpu.memory_space<vmem>>, %arg3: memref<1x128xf32, #tpu.memory_space<vmem>>, %arg4: memref<1x128xf32, #tpu.memory_space<vmem>>, %arg5: memref<128x512xbf16, #tpu.memory_space<vmem>>, %arg6: memref<1x512xf32, #tpu.memory_space<vmem>>, %arg7: memref<512x128xbf16, #tpu.memory_space<vmem>>, %arg8: memref<128x512xbf16, #tpu.memory_space<vmem>>, %arg9: memref<1x512xf32, #tpu.memory_space<vmem>>, %arg10: memref<512x128xbf16, #tpu.memory_space<vmem>>, %arg11: memref<1x128xf32, #tpu.memory_space<vmem>>, %arg12: memref<1x128xf32, #tpu.memory_space<vmem>>, %arg13: memref<1x128xf32, #tpu.memory_space<vmem>>, %arg14: memref<128x128xbf16, #tpu.memory_space<vmem>>, %arg15: memref<1x128xf32, #tpu.memory_space<vmem>>, %arg16: memref<128x128xbf16, #tpu.memory_space<vmem>>, %arg17: memref<1x128xf32, #tpu.memory_space<vmem>>, %arg18: memref<1x64x128xf32, #tpu.memory_space<vmem>>, %arg19: memref<1x512x64xbf16, #tpu.memory_space<vmem>>, %arg20: memref<1x64x512xbf16, #tpu.memory_space<vmem>>) attributes {dimension_semantics = [#tpu.dimension_semantics<parallel>, #tpu.dimension_semantics<arbitrary>], iteration_bounds = array<i64: 2, 1>, scalar_prefetch = 0 : i64, scratch_operands = 2 : i64, tpu.core_type = #tpu.core_type<tc>, window_params = [{transform_indices = @transform_0, window_bounds = array<i64: 1, 64, 128>}, {pipeline_mode = #tpu.pipeline_mode<synchronous>, transform_indices = @transform_1, window_bounds = array<i64: 1, 128>}, {pipeline_mode = #tpu.pipeline_mode<synchronous>, transform_indices = @transform_2, window_bounds = array<i64: 1, 128>}, {pipeline_mode = #tpu.pipeline_mode<synchronous>, transform_indices = @transform_3, window_bounds = array<i64: 128, 512>}, {pipeline_mode = #tpu.pipeline_mode<synchronous>, transform_indices = @transform_4, window_bounds = array<i64: 1, 512>}, {pipeline_mode = #tpu.pipeline_mode<synchronous>, transform_indices = @transform_5, window_bounds = array<i64: 512, 128>}, {pipeline_mode = #tpu.pipeline_mode<synchronous>, transform_indices = @transform_6, window_bounds = array<i64: 128, 512>}, {pipeline_mode = #tpu.pipeline_mode<synchronous>, transform_indices = @transform_7, window_bounds = array<i64: 1, 512>}, {pipeline_mode = #tpu.pipeline_mode<synchronous>, transform_indices = @transform_8, window_bounds = array<i64: 512, 128>}, {pipeline_mode = #tpu.pipeline_mode<synchronous>, transform_indices = @transform_9, window_bounds = array<i64: 1, 128>}, {pipeline_mode = #tpu.pipeline_mode<synchronous>, transform_indices = @transform_10, window_bounds = array<i64: 1, 128>}, {pipeline_mode = #tpu.pipeline_mode<synchronous>, transform_indices = @transform_11, window_bounds = array<i64: 1, 128>}, {pipeline_mode = #tpu.pipeline_mode<synchronous>, transform_indices = @transform_12, window_bounds = array<i64: 128, 128>}, {pipeline_mode = #tpu.pipeline_mode<synchronous>, transform_indices = @transform_13, window_bounds = array<i64: 1, 128>}, {pipeline_mode = #tpu.pipeline_mode<synchronous>, transform_indices = @transform_14, window_bounds = array<i64: 128, 128>}, {pipeline_mode = #tpu.pipeline_mode<synchronous>, transform_indices = @transform_15, window_bounds = array<i64: 1, 128>}, {transform_indices = @transform_16, window_bounds = array<i64: 1, 64, 128>}]} {
    %c0 = arith.constant 0 : index
    %c0_0 = arith.constant 0 : index
    %c0_1 = arith.constant 0 : index
    %0 = vector.load %arg2[%c0, %c0_0, %c0_1] : memref<1x64x128xf32, #tpu.memory_space<vmem>>, vector<1x64x128xf32>
    %1 = vector.shape_cast %0 : vector<1x64x128xf32> to vector<64x128xf32>
    %c0_2 = arith.constant 0 : index
    %c0_3 = arith.constant 0 : index
    %2 = vector.load %arg3[%c0_2, %c0_3] : memref<1x128xf32, #tpu.memory_space<vmem>>, vector<1x128xf32>
    %c0_4 = arith.constant 0 : index
    %c0_5 = arith.constant 0 : index
    %3 = vector.load %arg4[%c0_4, %c0_5] : memref<1x128xf32, #tpu.memory_space<vmem>>, vector<1x128xf32>
    %cst = arith.constant dense<0.000000e+00> : vector<64xf32>
    %4 = vector.multi_reduction <add>, %1, %cst [1] : vector<64x128xf32> to vector<64xf32>
    %5 = vector.shape_cast %4 : vector<64xf32> to vector<64x1xf32>
    %6 = arith.mulf %1, %1 : vector<64x128xf32>
    %cst_6 = arith.constant dense<0.000000e+00> : vector<64xf32>
    %7 = vector.multi_reduction <add>, %6, %cst_6 [1] : vector<64x128xf32> to vector<64xf32>
    %8 = vector.shape_cast %7 : vector<64xf32> to vector<64x1xf32>
    %cst_7 = arith.constant 1.250000e-01 : f32
    %9 = vector.broadcast %cst_7 : f32 to vector<64x1xf32>
    %10 = arith.mulf %5, %9 : vector<64x1xf32>
    %cst_8 = arith.constant 1.250000e-01 : f32
    %11 = vector.broadcast %cst_8 : f32 to vector<64x1xf32>
    %12 = arith.mulf %8, %11 : vector<64x1xf32>
    %13 = arith.mulf %10, %10 : vector<64x1xf32>
    %14 = arith.subf %12, %13 : vector<64x1xf32>
    %15 = vector.broadcast %10 : vector<64x1xf32> to vector<64x128xf32>
    %16 = arith.subf %1, %15 : vector<64x128xf32>
    %cst_9 = arith.constant 9.99999974E-6 : f32
    %17 = vector.broadcast %cst_9 : f32 to vector<64x1xf32>
    %18 = arith.addf %14, %17 : vector<64x1xf32>
    %19 = math.rsqrt %18 : vector<64x1xf32>
    %20 = vector.broadcast %19 : vector<64x1xf32> to vector<64x128xf32>
    %21 = arith.mulf %16, %20 : vector<64x128xf32>
    %22 = vector.broadcast %2 : vector<1x128xf32> to vector<64x128xf32>
    %23 = arith.mulf %21, %22 : vector<64x128xf32>
    %24 = vector.broadcast %3 : vector<1x128xf32> to vector<64x128xf32>
    %25 = arith.addf %23, %24 : vector<64x128xf32>
    %26 = arith.truncf %25 : vector<64x128xf32> to vector<64x128xbf16>
    %c0_10 = arith.constant 0 : index
    %c0_11 = arith.constant 0 : index
    %27 = vector.load %arg7[%c0_10, %c0_11] : memref<512x128xbf16, #tpu.memory_space<vmem>>, vector<512x128xbf16>
    %28 = tpu.transpose %25, [1, 0] : vector<64x128xf32> -> vector<128x64xf32>
    %29 = arith.truncf %28 : vector<128x64xf32> to vector<128x64xbf16>
    %cst_12 = arith.constant dense<0.000000e+00> : vector<512x64xf32>
    %30 = tpu.matmul %27, %29, %cst_12 {dimension_numbers = #tpu.dot_dimension_numbers<[1], [0], [0], [1], [0, 0, 1, 1], [], []>} : vector<512x128xbf16>, vector<128x64xbf16>, vector<512x64xf32> -> vector<512x64xf32>
    %31 = arith.truncf %30 : vector<512x64xf32> to vector<512x64xbf16>
    %c0_13 = arith.constant 0 : index
    %c0_14 = arith.constant 0 : index
    %32 = vector.load %arg8[%c0_13, %c0_14] : memref<128x512xbf16, #tpu.memory_space<vmem>>, vector<128x512xbf16>
    %cst_15 = arith.constant dense<0.000000e+00> : vector<64x512xf32>
    %33 = tpu.matmul %26, %32, %cst_15 {dimension_numbers = #tpu.dot_dimension_numbers<[1], [0], [0], [1], [0, 0, 1, 1], [], []>} : vector<64x128xbf16>, vector<128x512xbf16>, vector<64x512xf32> -> vector<64x512xf32>
    %c0_16 = arith.constant 0 : index
    %c0_17 = arith.constant 0 : index
    %34 = vector.load %arg9[%c0_16, %c0_17] : memref<1x512xf32, #tpu.memory_space<vmem>>, vector<1x512xf32>
    %35 = vector.broadcast %34 : vector<1x512xf32> to vector<64x512xf32>
    %36 = arith.addf %33, %35 : vector<64x512xf32>
    %37 = arith.truncf %36 : vector<64x512xf32> to vector<64x512xbf16>
    %c0_18 = arith.constant 0 : index
    %c0_19 = arith.constant 0 : index
    %38 = vector.load %arg5[%c0_18, %c0_19] : memref<128x512xbf16, #tpu.memory_space<vmem>>, vector<128x512xbf16>
    %cst_20 = arith.constant dense<0.000000e+00> : vector<64x512xf32>
    %39 = tpu.matmul %26, %38, %cst_20 {dimension_numbers = #tpu.dot_dimension_numbers<[1], [0], [0], [1], [0, 0, 1, 1], [], []>} : vector<64x128xbf16>, vector<128x512xbf16>, vector<64x512xf32> -> vector<64x512xf32>
    %c0_21 = arith.constant 0 : index
    %c0_22 = arith.constant 0 : index
    %40 = vector.load %arg6[%c0_21, %c0_22] : memref<1x512xf32, #tpu.memory_space<vmem>>, vector<1x512xf32>
    %41 = vector.broadcast %40 : vector<1x512xf32> to vector<64x512xf32>
    %42 = arith.addf %39, %41 : vector<64x512xf32>
    %43 = arith.truncf %42 : vector<64x512xf32> to vector<64x512xbf16>
    %44 = vector.extract_strided_slice %43 {offsets = [0, 0], sizes = [64, 128], strides = [1, 1]} : vector<64x512xbf16> to vector<64x128xbf16>
    %45 = vector.extract_strided_slice %31 {offsets = [0, 0], sizes = [128, 64], strides = [1, 1]} : vector<512x64xbf16> to vector<128x64xbf16>
    %cst_23 = arith.constant dense<0.000000e+00> : vector<64x64xf32>
    %46 = tpu.matmul %44, %45, %cst_23 {dimension_numbers = #tpu.dot_dimension_numbers<[1], [0], [0], [1], [0, 0, 1, 1], [], []>} : vector<64x128xbf16>, vector<128x64xbf16>, vector<64x64xf32> -> vector<64x64xf32>
    %cst_24 = arith.constant dense<0xFF800000> : vector<64xf32>
    %47 = vector.multi_reduction <maximumf>, %46, %cst_24 [1] : vector<64x64xf32> to vector<64xf32>
    %48 = vector.shape_cast %47 : vector<64xf32> to vector<64x1xf32>
    %49 = vector.broadcast %48 : vector<64x1xf32> to vector<64x64xf32>
    %50 = arith.subf %46, %49 : vector<64x64xf32>
    %51 = math.exp %50 : vector<64x64xf32>
    %cst_25 = arith.constant dense<0.000000e+00> : vector<64xf32>
    %52 = vector.multi_reduction <add>, %51, %cst_25 [1] : vector<64x64xf32> to vector<64xf32>
    %53 = vector.shape_cast %52 : vector<64xf32> to vector<64x1xf32>
    %54 = arith.truncf %51 : vector<64x64xf32> to vector<64x64xbf16>
    %55 = vector.extract_strided_slice %37 {offsets = [0, 0], sizes = [64, 128], strides = [1, 1]} : vector<64x512xbf16> to vector<64x128xbf16>
    %cst_26 = arith.constant dense<0.000000e+00> : vector<64x128xf32>
    %56 = tpu.matmul %54, %55, %cst_26 {dimension_numbers = #tpu.dot_dimension_numbers<[1], [0], [0], [1], [0, 0, 1, 1], [], []>} : vector<64x64xbf16>, vector<64x128xbf16>, vector<64x128xf32> -> vector<64x128xf32>
    %57 = tpu.reciprocal %53 {approx = true} : vector<64x1xf32> -> vector<64x1xf32>
    %58 = vector.broadcast %57 : vector<64x1xf32> to vector<64x128xf32>
    %59 = arith.mulf %56, %58 : vector<64x128xf32>
    %60 = vector.extract_strided_slice %43 {offsets = [0, 128], sizes = [64, 128], strides = [1, 1]} : vector<64x512xbf16> to vector<64x128xbf16>
    %61 = vector.extract_strided_slice %31 {offsets = [128, 0], sizes = [128, 64], strides = [1, 1]} : vector<512x64xbf16> to vector<128x64xbf16>
    %cst_27 = arith.constant dense<0.000000e+00> : vector<64x64xf32>
    %62 = tpu.matmul %60, %61, %cst_27 {dimension_numbers = #tpu.dot_dimension_numbers<[1], [0], [0], [1], [0, 0, 1, 1], [], []>} : vector<64x128xbf16>, vector<128x64xbf16>, vector<64x64xf32> -> vector<64x64xf32>
    %cst_28 = arith.constant dense<0xFF800000> : vector<64xf32>
    %63 = vector.multi_reduction <maximumf>, %62, %cst_28 [1] : vector<64x64xf32> to vector<64xf32>
    %64 = vector.shape_cast %63 : vector<64xf32> to vector<64x1xf32>
    %65 = vector.broadcast %64 : vector<64x1xf32> to vector<64x64xf32>
    %66 = arith.subf %62, %65 : vector<64x64xf32>
    %67 = math.exp %66 : vector<64x64xf32>
    %cst_29 = arith.constant dense<0.000000e+00> : vector<64xf32>
    %68 = vector.multi_reduction <add>, %67, %cst_29 [1] : vector<64x64xf32> to vector<64xf32>
    %69 = vector.shape_cast %68 : vector<64xf32> to vector<64x1xf32>
    %70 = arith.truncf %67 : vector<64x64xf32> to vector<64x64xbf16>
    %71 = vector.extract_strided_slice %37 {offsets = [0, 128], sizes = [64, 128], strides = [1, 1]} : vector<64x512xbf16> to vector<64x128xbf16>
    %cst_30 = arith.constant dense<0.000000e+00> : vector<64x128xf32>
    %72 = tpu.matmul %70, %71, %cst_30 {dimension_numbers = #tpu.dot_dimension_numbers<[1], [0], [0], [1], [0, 0, 1, 1], [], []>} : vector<64x64xbf16>, vector<64x128xbf16>, vector<64x128xf32> -> vector<64x128xf32>
    %73 = tpu.reciprocal %69 {approx = true} : vector<64x1xf32> -> vector<64x1xf32>
    %74 = vector.broadcast %73 : vector<64x1xf32> to vector<64x128xf32>
    %75 = arith.mulf %72, %74 : vector<64x128xf32>
    %76 = vector.extract_strided_slice %43 {offsets = [0, 256], sizes = [64, 128], strides = [1, 1]} : vector<64x512xbf16> to vector<64x128xbf16>
    %77 = vector.extract_strided_slice %31 {offsets = [256, 0], sizes = [128, 64], strides = [1, 1]} : vector<512x64xbf16> to vector<128x64xbf16>
    %cst_31 = arith.constant dense<0.000000e+00> : vector<64x64xf32>
    %78 = tpu.matmul %76, %77, %cst_31 {dimension_numbers = #tpu.dot_dimension_numbers<[1], [0], [0], [1], [0, 0, 1, 1], [], []>} : vector<64x128xbf16>, vector<128x64xbf16>, vector<64x64xf32> -> vector<64x64xf32>
    %cst_32 = arith.constant dense<0xFF800000> : vector<64xf32>
    %79 = vector.multi_reduction <maximumf>, %78, %cst_32 [1] : vector<64x64xf32> to vector<64xf32>
    %80 = vector.shape_cast %79 : vector<64xf32> to vector<64x1xf32>
    %81 = vector.broadcast %80 : vector<64x1xf32> to vector<64x64xf32>
    %82 = arith.subf %78, %81 : vector<64x64xf32>
    %83 = math.exp %82 : vector<64x64xf32>
    %cst_33 = arith.constant dense<0.000000e+00> : vector<64xf32>
    %84 = vector.multi_reduction <add>, %83, %cst_33 [1] : vector<64x64xf32> to vector<64xf32>
    %85 = vector.shape_cast %84 : vector<64xf32> to vector<64x1xf32>
    %86 = arith.truncf %83 : vector<64x64xf32> to vector<64x64xbf16>
    %87 = vector.extract_strided_slice %37 {offsets = [0, 256], sizes = [64, 128], strides = [1, 1]} : vector<64x512xbf16> to vector<64x128xbf16>
    %cst_34 = arith.constant dense<0.000000e+00> : vector<64x128xf32>
    %88 = tpu.matmul %86, %87, %cst_34 {dimension_numbers = #tpu.dot_dimension_numbers<[1], [0], [0], [1], [0, 0, 1, 1], [], []>} : vector<64x64xbf16>, vector<64x128xbf16>, vector<64x128xf32> -> vector<64x128xf32>
    %89 = tpu.reciprocal %85 {approx = true} : vector<64x1xf32> -> vector<64x1xf32>
    %90 = vector.broadcast %89 : vector<64x1xf32> to vector<64x128xf32>
    %91 = arith.mulf %88, %90 : vector<64x128xf32>
    %92 = vector.extract_strided_slice %43 {offsets = [0, 384], sizes = [64, 128], strides = [1, 1]} : vector<64x512xbf16> to vector<64x128xbf16>
    %93 = vector.extract_strided_slice %31 {offsets = [384, 0], sizes = [128, 64], strides = [1, 1]} : vector<512x64xbf16> to vector<128x64xbf16>
    %cst_35 = arith.constant dense<0.000000e+00> : vector<64x64xf32>
    %94 = tpu.matmul %92, %93, %cst_35 {dimension_numbers = #tpu.dot_dimension_numbers<[1], [0], [0], [1], [0, 0, 1, 1], [], []>} : vector<64x128xbf16>, vector<128x64xbf16>, vector<64x64xf32> -> vector<64x64xf32>
    %cst_36 = arith.constant dense<0xFF800000> : vector<64xf32>
    %95 = vector.multi_reduction <maximumf>, %94, %cst_36 [1] : vector<64x64xf32> to vector<64xf32>
    %96 = vector.shape_cast %95 : vector<64xf32> to vector<64x1xf32>
    %97 = vector.broadcast %96 : vector<64x1xf32> to vector<64x64xf32>
    %98 = arith.subf %94, %97 : vector<64x64xf32>
    %99 = math.exp %98 : vector<64x64xf32>
    %cst_37 = arith.constant dense<0.000000e+00> : vector<64xf32>
    %100 = vector.multi_reduction <add>, %99, %cst_37 [1] : vector<64x64xf32> to vector<64xf32>
    %101 = vector.shape_cast %100 : vector<64xf32> to vector<64x1xf32>
    %102 = arith.truncf %99 : vector<64x64xf32> to vector<64x64xbf16>
    %103 = vector.extract_strided_slice %37 {offsets = [0, 384], sizes = [64, 128], strides = [1, 1]} : vector<64x512xbf16> to vector<64x128xbf16>
    %cst_38 = arith.constant dense<0.000000e+00> : vector<64x128xf32>
    %104 = tpu.matmul %102, %103, %cst_38 {dimension_numbers = #tpu.dot_dimension_numbers<[1], [0], [0], [1], [0, 0, 1, 1], [], []>} : vector<64x64xbf16>, vector<64x128xbf16>, vector<64x128xf32> -> vector<64x128xf32>
    %105 = tpu.reciprocal %101 {approx = true} : vector<64x1xf32> -> vector<64x1xf32>
    %106 = vector.broadcast %105 : vector<64x1xf32> to vector<64x128xf32>
    %107 = arith.mulf %104, %106 : vector<64x128xf32>
    %108 = tpu.concatenate %59, %75, %91, %107 in 1 : vector<64x128xf32>, vector<64x128xf32>, vector<64x128xf32>, vector<64x128xf32> -> vector<64x512xf32>
    %109 = arith.truncf %108 : vector<64x512xf32> to vector<64x512xbf16>
    %c0_39 = arith.constant 0 : index
    %c0_40 = arith.constant 0 : index
    %110 = vector.load %arg10[%c0_39, %c0_40] : memref<512x128xbf16, #tpu.memory_space<vmem>>, vector<512x128xbf16>
    %cst_41 = arith.constant dense<0.000000e+00> : vector<64x128xf32>
    %111 = tpu.matmul %109, %110, %cst_41 {dimension_numbers = #tpu.dot_dimension_numbers<[1], [0], [0], [1], [0, 0, 1, 1], [], []>} : vector<64x512xbf16>, vector<512x128xbf16>, vector<64x128xf32> -> vector<64x128xf32>
    %c0_42 = arith.constant 0 : index
    %c0_43 = arith.constant 0 : index
    %112 = vector.load %arg11[%c0_42, %c0_43] : memref<1x128xf32, #tpu.memory_space<vmem>>, vector<1x128xf32>
    %113 = vector.broadcast %112 : vector<1x128xf32> to vector<64x128xf32>
    %114 = arith.addf %111, %113 : vector<64x128xf32>
    %115 = arith.addf %114, %1 : vector<64x128xf32>
    %c0_44 = arith.constant 0 : index
    %c0_45 = arith.constant 0 : index
    %116 = vector.load %arg12[%c0_44, %c0_45] : memref<1x128xf32, #tpu.memory_space<vmem>>, vector<1x128xf32>
    %c0_46 = arith.constant 0 : index
    %c0_47 = arith.constant 0 : index
    %117 = vector.load %arg13[%c0_46, %c0_47] : memref<1x128xf32, #tpu.memory_space<vmem>>, vector<1x128xf32>
    %cst_48 = arith.constant dense<0.000000e+00> : vector<64xf32>
    %118 = vector.multi_reduction <add>, %115, %cst_48 [1] : vector<64x128xf32> to vector<64xf32>
    %119 = vector.shape_cast %118 : vector<64xf32> to vector<64x1xf32>
    %120 = arith.mulf %115, %115 : vector<64x128xf32>
    %cst_49 = arith.constant dense<0.000000e+00> : vector<64xf32>
    %121 = vector.multi_reduction <add>, %120, %cst_49 [1] : vector<64x128xf32> to vector<64xf32>
    %122 = vector.shape_cast %121 : vector<64xf32> to vector<64x1xf32>
    %cst_50 = arith.constant 1.250000e-01 : f32
    %123 = vector.broadcast %cst_50 : f32 to vector<64x1xf32>
    %124 = arith.mulf %119, %123 : vector<64x1xf32>
    %cst_51 = arith.constant 1.250000e-01 : f32
    %125 = vector.broadcast %cst_51 : f32 to vector<64x1xf32>
    %126 = arith.mulf %122, %125 : vector<64x1xf32>
    %127 = arith.mulf %124, %124 : vector<64x1xf32>
    %128 = arith.subf %126, %127 : vector<64x1xf32>
    %129 = vector.broadcast %124 : vector<64x1xf32> to vector<64x128xf32>
    %130 = arith.subf %115, %129 : vector<64x128xf32>
    %cst_52 = arith.constant 9.99999974E-6 : f32
    %131 = vector.broadcast %cst_52 : f32 to vector<64x1xf32>
    %132 = arith.addf %128, %131 : vector<64x1xf32>
    %133 = math.rsqrt %132 : vector<64x1xf32>
    %134 = vector.broadcast %133 : vector<64x1xf32> to vector<64x128xf32>
    %135 = arith.mulf %130, %134 : vector<64x128xf32>
    %136 = vector.broadcast %116 : vector<1x128xf32> to vector<64x128xf32>
    %137 = arith.mulf %135, %136 : vector<64x128xf32>
    %138 = vector.broadcast %117 : vector<1x128xf32> to vector<64x128xf32>
    %139 = arith.addf %137, %138 : vector<64x128xf32>
    %140 = arith.truncf %139 : vector<64x128xf32> to vector<64x128xbf16>
    %c0_53 = arith.constant 0 : index
    %c0_54 = arith.constant 0 : index
    %141 = vector.load %arg14[%c0_53, %c0_54] : memref<128x128xbf16, #tpu.memory_space<vmem>>, vector<128x128xbf16>
    %cst_55 = arith.constant dense<0.000000e+00> : vector<64x128xf32>
    %142 = tpu.matmul %140, %141, %cst_55 {dimension_numbers = #tpu.dot_dimension_numbers<[1], [0], [0], [1], [0, 0, 1, 1], [], []>} : vector<64x128xbf16>, vector<128x128xbf16>, vector<64x128xf32> -> vector<64x128xf32>
    %c0_56 = arith.constant 0 : index
    %c0_57 = arith.constant 0 : index
    %143 = vector.load %arg15[%c0_56, %c0_57] : memref<1x128xf32, #tpu.memory_space<vmem>>, vector<1x128xf32>
    %144 = vector.broadcast %143 : vector<1x128xf32> to vector<64x128xf32>
    %145 = arith.addf %142, %144 : vector<64x128xf32>
    %cst_58 = arith.constant 5.000000e-01 : f32
    %146 = vector.broadcast %cst_58 : f32 to vector<64x128xf32>
    %147 = arith.mulf %146, %145 : vector<64x128xf32>
    %cst_59 = arith.constant 0.707106769 : f32
    %148 = vector.broadcast %cst_59 : f32 to vector<64x128xf32>
    %149 = arith.mulf %145, %148 : vector<64x128xf32>
    %150 = math.erf %149 : vector<64x128xf32>
    %cst_60 = arith.constant 1.000000e+00 : f32
    %151 = vector.broadcast %cst_60 : f32 to vector<64x128xf32>
    %152 = arith.addf %151, %150 : vector<64x128xf32>
    %153 = arith.mulf %147, %152 : vector<64x128xf32>
    %154 = arith.truncf %153 : vector<64x128xf32> to vector<64x128xbf16>
    %c0_61 = arith.constant 0 : index
    %c0_62 = arith.constant 0 : index
    %155 = vector.load %arg16[%c0_61, %c0_62] : memref<128x128xbf16, #tpu.memory_space<vmem>>, vector<128x128xbf16>
    %cst_63 = arith.constant dense<0.000000e+00> : vector<64x128xf32>
    %156 = tpu.matmul %154, %155, %cst_63 {dimension_numbers = #tpu.dot_dimension_numbers<[1], [0], [0], [1], [0, 0, 1, 1], [], []>} : vector<64x128xbf16>, vector<128x128xbf16>, vector<64x128xf32> -> vector<64x128xf32>
    %c0_64 = arith.constant 0 : index
    %c0_65 = arith.constant 0 : index
    %157 = vector.load %arg17[%c0_64, %c0_65] : memref<1x128xf32, #tpu.memory_space<vmem>>, vector<1x128xf32>
    %158 = vector.broadcast %157 : vector<1x128xf32> to vector<64x128xf32>
    %159 = arith.addf %156, %158 : vector<64x128xf32>
    %160 = arith.addf %159, %115 : vector<64x128xf32>
    %c0_66 = arith.constant 0 : index
    %c0_67 = arith.constant 0 : index
    %c0_68 = arith.constant 0 : index
    %161 = vector.load %arg18[%c0_66, %c0_67, %c0_68] : memref<1x64x128xf32, #tpu.memory_space<vmem>>, vector<1x64x128xf32>
    %162 = vector.shape_cast %161 : vector<1x64x128xf32> to vector<64x128xf32>
    %163 = vector.shape_cast %160 : vector<64x128xf32> to vector<1x64x128xf32>
    tpu.vector_store %arg18[%c0_66, %c0_67, %c0_68], %163 {strides = array<i32>} : memref<1x64x128xf32, #tpu.memory_space<vmem>>, vector<1x64x128xf32>,
    return
  }
  func.func @transform_0(%arg0: i32, %arg1: i32) -> (i32, i32, i32) {
    %c0_i32 = arith.constant 0 : i32
    %c0_i32_0 = arith.constant 0 : i32
    %c0_i32_1 = arith.constant 0 : i32
    return %arg0, %c0_i32, %c0_i32_0 : i32, i32, i32
  }
  func.func @transform_1(%arg0: i32, %arg1: i32) -> (i32, i32) {
    %c0_i32 = arith.constant 0 : i32
    %c0_i32_0 = arith.constant 0 : i32
    %c0_i32_1 = arith.constant 0 : i32
    return %c0_i32, %c0_i32_0 : i32, i32
  }
  func.func @transform_2(%arg0: i32, %arg1: i32) -> (i32, i32) {
    %c0_i32 = arith.constant 0 : i32
    %c0_i32_0 = arith.constant 0 : i32
    %c0_i32_1 = arith.constant 0 : i32
    return %c0_i32, %c0_i32_0 : i32, i32
  }
  func.func @transform_3(%arg0: i32, %arg1: i32) -> (i32, i32) {
    %c0_i32 = arith.constant 0 : i32
    %c0_i32_0 = arith.constant 0 : i32
    %c0_i32_1 = arith.constant 0 : i32
    return %c0_i32, %c0_i32_0 : i32, i32
  }
  func.func @transform_4(%arg0: i32, %arg1: i32) -> (i32, i32) {
    %c0_i32 = arith.constant 0 : i32
    %c0_i32_0 = arith.constant 0 : i32
    %c0_i32_1 = arith.constant 0 : i32
    return %c0_i32, %c0_i32_0 : i32, i32
  }
  func.func @transform_5(%arg0: i32, %arg1: i32) -> (i32, i32) {
    %c0_i32 = arith.constant 0 : i32
    %c0_i32_0 = arith.constant 0 : i32
    %c0_i32_1 = arith.constant 0 : i32
    return %c0_i32, %c0_i32_0 : i32, i32
  }
  func.func @transform_6(%arg0: i32, %arg1: i32) -> (i32, i32) {
    %c0_i32 = arith.constant 0 : i32
    %c0_i32_0 = arith.constant 0 : i32
    %c0_i32_1 = arith.constant 0 : i32
    return %c0_i32, %c0_i32_0 : i32, i32
  }
  func.func @transform_7(%arg0: i32, %arg1: i32) -> (i32, i32) {
    %c0_i32 = arith.constant 0 : i32
    %c0_i32_0 = arith.constant 0 : i32
    %c0_i32_1 = arith.constant 0 : i32
    return %c0_i32, %c0_i32_0 : i32, i32
  }
  func.func @transform_8(%arg0: i32, %arg1: i32) -> (i32, i32) {
    %c0_i32 = arith.constant 0 : i32
    %c0_i32_0 = arith.constant 0 : i32
    %c0_i32_1 = arith.constant 0 : i32
    return %c0_i32, %c0_i32_0 : i32, i32
  }
  func.func @transform_9(%arg0: i32, %arg1: i32) -> (i32, i32) {
    %c0_i32 = arith.constant 0 : i32
    %c0_i32_0 = arith.constant 0 : i32
    %c0_i32_1 = arith.constant 0 : i32
    return %c0_i32, %c0_i32_0 : i32, i32
  }
  func.func @transform_10(%arg0: i32, %arg1: i32) -> (i32, i32) {
    %c0_i32 = arith.constant 0 : i32
    %c0_i32_0 = arith.constant 0 : i32
    %c0_i32_1 = arith.constant 0 : i32
    return %c0_i32, %c0_i32_0 : i32, i32
  }
  func.func @transform_11(%arg0: i32, %arg1: i32) -> (i32, i32) {
    %c0_i32 = arith.constant 0 : i32
    %c0_i32_0 = arith.constant 0 : i32
    %c0_i32_1 = arith.constant 0 : i32
    return %c0_i32, %c0_i32_0 : i32, i32
  }
  func.func @transform_12(%arg0: i32, %arg1: i32) -> (i32, i32) {
    %c0_i32 = arith.constant 0 : i32
    %c0_i32_0 = arith.constant 0 : i32
    %c0_i32_1 = arith.constant 0 : i32
    return %c0_i32, %c0_i32_0 : i32, i32
  }
  func.func @transform_13(%arg0: i32, %arg1: i32) -> (i32, i32) {
    %c0_i32 = arith.constant 0 : i32
    %c0_i32_0 = arith.constant 0 : i32
    %c0_i32_1 = arith.constant 0 : i32
    return %c0_i32, %c0_i32_0 : i32, i32
  }
  func.func @transform_14(%arg0: i32, %arg1: i32) -> (i32, i32) {
    %c0_i32 = arith.constant 0 : i32
    %c0_i32_0 = arith.constant 0 : i32
    %c0_i32_1 = arith.constant 0 : i32
    return %c0_i32, %c0_i32_0 : i32, i32
  }
  func.func @transform_15(%arg0: i32, %arg1: i32) -> (i32, i32) {
    %c0_i32 = arith.constant 0 : i32
    %c0_i32_0 = arith.constant 0 : i32
    %c0_i32_1 = arith.constant 0 : i32
    return %c0_i32, %c0_i32_0 : i32, i32
  }
  func.func @transform_16(%arg0: i32, %arg1: i32) -> (i32, i32, i32) {
    %c0_i32 = arith.constant 0 : i32
    %c0_i32_0 = arith.constant 0 : i32
    return %arg0, %arg1, %c0_i32 : i32, i32, i32
  }
}

</mosaic_0001>

<bundles_post_ra>
// kernel: self_attention_pallas.1
= control target key start
LH: loop header
LB: loop body
LE: loop exit
PB: predicated region body
PF: predicated region fallthrough
CT: control target
= control target key end

     0   :  { %s5306_s21 = smov 0   ;;  %s5308_s22 = smov 0   ;;  %s7356_s0 = inlined_call_operand.vmem [shape: f32[2,64,128], index: 0, kind: input, shape index: {}]   ;;  %s7357_s1 = inlined_call_operand.vmem [shape: f32[1,128], index: 1, kind: input, shape index: {}]   ;;  %s7358_s2 = inlined_call_operand.vmem [shape: f32[1,128], index: 2, kind: input, shape index: {}]   ;;  %s7359_s3 = inlined_call_operand.vmem [shape: bf16[128,512], index: 3, kind: input, shape index: {}]   ;;  %s7360_s4 = inlined_call_operand.vmem [shape: f32[1,512], index: 4, kind: input, shape index: {}]   ;;  %s7361_s5 = inlined_call_operand.vmem [shape: bf16[512,128], index: 5, kind: input, shape index: {}]   ;;  %s7362_s6 = inlined_call_operand.vmem [shape: bf16[128,512], index: 6, kind: input, shape index: {}]   ;;  %s7363_s7 = inlined_call_operand.vmem [shape: f32[1,512], index: 7, kind: input, shape index: {}]   ;;  %s7364_s8 = inlined_call_operand.vmem [shape: bf16[512,128], index: 8, kind: input, shape index: {}]   ;;  %s7365_s9 = inlined_call_operand.vmem [shape: f32[1,128], index: 9, kind: input, shape index: {}]   ;;  %s7366_s10 = inlined_call_operand.vmem [shape: f32[1,128], index: 10, kind: input, shape index: {}]   ;;  %s7367_s11 = inlined_call_operand.vmem [shape: f32[1,128], index: 11, kind: input, shape index: {}]   ;;  %s7368_s12 = inlined_call_operand.vmem [shape: bf16[128,128], index: 12, kind: input, shape index: {}]   ;;  %s7369_s13 = inlined_call_operand.vmem [shape: f32[1,128], index: 13, kind: input, shape index: {}]   ;;  %s7370_s14 = inlined_call_operand.vmem [shape: bf16[128,128], index: 14, kind: input, shape index: {}]   ;;  %s7371_s15 = inlined_call_operand.vmem [shape: f32[1,128], index: 15, kind: input, shape index: {}]   ;;  %s7372_s16 = inlined_call_operand.vmem [shape: f32[2,64,128], index: 16, kind: output, shape index: {}]  }
   0x1   :  { %7374 = sst [smem:[#allocation4_spill]] %s7356_s0  ;;  %s5310_s23 = smov 0  }
   0x2   :  { %7375 = sst [smem:[#allocation5_spill]] %s7357_s1 }
   0x3 LB: > { %s38_s24 = sadd.s32 1, %s5215_s22  ;;  %p4211_p0 = scmp.ge.s32.totalorder %s5219_s23, 1  ;;  %s5219_s23 = sphi %s5310_s23, %s26_s23   ;;  %s5215_s22 = sphi %s5308_s22, %s7401_s22   ;;  %s5211_s21 = sphi %s5306_s21, %s7400_s21  }
   0x4   : > { %p40_p1 = scmp.ge.s32.totalorder %s38_s24, 2  ;;  %p476_p2 = scmp.lt.s32.totalorder %s5219_s23, 3 }
   0x6   : > { %s7403_s24 = smov (%p40_p1, %s38_s24), 0  ;;  %p477_p3 = pnand %p4211_p0, %p476_p2 }
   0x7   : > { %p530_p4 = scmp.lt.s32.totalorder (!%p477_p3), %s5211_s21, 1  ;;  %s7376_s28 = sld [smem:[#allocation4_spill]] (!%p477_p3) }
   0x8   : > { %480 = sbr.rel (%p477_p3) target bundleno = 2349 (0x92d), region = 84  ;;  %s7379_s1 = sld [smem:[#allocation5_spill]] (!%p477_p3) }
   0xd   : > { %s7405_s21 = smov (!%p530_p4, %s5211_s21), 1  ;;  %v4458_v16 = vld [vmem:[%s7362_s6 + $0xe0] sm:$0xf]  ;;  %v4882_v17 = vld [vmem:[%s7362_s6 + $0xec] sm:$0xf0] }
   0xe   : > { %s7373_s25 = sshll.u32 %s7405_s21, 6  ;;  %v4459_v18 = vor.u32 %v4882_v17, %v4458_v16  ;;  %v4442_v19 = vld [vmem:[%s7362_s6 + $0xc0] sm:$0xf]  ;;  %v4878_v20 = vld [vmem:[%s7362_s6 + $0xcc] sm:$0xf0]  ;;  %s7399_s20 = sshll.u32 %s7405_s21, 6 }
   0xf   : > { %s5332_s29 = scalar_lea.vmem %s7376_s28, %s7373_s25  ;;  %v4443_v21 = vor.u32 %v4878_v20, %v4442_v19  ;;  %v4426_v22 = vld [vmem:[%s7362_s6 + $0xa0] sm:$0xf]  ;;  %v4874_v23 = vld [vmem:[%s7362_s6 + $0xac] sm:$0xf0]  ;;  %v4881_v57 = vld [vmem:[%s7362_s6 + $0xec] sm:$0xf]  ;;  %s543_s25 = scalar_lea.vmem %s7372_s16, %s7399_s20 }
  0x10   : > { %v5335_v0 = vld [vmem:[%s5332_s29 + $0x10] sm:$0xff]  ;;  %v5338_v1 = vld [vmem:[%s5332_s29 + $0x8] sm:$0xff]  ;;  %v5341_v2 = vld [vmem:[%s5332_s29] sm:$0xff]  ;;  %1489 = vmatpush.bf16.msra.mxu1 %v4459_v18  ;;  %4972 = vmatpush.bf16.msra.mxu3 %v4459_v18  ;;  %v4427_v24 = vor.u32 %v4874_v23, %v4426_v22 }
  0x11   : > { %560 = vadd.xlane.f32.xlu2 %v5335_v0  ;;  %558 = vadd.xlane.f32.xlu1 %v5338_v1  ;;  %v574_v3 = vmul.f32 %v5335_v0, %v5335_v0  ;;  %v573_v4 = vmul.f32 %v5338_v1, %v5338_v1  ;;  %v572_v5 = vmul.f32 %v5341_v2, %v5341_v2  ;;  %v5353_v6 = vld [vmem:[%s5332_s29 + $0x18] sm:$0xff]  ;;  %v5358_v8 = vld [vmem:[%s5332_s29 + $0x20] sm:$0xff]  ;;  %v5363_v9 = vld [vmem:[%s5332_s29 + $0x28] sm:$0xff] }
  0x12   : > { %556 = vadd.xlane.f32.xlu0 %v5341_v2  ;;  %v575_v7 = vmul.f32 %v5353_v6, %v5353_v6  ;;  %v577_v10 = vmul.f32 %v5363_v9, %v5363_v9  ;;  %v576_v11 = vmul.f32 %v5358_v8, %v5358_v8  ;;  %v5371_v12 = vld [vmem:[%s5332_s29 + $0x30] sm:$0xff]  ;;  %v5376_v14 = vld [vmem:[%s5332_s29 + $0x38] sm:$0xff]  ;;  %v4410_v25 = vld [vmem:[%s7362_s6 + $0x80] sm:$0xf] }
  0x13   : > { %v578_v13 = vmul.f32 %v5371_v12, %v5371_v12  ;;  %v579_v15 = vmul.f32 %v5376_v14, %v5376_v14  ;;  %v4870_v26 = vld [vmem:[%s7362_s6 + $0x8c] sm:$0xf0]  ;;  %v4394_v28 = vld [vmem:[%s7362_s6 + $0x60] sm:$0xf]  ;;  %v4468_v58 = vld [vmem:[%s7362_s6 + $0xf8] sm:$0xf0] }
  0x14   : > { %1490 = vmatpush.bf16.msra.mxu1 %v4443_v21  ;;  %4973 = vmatpush.bf16.msra.mxu3 %v4443_v21  ;;  %v4411_v27 = vor.u32 %v4870_v26, %v4410_v25  ;;  %v4866_v29 = vld [vmem:[%s7362_s6 + $0x6c] sm:$0xf0]  ;;  %v4378_v31 = vld [vmem:[%s7362_s6 + $0x40] sm:$0xf]  ;;  %v4471_v60 = vor.u32 %v4881_v57, %v4468_v58  ;;  %v4873_v16 = vld [vmem:[%s7362_s6 + $0xac] sm:$0xf] }
  0x15   : > { %v4395_v30 = vor.u32 %v4866_v29, %v4394_v28  ;;  %v4862_v32 = vld [vmem:[%s7362_s6 + $0x4c] sm:$0xf0]  ;;  %v4362_v37 = vld [vmem:[%s7362_s6 + $0x20] sm:$0xf]  ;;  %v4436_v17 = vld [vmem:[%s7362_s6 + $0xb8] sm:$0xf0] }
  0x16   : > { %v4379_v33 = vor.u32 %v4862_v32, %v4378_v31  ;;  %v4858_v38 = vld [vmem:[%s7362_s6 + $0x2c] sm:$0xf0]  ;;  %v4346_v42 = vld [vmem:[%s7362_s6] sm:$0xf]  ;;  %v4439_v20 = vor.u32 %v4873_v16, %v4436_v17  ;;  %v4420_v28 = vld [vmem:[%s7362_s6 + $0x98] sm:$0xf0] }
  0x17   : > { %v4363_v39 = vor.u32 %v4858_v38, %v4362_v37  ;;  %v4854_v43 = vld [vmem:[%s7362_s6 + $0xc] sm:$0xf0] }
  0x18   : > { %1491 = vmatpush.bf16.msra.mxu1 %v4427_v24  ;;  %4974 = vmatpush.bf16.msra.mxu3 %v4427_v24  ;;  %v4347_v45 = vor.u32 %v4854_v43, %v4346_v42 }
  0x19   : > { %584 = vadd.xlane.f32.xlu2 %v574_v3  ;;  %582 = vadd.xlane.f32.xlu1 %v573_v4  ;;  %v4877_v3 = vld [vmem:[%s7362_s6 + $0xcc] sm:$0xf]  ;;  %v4452_v4 = vld [vmem:[%s7362_s6 + $0xd8] sm:$0xf0] }
  0x1a   : > { %580 = vadd.xlane.f32.xlu0 %v572_v5 }
  0x1c   : > { %1492 = vmatpush.bf16.msra.mxu1 %v4411_v27  ;;  %4975 = vmatpush.bf16.msra.mxu3 %v4411_v27  ;;  %v4869_v27 = vld [vmem:[%s7362_s6 + $0x8c] sm:$0xf] }
  0x20   : > { %1493 = vmatpush.bf16.msra.mxu1 %v4395_v30  ;;  %4976 = vmatpush.bf16.msra.mxu3 %v4395_v30 }
  0x21   : > { %586 = vadd.xlane.f32.xlu1 %v575_v7  ;;  %564 = vadd.xlane.f32.xlu2 %v5358_v8 }
  0x22   : > { %562 = vadd.xlane.f32.xlu0 %v5353_v6 }
  0x24   : > { %1494 = vmatpush.bf16.msra.mxu1 %v4379_v33  ;;  %4977 = vmatpush.bf16.msra.mxu3 %v4379_v33 }
  0x28   : > { %1495 = vmatpush.bf16.msra.mxu1 %v4363_v39  ;;  %4978 = vmatpush.bf16.msra.mxu3 %v4363_v39  ;;  %v4423_v39 = vor.u32 %v4869_v27, %v4420_v28  ;;  %v4388_v27 = vld [vmem:[%s7362_s6 + $0x58] sm:$0xf0] }
  0x29   : > { %566 = vadd.xlane.f32.xlu1 %v5363_v9  ;;  %590 = vadd.xlane.f32.xlu2 %v577_v10  ;;  %v4455_v10 = vor.u32 %v4877_v3, %v4452_v4 }
  0x2a   : > { %588 = vadd.xlane.f32.xlu0 %v576_v11 }
  0x2c   : > { %1496 = vmatpush.bf16.msra.mxu1 %v4347_v45  ;;  %4979 = vmatpush.bf16.msra.mxu3 %v4347_v45 }
  0x30   : > { %1576 = vmatpush.bf16.msrb.mxu1 %v4471_v60 }
  0x31   : > { %592 = vadd.xlane.f32.xlu1 %v578_v13  ;;  %570 = vadd.xlane.f32.xlu2 %v5376_v14 }
  0x32   : > { %568 = vadd.xlane.f32.xlu0 %v5371_v12 }
  0x34   : > { %1577 = vmatpush.bf16.msrb.mxu1 %v4455_v10 }
  0x38   : > { %1578 = vmatpush.bf16.msrb.mxu1 %v4439_v20  ;;  %v4883_v20 = vld [vmem:[%s7362_s6 + $0xf4] sm:$0xf0] }
  0x3a   : > { %594 = vadd.xlane.f32.xlu0 %v579_v15 }
  0x3c   : > { %1579 = vmatpush.bf16.msrb.mxu1 %v4423_v39 }
  0x84   : > { %v561_v34 = vpop.xlane.xlu2 %560  ;;  %v559_v35 = vpop.xlane.xlu1 %558 }
  0x85   : > { %v557_v36 = vpop.xlane.xlu0 %556  ;;  %v5424_v40 = vmul.f32 0.125, %v561_v34  ;;  %v5426_v41 = vmul.f32 0.125, %v559_v35 }
  0x86   : > { %v5434_v44 = vmul.f32 0.125, %v557_v36 }
  0x87   : > { %v614_v46 = vmul.f32 %v5424_v40, %v5424_v40  ;;  %v613_v47 = vmul.f32 %v5426_v41, %v5426_v41  ;;  %v629_v60 = vsub.f32 %v5338_v1, %v5426_v41  ;;  %v5542_v41 = vld [vmem:[%s7379_s1] ss:$0 sm:$0xff] }
  0x88   : > { %v612_v53 = vmul.f32 %v5434_v44, %v5434_v44  ;;  %v628_v3 = vsub.f32 %v5341_v2, %v5434_v44 }
  0x8c   : > { %v585_v48 = vpop.xlane.xlu2 %584  ;;  %v583_v49 = vpop.xlane.xlu1 %582 }
  0x8d   : > { %v606_v50 = vmul.f32 0.125, %v585_v48  ;;  %v605_v51 = vmul.f32 0.125, %v583_v49  ;;  %v581_v52 = vpop.xlane.xlu0 %580 }
  0x8e   : > { %v604_v54 = vmul.f32 0.125, %v581_v52  ;;  %v4865_v52 = vld [vmem:[%s7362_s6 + $0x6c] sm:$0xf] }
  0x8f   : > { %v622_v55 = vsub.f32 %v606_v50, %v614_v46  ;;  %v621_v56 = vsub.f32 %v605_v51, %v613_v47 }
  0x90   : > { %v620_v59 = vsub.f32 %v604_v54, %v612_v53  ;;  %v4404_v53 = vld [vmem:[%s7362_s6 + $0x78] sm:$0xf0] }
  0x91   : > { %v5448_v61 = vadd.f32 1e-05, %v622_v55  ;;  %v5450_v62 = vadd.f32 1e-05, %v621_v56  ;;  %v4407_v55 = vor.u32 %v4865_v52, %v4404_v53 }
  0x92   : > { %v5452_v63 = vadd.f32 1e-05, %v620_v59 }
  0x93   : > { %5012 = vrsqrt.f32 %v5448_v61  ;;  %vm660_vm2 = vweird.f32 %v5450_v62  ;;  %1580 = vmatpush.bf16.msrb.mxu1 %v4407_v55  ;;  %vm670_vm5 = vweird.f32 %v5448_v61 }
  0x94   : > { %5014 = vrsqrt.f32 %v5450_v62  ;;  %v587_v5 = vpop.xlane.xlu1 %586  ;;  %v565_v7 = vpop.xlane.xlu2 %564  ;;  %vm650_vm4 = vweird.f32 %v5452_v63 }
  0x95   : > { %5016 = vrsqrt.f32 %v5452_v63  ;;  %v563_v11 = vpop.xlane.xlu0 %562  ;;  %v607_v13 = vmul.f32 0.125, %v587_v5  ;;  %v5473_v19 = vmul.f32 0.125, %v565_v7 }
  0x96   : > { %v5463_v15 = vmul.f32 0.125, %v563_v11 }
  0x97   : > { %v616_v32 = vmul.f32 %v5473_v19, %v5473_v19 }
  0x98   : > { %v615_v18 = vmul.f32 %v5463_v15, %v5463_v15 }
  0x99   : > { %v5475_v21 = vpop.eup %5012 }
  0x9a   : > { %v5477_v22 = vpop.eup %5014  ;;  %v665_v23 = vmul.f32 %v5475_v21, %v5448_v61  ;;  %v623_v24 = vsub.f32 %v607_v13, %v615_v18  ;;  %v4466_v18 = vld [vmem:[%s7362_s6 + $0xe8] sm:$0xf]  ;;  %vm671_vm7 = vweird.f32 %v5475_v21 }
  0x9b   : > { %v5481_v25 = vpop.eup %5016  ;;  %v655_v26 = vmul.f32 %v5477_v22, %v5450_v62  ;;  %vm661_vm0 = vweird.f32 %v5477_v22  ;;  %vm5597_vm10 = vmor %vm670_vm5, %vm671_vm7 }
  0x9c   : > { %v666_v29 = vmul.f32 %v5475_v21, %v665_v23  ;;  %v645_v30 = vmul.f32 %v5481_v25, %v5452_v63  ;;  %v5494_v31 = vadd.f32 1e-05, %v623_v24  ;;  %v567_v33 = vpop.xlane.xlu1 %566  ;;  %v591_v34 = vpop.xlane.xlu2 %590  ;;  %vm651_vm1 = vweird.f32 %v5481_v25  ;;  %vm5528_vm3 = vmor %vm660_vm2, %vm661_vm0  ;;  %v5564_v23 = vld [vmem:[%s7358_s2] ss:$0 sm:$0xff] }
  0x9d   : > { %v656_v35 = vmul.f32 %v5477_v22, %v655_v26  ;;  %v5499_v36 = vmul.f32 0.125, %v567_v33  ;;  %v589_v37 = vpop.xlane.xlu0 %588  ;;  %v609_v38 = vmul.f32 0.125, %v591_v34  ;;  %vm652_vm6 = vmor %vm650_vm4, %vm651_vm1  ;;  %v4861_v26 = vld [vmem:[%s7362_s6 + $0x4c] sm:$0xf] }
  0x9e   : > { %v646_v42 = vmul.f32 %v5481_v25, %v645_v30  ;;  %5018 = vrsqrt.f32 %v5494_v31  ;;  %v608_v46 = vmul.f32 0.125, %v589_v37  ;;  %v667_v48 = vmul.f32 0.5, %v666_v29  ;;  %v4450_v30 = vld [vmem:[%s7362_s6 + $0xc8] sm:$0xf] }
  0x9f   : > { %v657_v43 = vmul.f32 0.5, %v656_v35  ;;  %v617_v45 = vmul.f32 %v5499_v36, %v5499_v36  ;;  %vm680_vm8 = vweird.f32 %v5494_v31  ;;  %v4467_v37 = vor.u32 %v4883_v20, %v4466_v18 }
  0xa0   : > { %v647_v47 = vmul.f32 0.5, %v646_v42  ;;  %v624_v50 = vsub.f32 %v608_v46, %v616_v32  ;;  %v668_v10 = vsub.f32 1.5, %v667_v48  ;;  %v4879_v32 = vld [vmem:[%s7362_s6 + $0xd4] sm:$0xf0]  ;;  %v630_v18 = vsub.f32 %v5335_v0, %v5424_v40  ;;  %v4546_v40 = vld [vmem:[%s7359_s3 + $0x88] sm:$0xf] }
  0xa1   : > { %v658_v49 = vsub.f32 1.5, %v657_v43  ;;  %v625_v51 = vsub.f32 %v609_v38, %v617_v45  ;;  %v4391_v43 = vor.u32 %v4861_v26, %v4388_v27  ;;  %1547 = vmatpush.bf16.msrb.mxu3 %v4467_v37  ;;  %v633_v26 = vsub.f32 %v5363_v9, %v5499_v36 }
  0xa2   : > { %v648_v54 = vsub.f32 1.5, %v647_v47  ;;  %v5514_v57 = vadd.f32 1e-05, %v624_v50  ;;  %v5575_v28 = vmul.f32 %v5475_v21, %v668_v10  ;;  %v4451_v50 = vor.u32 %v4879_v32, %v4450_v30  ;;  %v4356_v10 = vld [vmem:[%s7362_s6 + $0x18] sm:$0xf0] }
  0xa3   : > { %v659_v56 = vmul.f32 %v5477_v22, %v658_v49  ;;  %v5516_v58 = vadd.f32 1e-05, %v625_v51  ;;  %v631_v51 = vsub.f32 %v5353_v6, %v5463_v15  ;;  %1581 = vmatpush.bf16.msrb.mxu1 %v4391_v43  ;;  %v4857_v6 = vld [vmem:[%s7362_s6 + $0x2c] sm:$0xf]  ;;  %v4372_v15 = vld [vmem:[%s7362_s6 + $0x38] sm:$0xf0] }
  0xa4   : > { %v5518_v59 = vpop.eup %5018  ;;  %v593_v4 = vpop.xlane.xlu1 %592  ;;  %v649_v7 = vmul.f32 %v5481_v25, %v648_v54  ;;  %5020 = vrsqrt.f32 %v5514_v57  ;;  %vm690_vm12 = vweird.f32 %v5514_v57 }
  0xa5   : > { %v571_v5 = vpop.xlane.xlu2 %570  ;;  %v675_v1 = vmul.f32 %v5518_v59, %v5494_v31  ;;  %v569_v2 = vpop.xlane.xlu0 %568  ;;  %5022 = vrsqrt.f32 %v5516_v58  ;;  %v610_v62 = vmul.f32 0.125, %v593_v4  ;;  %v663_v17 = vsel %vm5528_vm3, %v5477_v22, %v659_v56  ;;  %v4875_v4 = vld [vmem:[%s7362_s6 + $0xb4] sm:$0xf0]  ;;  %1548 = vmatpush.bf16.msrb.mxu3 %v4451_v50  ;;  %v4386_v50 = vld [vmem:[%s7362_s6 + $0x48] sm:$0xf] }
  0xa6   : > { %v5545_v44 = vmul.f32 0.125, %v569_v2  ;;  %v5548_v13 = vmul.f32 0.125, %v571_v5  ;;  %v653_v16 = vsel %vm652_vm6, %v5481_v25, %v649_v7  ;;  %v725_v22 = vmul.f32 %v663_v17, %v629_v60  ;;  %v4418_v17 = vld [vmem:[%s7362_s6 + $0x88] sm:$0xf] }
  0xa7   : > { %v676_v63 = vmul.f32 %v5518_v59, %v675_v1  ;;  %v724_v25 = vmul.f32 %v653_v16, %v628_v3  ;;  %vm681_vm9 = vweird.f32 %v5518_v59  ;;  %v673_v60 = vsel %vm5597_vm10, %v5475_v21, %v5575_v28  ;;  %v4434_v3 = vld [vmem:[%s7362_s6 + $0xa8] sm:$0xf]  ;;  %v4853_v21 = vld [vmem:[%s7362_s6 + $0xc] sm:$0xf] }
  0xa8   : > { %v618_v24 = vmul.f32 %v5545_v44, %v5545_v44  ;;  %v736_v35 = vmul.f32 %v5542_v41, %v725_v22  ;;  %v619_v42 = vmul.f32 %v5548_v13, %v5548_v13  ;;  %vm5613_vm11 = vmor %vm680_vm8, %vm681_vm9  ;;  %vm700_vm14 = vweird.f32 %v5516_v58 }
  0xa9   : > { %v677_v29 = vmul.f32 0.5, %v676_v63  ;;  %v735_v34 = vmul.f32 %v5542_v41, %v724_v25  ;;  %v4435_v16 = vor.u32 %v4875_v4, %v4434_v3  ;;  %v4359_v25 = vor.u32 %v4853_v21, %v4356_v10  ;;  %v4370_v3 = vld [vmem:[%s7362_s6 + $0x28] sm:$0xf]  ;;  %v4859_v4 = vld [vmem:[%s7362_s6 + $0x34] sm:$0xf0] }
  0xaa   : > { %v626_v33 = vsub.f32 %v610_v62, %v618_v24  ;;  %v5587_v38 = vpop.eup %5020  ;;  %v747_v54 = vadd.f32 %v5564_v23, %v736_v35  ;;  %v4375_v62 = vor.u32 %v4857_v6, %v4372_v15  ;;  %v726_v9 = vmul.f32 %v673_v60, %v630_v18  ;;  %v4508_v60 = vld [vmem:[%s7359_s3 + $0x50] sm:$0xf0] }
  0xab   : > { %v678_v39 = vsub.f32 1.5, %v677_v29  ;;  %v5591_v45 = vpop.eup %5022  ;;  %v685_v47 = vmul.f32 %v5587_v38, %v5514_v57  ;;  %v746_v49 = vadd.f32 %v5564_v23, %v735_v34  ;;  %vm691_vm13 = vweird.f32 %v5587_v38  ;;  %1549 = vmatpush.bf16.msrb.mxu3 %v4435_v16 }
  0xac   : > { %v5603_v48 = vadd.f32 1e-05, %v626_v33  ;;  %v695_v53 = vmul.f32 %v5591_v45, %v5516_v58  ;;  %vm701_vm15 = vweird.f32 %v5591_v45  ;;  %1582 = vmatpush.bf16.msrb.mxu1 %v4375_v62  ;;  %vm5671_vm0 = vmor %vm690_vm12, %vm691_vm13  ;;  %v632_v57 = vsub.f32 %v5358_v8, %v5473_v19  ;;  %v4402_v58 = vld [vmem:[%s7362_s6 + $0x68] sm:$0xf]  ;;  %v4867_v33 = vld [vmem:[%s7362_s6 + $0x74] sm:$0xf0] }
  0xad   : > { %v679_v52 = vmul.f32 %v5518_v59, %v678_v39  ;;  %v595_v55 = vpop.xlane.xlu0 %594  ;;  %v686_v31 = vmul.f32 %v5587_v38, %v685_v47  ;;  %822 = vxpose.xlu1.b32.start [1/8] (short) %v746_v49, 128  ;;  %v5641_v7 = vpack.c.bf16 %v747_v54, %v746_v49  ;;  %vm5682_vm1 = vmor %vm700_vm14, %vm701_vm15  ;;  %v4403_v43 = vor.u32 %v4867_v33, %v4402_v58  ;;  %v4354_v62 = vld [vmem:[%s7362_s6 + $0x8] sm:$0xf]  ;;  %v4588_v33 = vld [vmem:[%s7359_s3 + $0xf0] sm:$0xf0] }
  0xae   : > { %5024 = vrsqrt.f32 %v5603_v48  ;;  %v611_v56 = vmul.f32 0.125, %v595_v55  ;;  %v696_v5 = vmul.f32 %v5591_v45, %v695_v53  ;;  %vm710_vm2 = vweird.f32 %v5603_v48 }
  0xaf   : > { %v683_v11 = vsel %vm5613_vm11, %v5518_v59, %v679_v52  ;;  %v687_v1 = vmul.f32 0.5, %v686_v31  ;;  %1497 = vmatmul.bf16.vlgmr.msra.gmra.mxu1 %v5641_v7  ;;  %v4871_v59 = vld [vmem:[%s7362_s6 + $0x94] sm:$0xf0]  ;;  %vm2056_vm8 = vcmask 523264  }
  0xb0   : > { %v627_v2 = vsub.f32 %v611_v56, %v619_v42  ;;  %v697_v63 = vmul.f32 0.5, %v696_v5  ;;  %v727_v22 = vmul.f32 %v683_v11, %v631_v51  ;;  %v4419_v36 = vor.u32 %v4871_v59, %v4418_v17  ;;  %1583 = vmatpush.bf16.msrb.mxu1 %v4359_v25  ;;  %v4594_v25 = vld [vmem:[%s7359_s3 + $0xe8] sm:$0xf] }
  0xb1   : > { %v688_v20 = vsub.f32 1.5, %v687_v1  ;;  %v737_v42 = vmul.f32 %v5542_v41, %v726_v9  ;;  %v4371_v1 = vor.u32 %v4859_v4, %v4370_v3  ;;  %v4903_v9 = vld [vmem:[%s7359_s3 + $0x94] sm:$0xf0]  ;;  %v4888_v4 = vld [vmem:[%s7359_s3 + $0x24] sm:$0xf] }
  0xb2   : > { %v5663_v24 = vadd.f32 1e-05, %v627_v2  ;;  %v698_v28 = vsub.f32 1.5, %v697_v63  ;;  %v738_v8 = vmul.f32 %v5542_v41, %v727_v22  ;;  %1550 = vmatpush.bf16.msrb.mxu3 %v4419_v36  ;;  %v635_v2 = vsub.f32 %v5376_v14, %v5548_v13  ;;  %v4578_v22 = vld [vmem:[%s7359_s3 + $0xc8] sm:$0xf] }
  0xb3   : > { %v689_v0 = vmul.f32 %v5587_v38, %v688_v20  ;;  %v748_v55 = vadd.f32 %v5564_v23, %v737_v42  ;;  %v4547_v36 = vor.u32 %v4903_v9, %v4546_v40 }
  0xb4   : > { %v5675_v29 = vpop.eup %5024  ;;  %5026 = vrsqrt.f32 %v5663_v24  ;;  %v699_v30 = vmul.f32 %v5591_v45, %v698_v28  ;;  %v749_v61 = vadd.f32 %v5564_v23, %v738_v8  ;;  %vm720_vm5 = vweird.f32 %v5663_v24  ;;  %v4562_v28 = vld [vmem:[%s7359_s3 + $0xa8] sm:$0xf]  ;;  %v4895_v8 = vld [vmem:[%s7359_s3 + $0x54] sm:$0xf0] }
  0xb5   : > { %v705_v32 = vmul.f32 %v5675_v29, %v5603_v48  ;;  %v693_v34 = vsel %vm5671_vm0, %v5587_v38, %v689_v0  ;;  %823 = vxpose.xlu1.b32.cont [2/8] (short) %v747_v54, 128  ;;  %vm711_vm3 = vweird.f32 %v5675_v29  ;;  %v634_v48 = vsub.f32 %v5371_v12, %v5545_v44  ;;  %v4855_v12 = vld [vmem:[%s7362_s6 + $0x14] sm:$0xf0] }
  0xb6   : > { %v728_v19 = vmul.f32 %v693_v34, %v632_v57  ;;  %v703_v35 = vsel %vm5682_vm1, %v5591_v45, %v699_v30  ;;  %v4863_v45 = vld [vmem:[%s7362_s6 + $0x54] sm:$0xf0]  ;;  %1551 = vmatpush.bf16.msrb.mxu3 %v4403_v43  ;;  %vm5727_vm4 = vmor %vm710_vm2, %vm711_vm3  ;;  %v5738_v21 = vpack.c.bf16 %v749_v61, %v748_v55  ;;  %v4355_v17 = vor.u32 %v4855_v12, %v4354_v62  ;;  %v4530_v57 = vld [vmem:[%s7359_s3 + $0x68] sm:$0xf] }
  0xb7   : > { %v706_v37 = vmul.f32 %v5675_v29, %v705_v32  ;;  %v729_v39 = vmul.f32 %v703_v35, %v633_v26  ;;  %v4387_v31 = vor.u32 %v4863_v45, %v4386_v50  ;;  %v4911_v26 = vld [vmem:[%s7359_s3 + $0xd4] sm:$0xf0]  ;;  %v4912_v32 = vld [vmem:[%s7359_s3 + $0xe4] sm:$0xf]  ;;  %v4514_v34 = vld [vmem:[%s7359_s3 + $0x48] sm:$0xf] }
  0xb8   : > { %v739_v46 = vmul.f32 %v5542_v41, %v728_v19  ;;  %v4579_v27 = vor.u32 %v4911_v26, %v4578_v22  ;;  %v4899_v30 = vld [vmem:[%s7359_s3 + $0x74] sm:$0xf0]  ;;  %v4591_v19 = vor.u32 %v4912_v32, %v4588_v33  ;;  %v4908_v35 = vld [vmem:[%s7359_s3 + $0xc4] sm:$0xf]  ;;  %v4498_v43 = vld [vmem:[%s7359_s3 + $0x28] sm:$0xf] }
  0xb9   : > { %v707_v47 = vmul.f32 0.5, %v706_v37  ;;  %v740_v49 = vmul.f32 %v5542_v41, %v729_v39  ;;  %v4531_v58 = vor.u32 %v4899_v30, %v4530_v57  ;;  %v4572_v37 = vld [vmem:[%s7359_s3 + $0xd0] sm:$0xf0]  ;;  %v4515_v39 = vor.u32 %v4895_v8, %v4514_v34  ;;  %v4482_v45 = vld [vmem:[%s7359_s3 + $0x8] sm:$0xf] }
  0xba   : > { %v5027_v38 = vpop.eup %5026  ;;  %v750_v53 = vadd.f32 %v5564_v23, %v739_v46  ;;  %1552 = vmatpush.bf16.msrb.mxu3 %v4387_v31  ;;  %v4575_v42 = vor.u32 %v4908_v35, %v4572_v37  ;;  %v4891_v46 = vld [vmem:[%s7359_s3 + $0x34] sm:$0xf0]  ;;  %v4892_v31 = vld [vmem:[%s7359_s3 + $0x44] sm:$0xf] }
  0xbb   : > { %v708_v51 = vsub.f32 1.5, %v707_v47  ;;  %v715_v52 = vmul.f32 %v5027_v38, %v5663_v24  ;;  %v751_v54 = vadd.f32 %v5564_v23, %v740_v49  ;;  %vm721_vm6 = vweird.f32 %v5027_v38  ;;  %v4904_v47 = vld [vmem:[%s7359_s3 + $0xa4] sm:$0xf] }
  0xbc   : > { %vm722_vm7 = vmor %vm720_vm5, %vm721_vm6  ;;  %v4499_v49 = vor.u32 %v4891_v46, %v4498_v43  ;;  %v4511_v3 = vor.u32 %v4892_v31, %v4508_v60 }
  0xbd   : > { %v709_v6 = vmul.f32 %v5675_v29, %v708_v51  ;;  %v716_v15 = vmul.f32 %v5027_v38, %v715_v52  ;;  %v5723_v56 = vpack.c.bf16 %v751_v54, %v750_v53  ;;  %824 = vxpose.xlu1.b32.cont [3/8] (short) %v748_v55, 128  ;;  %v4887_v51 = vld [vmem:[%s7359_s3 + $0x14] sm:$0xf0]  ;;  %v4900_v52 = vld [vmem:[%s7359_s3 + $0x84] sm:$0xf] }
  0xbe   : > { %1553 = vmatpush.bf16.msrb.mxu3 %v4371_v1  ;;  %v4896_v55 = vld [vmem:[%s7359_s3 + $0x64] sm:$0xf] }
  0xbf   : > { %v717_v5 = vmul.f32 0.5, %v716_v15  ;;  %1507 = vmatmul.bf16.vlgmr.msra.gmra.mxu3 %v5723_v56  ;;  %v713_v10 = vsel %vm5727_vm4, %v5675_v29, %v709_v6  ;;  %1502 = vmatmul.bf16.gmra.mxu1 %v5738_v21  ;;  %v4907_v29 = vld [vmem:[%s7359_s3 + $0xb4] sm:$0xf0]  ;;  %v4524_v6 = vld [vmem:[%s7359_s3 + $0x70] sm:$0xf0] }
  0xc0   : > { %v730_v63 = vmul.f32 %v713_v10, %v634_v48  ;;  %v4563_v0 = vor.u32 %v4907_v29, %v4562_v28  ;;  %v4527_v15 = vor.u32 %v4896_v55, %v4524_v6  ;;  %v4884_v10 = vld [vmem:[%s7359_s3 + $0x4] sm:$0xf] }
  0xc1   : > { %v718_v11 = vsub.f32 1.5, %v717_v5  ;;  %v4492_v5 = vld [vmem:[%s7359_s3 + $0x30] sm:$0xf0] }
  0xc2   : > { %v741_v18 = vmul.f32 %v5542_v41, %v730_v63  ;;  %1554 = vmatpush.bf16.msrb.mxu3 %v4355_v17  ;;  %v4495_v48 = vor.u32 %v4888_v4, %v4492_v5 }
  0xc3   : > { %v719_v44 = vmul.f32 %v5027_v38, %v718_v11  ;;  %v4476_v11 = vld [vmem:[%s7359_s3 + $0x10] sm:$0xf0] }
  0xc4   : > { %v752_v20 = vadd.f32 %v5564_v23, %v741_v18  ;;  %v4479_v1 = vor.u32 %v4884_v10, %v4476_v11 }
  0xc5   : > { %v723_v16 = vsel %vm722_vm7, %v5027_v38, %v719_v44  ;;  %825 = vxpose.xlu1.b32.cont [4/8] (short) %v749_v61, 128  ;;  %v4556_v38 = vld [vmem:[%s7359_s3 + $0xb0] sm:$0xf0] }
  0xc6   : > { %v731_v59 = vmul.f32 %v723_v16, %v635_v2  ;;  %1852 = vmatpush.bf16.msra.mxu3 %v4591_v19  ;;  %v4559_v50 = vor.u32 %v4904_v47, %v4556_v38  ;;  %v4540_v61 = vld [vmem:[%s7359_s3 + $0x90] sm:$0xf0] }
  0xc8   : > { %v742_v14 = vmul.f32 %v5542_v41, %v731_v59  ;;  %v4915_v41 = vld [vmem:[%s7359_s3 + $0xf4] sm:$0xf0] }
  0xca   : > { %v753_v13 = vadd.f32 %v5564_v23, %v742_v14  ;;  %v4595_v23 = vor.u32 %v4915_v41, %v4594_v25  ;;  %1853 = vmatpush.bf16.msra.mxu3 %v4575_v42  ;;  %v5895_v41 = vld [vmem:[%s7363_s7] sm:$0xf] }
  0xcb   : > { %v1324_v22 = vperm.slane %v5895_v41, 3 }
  0xcc   : > { %v5759_v24 = vpack.c.bf16 %v753_v13, %v752_v20  ;;  %1881 = vmatpush.bf16.msra.mxu1 %v4595_v23  ;;  %v1323_v23 = vperm.slane %v5895_v41, 2 }
  0xcd   : > { %826 = vxpose.xlu1.b32.cont [5/8] (short) %v750_v53, 128  ;;  %v4483_v53 = vor.u32 %v4887_v51, %v4482_v45 }
  0xce   : > { %1854 = vmatpush.bf16.msra.mxu3 %v4559_v50 }
  0xcf   : > { %1512 = vmatmul.bf16.gmra.mxu3 %v5759_v24  ;;  %1584 = vmatmul.bf16.vlgmr.msrb.gmra.mxu1 %v5641_v7 }
  0xd0   : > { %1882 = vmatpush.bf16.msra.mxu1 %v4579_v27 }
  0xd4   : > { %1883 = vmatpush.bf16.msra.mxu1 %v4563_v0 }
  0xd5   : > { %827 = vxpose.xlu1.b32.cont [6/8] (short) %v751_v54, 128  ;;  %v4543_v54 = vor.u32 %v4900_v52, %v4540_v61 }
  0xd7   : > { %1855 = vmatpush.bf16.msra.mxu3 %v4543_v54 }
  0xd8   : > { %1884 = vmatpush.bf16.msra.mxu1 %v4547_v36 }
  0xdb   : > { %1856 = vmatpush.bf16.msra.mxu3 %v4527_v15 }
  0xdc   : > { %1885 = vmatpush.bf16.msra.mxu1 %v4531_v58 }
  0xdd   : > { %828 = vxpose.xlu1.b32.cont [7/8] (short) %v752_v20, 128 }
  0xdf   : > { %1555 = vmatmul.bf16.vlgmr.msrb.gmra.mxu3 %v5641_v7  ;;  %1589 = vmatmul.bf16.gmra.mxu1 %v5738_v21 }
  0xe0   : > { %1886 = vmatpush.bf16.msra.mxu1 %v4515_v39  ;;  %1857 = vmatpush.bf16.msra.mxu3 %v4511_v3 }
  0xe4   : > { %1887 = vmatpush.bf16.msra.mxu1 %v4499_v49  ;;  %1858 = vmatpush.bf16.msra.mxu3 %v4495_v48 }
  0xe5   : > { %829 = vxpose.xlu1.b32.end [8/8] (short) %v753_v13, 128 }
  0xe8   : > { %1888 = vmatpush.bf16.msra.mxu1 %v4483_v53  ;;  %1859 = vmatpush.bf16.msra.mxu3 %v4479_v1 }
  0xef   : > { %1560 = vmatmul.bf16.gmra.mxu3 %v5738_v21  ;;  %1594 = vmatmul.bf16.gmra.mxu1 %v5723_v56 }
  0xff   : > { %1565 = vmatmul.bf16.gmra.mxu3 %v5723_v56  ;;  %1599 = vmatmul.bf16.gmra.mxu1 %v5759_v24 }
 0x10f   : > { %1570 = vmatmul.bf16.gmra.mxu3 %v5759_v24  ;;  %1889 = vmatmul.bf16.vlgmr.msra.gmra.mxu1 %v5641_v7 }
 0x11f   : > { %1860 = vmatmul.bf16.vlgmr.msra.gmra.mxu3 %v5641_v7  ;;  %1894 = vmatmul.bf16.gmra.mxu1 %v5738_v21 }
 0x12c   : > { %v5869_v2 = vpop.f32.mrf.mxu1 }
 0x12f   : > { %1865 = vmatmul.bf16.gmra.mxu3 %v5738_v21  ;;  %1899 = vmatmul.bf16.gmra.mxu1 %v5723_v56 }
 0x134   : > { %v5873_v62 = vpop.f32.mrf.mxu1 }
 0x13c   : > { %v5875_v12 = vpop.f32.mrf.mxu1 }
 0x13f   : > { %1870 = vmatmul.bf16.gmra.mxu3 %v5723_v56  ;;  %1904 = vmatmul.bf16.gmra.mxu1 %v5759_v24 }
 0x142   : > { %v5879_v44 = vpop.f32.mrf.mxu3 }
 0x144   : > { %v5881_v63 = vpop.f32.mrf.mxu1 }
 0x14a   : > { %v5883_v16 = vpop.f32.mrf.mxu3 }
 0x14c   : > { %v1585_v59 = vpop.f32.mrf.mxu1 }
 0x14d   : > { %v1586_v28 = vadd.f32 %v1585_v59, %v1324_v22 }
 0x14f   : > { %1875 = vmatmul.bf16.gmra.mxu3 %v5759_v24 }
 0x151   : > { %v838_v17 = vpop.trf.xlu1 }
 0x152   : > { %v5886_v18 = vpop.f32.mrf.mxu3 }
 0x154   : > { %v1587_v25 = vpop.f32.mrf.mxu1 }
 0x155   : > { %v1588_v30 = vadd.f32 %v1587_v25, %v1324_v22 }
 0x159   : > { %v839_v14 = vpop.trf.xlu1 }
 0x15a   : > { %v5888_v13 = vpack.c.bf16 %v839_v14, %v838_v17  ;;  %v5890_v20 = vpop.f32.mrf.mxu3 }
 0x15c   : > { %v1590_v40 = vpop.f32.mrf.mxu1 }
 0x15d   : > { %v1591_v42 = vadd.f32 %v1590_v40, %v1324_v22 }
 0x161   : > { %v840_v26 = vpop.trf.xlu1 }
 0x162   : > { %v1556_v27 = vpop.f32.mrf.mxu3 }
 0x163   : > { %v1557_v29 = vadd.f32 %v1556_v27, %v1323_v23 }
 0x164   : > { %v1592_v8 = vpop.f32.mrf.mxu1 }
 0x165   : > { %v5899_v0 = vpack.c.bf16 %v1586_v28, %v1557_v29  ;;  %v1593_v49 = vadd.f32 %v1592_v8, %v1324_v22 }
 0x167   : > { %v2883_v33 = vunpack.c.h.b16 %v5899_v0 }
 0x169   : > { %v841_v9 = vpop.trf.xlu1 }
 0x16a   : > { %v5901_v36 = vpack.c.bf16 %v841_v9, %v840_v26  ;;  %v1558_v57 = vpop.f32.mrf.mxu3 }
 0x16b   : > { %v1559_v32 = vadd.f32 %v1558_v57, %v1323_v23 }
 0x16c   : > { %v1595_v46 = vpop.f32.mrf.mxu1 }
 0x16d   : > { %v5903_v58 = vpack.c.bf16 %v1588_v30, %v1559_v32  ;;  %v1596_v31 = vadd.f32 %v1595_v46, %v1324_v22 }
 0x16f   : > { %v2884_v34 = vunpack.c.h.b16 %v5903_v58 }
 0x171   : > { %v842_v19 = vpop.trf.xlu1  ;;  %v5907_v35 = vpack.c.b16 %v2884_v34, %v2883_v33 }
 0x172   : > { %v1561_v37 = vpop.f32.mrf.mxu3 }
 0x173   : > { %v1562_v39 = vadd.f32 %v1561_v37, %v1323_v23 }
 0x174   : > { %v1597_v6 = vpop.f32.mrf.mxu1 }
 0x175   : > { %v5909_v50 = vpack.c.bf16 %v1591_v42, %v1562_v39  ;;  %v1598_v5 = vadd.f32 %v1597_v6, %v1324_v22  ;;  %v4820_v6 = vld [vmem:[%s7361_s5] sm:$0xff] }
 0x177   : > { %v2885_v52 = vunpack.c.h.b16 %v5909_v50 }
 0x179   : > { %v843_v43 = vpop.trf.xlu1 }
 0x17a   : > { %v856_v47 = vpack.c.bf16 %v843_v43, %v842_v19  ;;  %v1563_v38 = vpop.f32.mrf.mxu3 }
 0x17b   : > { %v1564_v45 = vadd.f32 %v1563_v38, %v1323_v23 }
 0x17c   : > { %v1600_v1 = vpop.f32.mrf.mxu1 }
 0x17d   : > { %v5911_v51 = vpack.c.bf16 %v1593_v49, %v1564_v45  ;;  %v1601_v29 = vadd.f32 %v1600_v1, %v1324_v22  ;;  %v4396_v1 = vld [vmem:[%s7362_s6 + $0x70] sm:$0xf0] }
 0x17f   : > { %v2886_v61 = vunpack.c.h.b16 %v5911_v51 }
 0x181   : > { %v844_v53 = vpop.trf.xlu1  ;;  %v5915_v54 = vpack.c.b16 %v2886_v61, %v2885_v52  ;;  %v4880_v52 = vld [vmem:[%s7362_s6 + $0xe4] sm:$0xf]  ;;  %v4460_v61 = vld [vmem:[%s7362_s6 + $0xf0] sm:$0xf0] }
 0x182   : > { %v1566_v55 = vpop.f32.mrf.mxu3 }
 0x183   : > { %v1567_v15 = vadd.f32 %v1566_v55, %v1323_v23  ;;  %v4876_v55 = vld [vmem:[%s7362_s6 + $0xc4] sm:$0xf] }
 0x184   : > { %v1602_v28 = vpop.f32.mrf.mxu1 }
 0x185   : > { %v5917_v48 = vpack.c.bf16 %v1596_v31, %v1567_v15  ;;  %v1603_v57 = vadd.f32 %v1602_v28, %v1324_v22  ;;  %v4850_v15 = vld [vmem:[%s7361_s5 + $0xf0] sm:$0xff]  ;;  %v4872_v31 = vld [vmem:[%s7362_s6 + $0xa4] sm:$0xf] }
 0x187   : > { %v2887_v17 = vunpack.c.h.b16 %v5917_v48 }
 0x189   : > { %v845_v60 = vpop.trf.xlu1 }
 0x18a   : > { %v857_v3 = vpack.c.bf16 %v845_v60, %v844_v53  ;;  %v1568_v4 = vpop.f32.mrf.mxu3  ;;  %v4463_v53 = vor.u32 %v4880_v52, %v4460_v61  ;;  %v4428_v60 = vld [vmem:[%s7362_s6 + $0xb0] sm:$0xf0]  ;;  %v4902_v52 = vld [vmem:[%s7359_s3 + $0x8c] sm:$0xf0] }
 0x18b   : > { %v1569_v10 = vadd.f32 %v1568_v4, %v1323_v23  ;;  %v4868_v4 = vld [vmem:[%s7362_s6 + $0x84] sm:$0xf] }
 0x18d   : > { %v5919_v11 = vpack.c.bf16 %v1598_v5, %v1569_v10  ;;  %v4864_v10 = vld [vmem:[%s7362_s6 + $0x64] sm:$0xf] }
 0x18f   : > { %v2888_v59 = vunpack.c.h.b16 %v5919_v11 }
 0x191   : > { %v846_v14 = vpop.trf.xlu1  ;;  %v5923_v25 = vpack.c.b16 %v2888_v59, %v2887_v17  ;;  %v4399_v17 = vor.u32 %v4864_v10, %v4396_v1  ;;  %v4860_v59 = vld [vmem:[%s7362_s6 + $0x44] sm:$0xf] }
 0x192   : > { %v1571_v26 = vpop.f32.mrf.mxu3  ;;  %v4824_v1 = vld [vmem:[%s7361_s5 + $0x20] sm:$0xff] }
 0x193   : > { %v1572_v27 = vadd.f32 %v1571_v26, %v1323_v23  ;;  %v4821_v26 = vld [vmem:[%s7361_s5 + $0x8] sm:$0xff] }
 0x195   : > { %v5925_v30 = vpack.c.bf16 %v1601_v29, %v1572_v27  ;;  %v4851_v27 = vld [vmem:[%s7361_s5 + $0xf8] sm:$0xff]  ;;  %v4856_v29 = vld [vmem:[%s7362_s6 + $0x24] sm:$0xf] }
 0x197   : > { %v2889_v34 = vunpack.c.h.b16 %v5925_v30 }
 0x199   : > { %v847_v40 = vpop.trf.xlu1 }
 0x19a   : > { %v1573_v9 = vpop.f32.mrf.mxu3  ;;  %v858_v45 = vpack.c.bf16 %v847_v40, %v846_v14  ;;  %v4380_v14 = vld [vmem:[%s7362_s6 + $0x50] sm:$0xf0] }
 0x19b   : > { %v1574_v32 = vadd.f32 %v1573_v9, %v1323_v23  ;;  %v4383_v28 = vor.u32 %v4860_v59, %v4380_v14  ;;  %v4364_v40 = vld [vmem:[%s7362_s6 + $0x30] sm:$0xf0]  ;;  %v4913_v14 = vld [vmem:[%s7359_s3 + $0xec] sm:$0xf] }
 0x19c   : > { %v4367_v9 = vor.u32 %v4856_v29, %v4364_v40  ;;  %v4826_v59 = vld [vmem:[%s7361_s5 + $0x30] sm:$0xff]  ;;  %v4580_v29 = vld [vmem:[%s7359_s3 + $0xd8] sm:$0xf0] }
 0x19d   : > { %v5927_v33 = vpack.c.bf16 %v1603_v57, %v1574_v32  ;;  %v4852_v57 = vld [vmem:[%s7362_s6 + $0x4] sm:$0xf]  ;;  %v4348_v32 = vld [vmem:[%s7362_s6 + $0x10] sm:$0xf0] }
 0x19f   : > { %v2890_v8 = vunpack.c.h.b16 %v5927_v33 }
 0x1a1   : > { %v848_v19 = vpop.trf.xlu1  ;;  %v5931_v37 = vpack.c.b16 %v2890_v8, %v2889_v34  ;;  %v4351_v34 = vor.u32 %v4852_v57, %v4348_v32  ;;  %v4822_v8 = vld [vmem:[%s7361_s5 + $0x10] sm:$0xff]  ;;  %v4564_v57 = vld [vmem:[%s7359_s3 + $0xb8] sm:$0xf0] }
 0x1a9   : > { %v849_v39 = vpop.trf.xlu1 }
 0x1aa   : > { %v859_v23 = vpack.c.bf16 %v849_v39, %v848_v19  ;;  %v4586_v19 = vld [vmem:[%s7359_s3 + $0xe0] sm:$0xf]  ;;  %v4914_v39 = vld [vmem:[%s7359_s3 + $0xec] sm:$0xf0] }
 0x1b1   : > { %v850_v42 = vpop.trf.xlu1 }
 0x1b9   : > { %v851_v43 = vpop.trf.xlu1 }
 0x1ba   : > { %v860_v22 = vpack.c.bf16 %v851_v43, %v850_v42  ;;  %v4570_v42 = vld [vmem:[%s7359_s3 + $0xc0] sm:$0xf]  ;;  %v4587_v43 = vor.u32 %v4914_v39, %v4586_v19  ;;  %v4548_v19 = vld [vmem:[%s7359_s3 + $0x98] sm:$0xf0] }
 0x1c1   : > { %v852_v46 = vpop.trf.xlu1 }
 0x1c9   : > { %v853_v38 = vpop.trf.xlu1 }
 0x1ca   : > { %v861_v49 = vpack.c.bf16 %v853_v38, %v852_v46  ;;  %v4910_v46 = vld [vmem:[%s7359_s3 + $0xcc] sm:$0xf0] }
 0x1cb   : > { %v4571_v38 = vor.u32 %v4910_v46, %v4570_v42  ;;  %v4897_v42 = vld [vmem:[%s7359_s3 + $0x6c] sm:$0xf] }
 0x1cc   : > { %1054 = vmatpush.bf16.msra.mxu0 %v861_v49  ;;  %4964 = vmatpush.bf16.msra.mxu2 %v861_v49  ;;  %v4554_v49 = vld [vmem:[%s7359_s3 + $0xa0] sm:$0xf] }
 0x1d0   : > { %1055 = vmatpush.bf16.msra.mxu0 %v860_v22  ;;  %4965 = vmatpush.bf16.msra.mxu2 %v860_v22  ;;  %v4906_v22 = vld [vmem:[%s7359_s3 + $0xac] sm:$0xf0] }
 0x1d4   : > { %1056 = vmatpush.bf16.msra.mxu0 %v859_v23  ;;  %4966 = vmatpush.bf16.msra.mxu2 %v859_v23  ;;  %v4555_v23 = vor.u32 %v4906_v22, %v4554_v49  ;;  %v4516_v49 = vld [vmem:[%s7359_s3 + $0x58] sm:$0xf0] }
 0x1d8   : > { %1057 = vmatpush.bf16.msra.mxu0 %v858_v45  ;;  %4967 = vmatpush.bf16.msra.mxu2 %v858_v45  ;;  %v4538_v45 = vld [vmem:[%s7359_s3 + $0x80] sm:$0xf] }
 0x1d9   : > { %v4539_v61 = vor.u32 %v4902_v52, %v4538_v45  ;;  %v4500_v45 = vld [vmem:[%s7359_s3 + $0x38] sm:$0xf0] }
 0x1dc   : > { %1058 = vmatpush.bf16.msra.mxu0 %v857_v3  ;;  %4968 = vmatpush.bf16.msra.mxu2 %v857_v3  ;;  %v4431_v3 = vor.u32 %v4872_v31, %v4428_v60  ;;  %v4490_v60 = vld [vmem:[%s7359_s3 + $0x20] sm:$0xf] }
 0x1e0   : > { %1059 = vmatpush.bf16.msra.mxu0 %v856_v47  ;;  %4969 = vmatpush.bf16.msra.mxu2 %v856_v47  ;;  %v4444_v47 = vld [vmem:[%s7362_s6 + $0xd0] sm:$0xf0] }
 0x1e4   : > { %1060 = vmatpush.bf16.msra.mxu0 %v5901_v36  ;;  %4970 = vmatpush.bf16.msra.mxu2 %v5901_v36  ;;  %v4447_v36 = vor.u32 %v4876_v55, %v4444_v47  ;;  %v4522_v55 = vld [vmem:[%s7359_s3 + $0x60] sm:$0xf]  ;;  %v4898_v47 = vld [vmem:[%s7359_s3 + $0x6c] sm:$0xf0] }
 0x1e8   : > { %1061 = vmatpush.bf16.msra.mxu0 %v5888_v13  ;;  %4971 = vmatpush.bf16.msra.mxu2 %v5888_v13  ;;  %v4412_v13 = vld [vmem:[%s7362_s6 + $0x90] sm:$0xf0] }
 0x1e9   : > { %v4415_v5 = vor.u32 %v4868_v4, %v4412_v13  ;;  %v4474_v13 = vld [vmem:[%s7359_s3] sm:$0xf] }
 0x1eb   : > { %1062 = vmatmul.bf16.vlgmr.msra.gmra.mxu0 %v4820_v6  ;;  %1212 = vmatmul.bf16.vlgmr.msra.gmra.mxu2 %v4850_v15  ;;  %v4506_v6 = vld [vmem:[%s7359_s3 + $0x40] sm:$0xf]  ;;  %v4523_v15 = vor.u32 %v4898_v47, %v4522_v55  ;;  %v4885_v55 = vld [vmem:[%s7359_s3 + $0xc] sm:$0xf]  ;;  %v4484_v47 = vld [vmem:[%s7359_s3 + $0x18] sm:$0xf0] }
 0x1ec   : > { %1518 = vmatpush.bf16.msrb.mxu2 %v4463_v53  ;;  %v4823_v53 = vld [vmem:[%s7361_s5 + $0x18] sm:$0xff] }
 0x1f0   : > { %1519 = vmatpush.bf16.msrb.mxu2 %v4447_v36  ;;  %v4894_v36 = vld [vmem:[%s7359_s3 + $0x4c] sm:$0xf0] }
 0x1f1   : > { %v4507_v31 = vor.u32 %v4894_v36, %v4506_v6  ;;  %v4487_v6 = vor.u32 %v4885_v55, %v4484_v47 }
 0x1f4   : > { %1520 = vmatpush.bf16.msrb.mxu2 %v4431_v3  ;;  %v4890_v3 = vld [vmem:[%s7359_s3 + $0x2c] sm:$0xf0] }
 0x1f5   : > { %v4491_v4 = vor.u32 %v4890_v3, %v4490_v60 }
 0x1f8   : > { %1521 = vmatpush.bf16.msrb.mxu2 %v4415_v5  ;;  %v4886_v5 = vld [vmem:[%s7359_s3 + $0xc] sm:$0xf0] }
 0x1f9   : > { %v4475_v10 = vor.u32 %v4886_v5, %v4474_v13 }
 0x1fb   : > { %1067 = vmatmul.bf16.gmra.mxu0 %v4821_v26  ;;  %1217 = vmatmul.bf16.gmra.mxu2 %v4851_v27  ;;  %v4596_v26 = vld [vmem:[%s7359_s3 + $0xf8] sm:$0xf0] }
 0x1fc   : > { %1522 = vmatpush.bf16.msrb.mxu2 %v4399_v17  ;;  %v4825_v17 = vld [vmem:[%s7361_s5 + $0x28] sm:$0xff]  ;;  %v4599_v27 = vor.u32 %v4913_v14, %v4596_v26 }
 0x200   : > { %1523 = vmatpush.bf16.msrb.mxu2 %v4383_v28  ;;  %v4909_v28 = vld [vmem:[%s7359_s3 + $0xcc] sm:$0xf] }
 0x201   : > { %v4583_v40 = vor.u32 %v4909_v28, %v4580_v29 }
 0x204   : > { %1524 = vmatpush.bf16.msrb.mxu2 %v4367_v9  ;;  %v4905_v9 = vld [vmem:[%s7359_s3 + $0xac] sm:$0xf] }
 0x205   : > { %v4567_v32 = vor.u32 %v4905_v9, %v4564_v57 }
 0x208   : > { %1525 = vmatpush.bf16.msrb.mxu2 %v4351_v34  ;;  %v4827_v34 = vld [vmem:[%s7361_s5 + $0x38] sm:$0xff] }
 0x20b   : > { %1072 = vmatmul.bf16.gmra.mxu0 %v4822_v8  ;;  %1526 = vmatmul.bf16.vlgmr.msrb.gmra.mxu2 %v5641_v7  ;;  %v4901_v8 = vld [vmem:[%s7359_s3 + $0x8c] sm:$0xf] }
 0x20c   : > { %1823 = vmatpush.bf16.msra.mxu2 %v4587_v43  ;;  %v4551_v39 = vor.u32 %v4901_v8, %v4548_v19  ;;  %v4532_v43 = vld [vmem:[%s7359_s3 + $0x78] sm:$0xf0] }
 0x20d   : > { %v4535_v46 = vor.u32 %v4897_v42, %v4532_v43 }
 0x210   : > { %1824 = vmatpush.bf16.msra.mxu2 %v4571_v38  ;;  %v4893_v38 = vld [vmem:[%s7359_s3 + $0x4c] sm:$0xf] }
 0x211   : > { %v4519_v22 = vor.u32 %v4893_v38, %v4516_v49 }
 0x214   : > { %1825 = vmatpush.bf16.msra.mxu2 %v4555_v23  ;;  %v4889_v23 = vld [vmem:[%s7359_s3 + $0x2c] sm:$0xf] }
 0x215   : > { %v4503_v52 = vor.u32 %v4889_v23, %v4500_v45 }
 0x218   : > { %1826 = vmatpush.bf16.msra.mxu2 %v4539_v61  ;;  %v4828_v61 = vld [vmem:[%s7361_s5 + $0x40] sm:$0xff] }
 0x21b   : > { %1077 = vmatmul.bf16.gmra.mxu0 %v4823_v53  ;;  %1531 = vmatmul.bf16.gmra.mxu2 %v5738_v21 }
 0x21c   : > { %1827 = vmatpush.bf16.msra.mxu2 %v4523_v15 }
 0x220   : > { %1828 = vmatpush.bf16.msra.mxu2 %v4507_v31 }
 0x224   : > { %1829 = vmatpush.bf16.msra.mxu2 %v4491_v4 }
 0x228   : > { %1830 = vmatpush.bf16.msra.mxu2 %v4475_v10  ;;  %v4829_v10 = vld [vmem:[%s7361_s5 + $0x48] sm:$0xff] }
 0x22b   : > { %1082 = vmatmul.bf16.gmra.mxu0 %v4824_v1  ;;  %1536 = vmatmul.bf16.gmra.mxu2 %v5723_v56 }
 0x22c   : > { %1910 = vmatpush.bf16.msrb.mxu2 %v4599_v27 }
 0x230   : > { %1911 = vmatpush.bf16.msrb.mxu2 %v4583_v40 }
 0x234   : > { %1912 = vmatpush.bf16.msrb.mxu2 %v4567_v32 }
 0x238   : > { %1913 = vmatpush.bf16.msrb.mxu2 %v4551_v39 }
 0x23b   : > { %1087 = vmatmul.bf16.gmra.mxu0 %v4825_v17  ;;  %1541 = vmatmul.bf16.gmra.mxu2 %v5759_v24 }
 0x23c   : > { %1914 = vmatpush.bf16.msrb.mxu2 %v4535_v46 }
 0x240   : > { %1915 = vmatpush.bf16.msrb.mxu2 %v4519_v22 }
 0x244   : > { %1916 = vmatpush.bf16.msrb.mxu2 %v4503_v52  ;;  %v4831_v52 = vld [vmem:[%s7361_s5 + $0x58] sm:$0xff] }
 0x248   : > { %1917 = vmatpush.bf16.msrb.mxu2 %v4487_v6 }
 0x24b   : > { %1092 = vmatmul.bf16.gmra.mxu0 %v4826_v59  ;;  %1831 = vmatmul.bf16.vlgmr.msra.gmra.mxu2 %v5641_v7 }
 0x25b   : > { %1097 = vmatmul.bf16.gmra.mxu0 %v4827_v34  ;;  %1836 = vmatmul.bf16.gmra.mxu2 %v5738_v21  ;;  %v4830_v34 = vld [vmem:[%s7361_s5 + $0x50] sm:$0xff] }
 0x268   : > { %v1063_v53 = vpop.f32.mrf.mxu0 }
 0x269   : > { %v1223_v36 = vpack.c.bf16 %v1063_v53, %v1063_v53 }
 0x26b   : > { %1102 = vmatmul.bf16.gmra.mxu0 %v4828_v61  ;;  %1841 = vmatmul.bf16.gmra.mxu2 %v5723_v56  ;;  %v6123_v3 = vunpack.c.l.b16 %v1223_v36 }
 0x26e   : > { %v6121_v15 = vpop.f32.mrf.mxu2 }
 0x270   : > { %v1065_v31 = vpop.f32.mrf.mxu0 }
 0x271   : > { %v1224_v60 = vpack.c.bf16 %v1065_v31, %v1065_v31 }
 0x273   : > { %v6125_v4 = vunpack.c.l.b16 %v1224_v60 }
 0x276   : > { %v6129_v5 = vpop.f32.mrf.mxu2 }
 0x278   : > { %v1068_v1 = vpop.f32.mrf.mxu0 }
 0x279   : > { %v1225_v59 = vpack.c.bf16 %v1068_v1, %v1068_v1 }
 0x27b   : > { %1107 = vmatmul.bf16.gmra.mxu0 %v4829_v10  ;;  %1846 = vmatmul.bf16.gmra.mxu2 %v5759_v24  ;;  %v6135_v27 = vunpack.c.l.b16 %v1225_v59  ;;  %v4832_v10 = vld [vmem:[%s7361_s5 + $0x60] sm:$0xff] }
 0x27e   : > { %v1218_v17 = vpop.f32.mrf.mxu2 }
 0x27f   : > { %v1285_v28 = vpack.c.bf16 %v1218_v17, %v1218_v17 }
 0x280   : > { %v1070_v14 = vpop.f32.mrf.mxu0 }
 0x281   : > { %v1226_v26 = vpack.c.bf16 %v1070_v14, %v1070_v14  ;;  %v6141_v57 = vunpack.c.l.b16 %v1285_v28  ;;  %v4833_v14 = vld [vmem:[%s7361_s5 + $0x68] sm:$0xff]  ;;  %v1861_v28 = vpop.f32.mrf.mxu3 }
 0x283   : > { %v6137_v29 = vunpack.c.l.b16 %v1226_v26 }
 0x286   : > { %v1220_v9 = vpop.f32.mrf.mxu2 }
 0x287   : > { %v1286_v32 = vpack.c.bf16 %v1220_v9, %v1220_v9 }
 0x288   : > { %v1073_v8 = vpop.f32.mrf.mxu0 }
 0x289   : > { %v6146_v19 = vunpack.c.l.b16 %v1286_v32  ;;  %v1227_v43 = vpack.c.bf16 %v1073_v8, %v1073_v8 }
 0x28b   : > { %1112 = vmatmul.bf16.gmra.mxu0 %v4830_v34  ;;  %1918 = vmatmul.bf16.vlgmr.msrb.gmra.mxu2 %v5641_v7  ;;  %v6153_v49 = vunpack.c.l.b16 %v1227_v43  ;;  %v1322_v34 = vperm.slane %v5895_v41, 1 }
 0x28e   : > { %v6151_v42 = vpop.f32.mrf.mxu2 }
 0x290   : > { %v1075_v46 = vpop.f32.mrf.mxu0 }
 0x291   : > { %v1228_v38 = vpack.c.bf16 %v1075_v46, %v1075_v46 }
 0x293   : > { %v6155_v22 = vunpack.c.l.b16 %v1228_v38 }
 0x295   : > { %v2013_v23 = vpack.c.b16 %v6155_v22, %v6153_v49 }
 0x296   : > { %v1529_v45 = vpop.f32.mrf.mxu2 }
 0x297   : > { %v1530_v39 = vadd.f32 %v1529_v45, %v1322_v34 }
 0x298   : > { %v1078_v61 = vpop.f32.mrf.mxu0 }
 0x299   : > { %v1229_v53 = vpack.c.bf16 %v1078_v61, %v1078_v61 }
 0x29b   : > { %1117 = vmatmul.bf16.gmra.mxu0 %v4831_v52  ;;  %1923 = vmatmul.bf16.gmra.mxu2 %v5738_v21  ;;  %v6163_v6 = vunpack.c.l.b16 %v1229_v53 }
 0x29e   : > { %v1532_v7 = vpop.f32.mrf.mxu2 }
 0x2a0   : > { %v1080_v55 = vpop.f32.mrf.mxu0 }
 0x2a1   : > { %v1230_v47 = vpack.c.bf16 %v1080_v55, %v1080_v55 }
 0x2a3   : > { %v6165_v36 = vunpack.c.l.b16 %v1230_v47  ;;  %v4834_v47 = vld [vmem:[%s7361_s5 + $0x70] sm:$0xff] }
 0x2a5   : > { %v2014_v31 = vpack.c.b16 %v6165_v36, %v6163_v6 }
 0x2a6   : > { %v1534_v60 = vpop.f32.mrf.mxu2 }
 0x2a8   : > { %v6172_v1 = vpop.f32.mrf.mxu0 }
 0x2ab   : > { %1122 = vmatmul.bf16.gmra.mxu0 %v4832_v10  ;;  %1928 = vmatmul.bf16.gmra.mxu2 %v5723_v56  ;;  %v1321_v56 = vperm.slane %v5895_v41, 0  ;;  %v1863_v10 = vpop.f32.mrf.mxu3 }
 0x2ad   : > { %v1514_v43 = vadd.f32 %v5886_v18, %v1321_v56  ;;  %v1511_v38 = vadd.f32 %v5883_v16, %v1321_v56  ;;  %v1516_v61 = vadd.f32 %v5890_v20, %v1321_v56  ;;  %v1509_v41 = vadd.f32 %v5879_v44, %v1321_v56 }
 0x2ae   : > { %v1537_v21 = vpop.f32.mrf.mxu2  ;;  %v1535_v18 = vadd.f32 %v1534_v60, %v1322_v34  ;;  %v1506_v20 = vadd.f32 %v5881_v63, %v1321_v56  ;;  %v1653_v63 = vld [vmem:[%s7360_s4] sm:$0xf]  ;;  %v1499_v45 = vadd.f32 %v5869_v2, %v1321_v56 }
 0x2af   : > { %v1538_v53 = vadd.f32 %v1537_v21, %v1322_v34  ;;  %v1533_v21 = vadd.f32 %v1532_v7, %v1322_v34 }
 0x2b0   : > { %v6175_v17 = vpop.f32.mrf.mxu0  ;;  %v6208_v13 = vpack.c.bf16 %v1535_v18, %v1506_v20 }
 0x2b3   : > { %v1866_v20 = vpop.f32.mrf.mxu3 }
 0x2b6   : > { %v1539_v59 = vpop.f32.mrf.mxu2 }
 0x2b7   : > { %v1540_v46 = vadd.f32 %v1539_v59, %v1322_v34 }
 0x2b8   : > { %v6180_v26 = vpop.f32.mrf.mxu0 }
 0x2b9   : > { %v6198_v59 = vpack.c.bf16 %v1540_v46, %v1511_v38  ;;  %v1501_v46 = vadd.f32 %v5873_v62, %v1321_v56  ;;  %v1528_v38 = vadd.f32 %v6151_v42, %v1322_v34 }
 0x2bb   : > { %1127 = vmatmul.bf16.gmra.mxu0 %v4833_v14  ;;  %1933 = vmatmul.bf16.gmra.mxu2 %v5759_v24  ;;  %v2146_v44 = vunpack.c.l.b16 %v6198_v59  ;;  %v6224_v62 = vpack.c.bf16 %v1530_v39, %v1501_v46  ;;  %v4835_v46 = vld [vmem:[%s7361_s5 + $0x78] sm:$0xff]  ;;  %v2388_v49 = vunpack.c.h.b16 %v6198_v59 }
 0x2bd   : > { %v2142_v2 = vunpack.c.l.b16 %v6224_v62 }
 0x2be   : > { %v1542_v9 = vpop.f32.mrf.mxu2 }
 0x2bf   : > { %v1543_v8 = vadd.f32 %v1542_v9, %v1322_v34  ;;  %v6203_v9 = vpack.c.bf16 %v1538_v53, %v1509_v41  ;;  %v2144_v41 = vunpack.c.l.b16 %v6208_v13 }
 0x2c0   : > { %v6183_v32 = vpop.f32.mrf.mxu0 }
 0x2c1   : > { %v6190_v55 = vpack.c.bf16 %v1543_v8, %v1514_v43  ;;  %v2145_v53 = vunpack.c.l.b16 %v6203_v9 }
 0x2c3   : > { %v2147_v8 = vunpack.c.l.b16 %v6190_v55  ;;  %v2151_v18 = vpack.c.b16 %v2146_v44, %v2145_v53 }
 0x2c6   : > { %v1544_v52 = vpop.f32.mrf.mxu2 }
 0x2c7   : > { %v1545_v24 = vadd.f32 %v1544_v52, %v1322_v34  ;;  %v1504_v52 = vadd.f32 %v5875_v12, %v1321_v56  ;;  %v6219_v12 = vperm.slane %v1653_v63, 0 }
 0x2c8   : > { %v6195_v14 = vpop.f32.mrf.mxu0 }
 0x2c9   : > { %v6200_v16 = vpack.c.bf16 %v1545_v24, %v1516_v61  ;;  %v6216_v61 = vpack.c.bf16 %v1533_v21, %v1504_v52 }
 0x2cb   : > { %v2148_v43 = vunpack.c.l.b16 %v6200_v16  ;;  %1132 = vmatmul.bf16.gmra.mxu0 %v4834_v47  ;;  %v6222_v47 = vperm.slane %v1653_v63, 1  ;;  %v2143_v42 = vunpack.c.l.b16 %v6216_v61 }
 0x2cd   : > { %v2152_v60 = vpack.c.b16 %v2148_v43, %v2147_v8  ;;  %v6227_v8 = vpack.c.bf16 %v1528_v38, %v1499_v45  ;;  %v1862_v21 = vadd.f32 %v1861_v28, %v6222_v47  ;;  %v2150_v56 = vpack.c.b16 %v2144_v41, %v2143_v42 }
 0x2ce   : > { %v1832_v7 = vpop.f32.mrf.mxu2  ;;  %v1864_v39 = vadd.f32 %v1863_v10, %v6222_v47  ;;  %v1868_v10 = vpop.f32.mrf.mxu3 }
 0x2cf   : > { %2173 = vmatpush.bf16.msrb.mxu1 %v2152_v60  ;;  %v1833_v34 = vadd.f32 %v1832_v7, %v6219_v12  ;;  %v2141_v52 = vunpack.c.l.b16 %v6227_v8 }
 0x2d0   : > { %v1095_v24 = vpop.f32.mrf.mxu0 }
 0x2d1   : > { %v6235_v60 = vpack.c.bf16 %v1862_v21, %v1833_v34  ;;  %v2149_v28 = vpack.c.b16 %v2142_v2, %v2141_v52  ;;  %v1236_v34 = vpack.c.bf16 %v1095_v24, %v1095_v24  ;;  %v1867_v52 = vadd.f32 %v1866_v20, %v6222_v47  ;;  %v4836_v20 = vld [vmem:[%s7361_s5 + $0x80] sm:$0xff] }
 0x2d2   : > { %v1233_v24 = vpack.c.bf16 %v6180_v26, %v6180_v26  ;;  %v1231_v26 = vpack.c.bf16 %v6172_v1, %v6172_v1 }
 0x2d3   : > { %2174 = vmatpush.bf16.msrb.mxu1 %v2151_v18  ;;  %v2214_v38 = vunpack.c.h.b16 %v6235_v60  ;;  %v1963_v22 = vunpack.c.l.b16 %v6235_v60 }
 0x2d6   : > { %v1834_v43 = vpop.f32.mrf.mxu2 }
 0x2d7   : > { %v1835_v44 = vadd.f32 %v1834_v43, %v6219_v12  ;;  %2175 = vmatpush.bf16.msrb.mxu1 %v2150_v56  ;;  %v1235_v56 = vpack.c.bf16 %v6195_v14, %v6195_v14 }
 0x2d8   : > { %v1098_v63 = vpop.f32.mrf.mxu0 }
 0x2d9   : > { %v6241_v7 = vpack.c.bf16 %v1864_v39, %v1835_v44  ;;  %v1237_v18 = vpack.c.bf16 %v1098_v63, %v1098_v63  ;;  %v1234_v44 = vpack.c.bf16 %v6183_v32, %v6183_v32  ;;  %v1871_v63 = vpop.f32.mrf.mxu3 }
 0x2db   : > { %v2215_v53 = vunpack.c.h.b16 %v6241_v7  ;;  %1137 = vmatmul.bf16.gmra.mxu0 %v4835_v46  ;;  %2176 = vmatpush.bf16.msrb.mxu1 %v2149_v28  ;;  %v2009_v43 = vunpack.c.l.b16 %v1237_v18  ;;  %v2008_v46 = vunpack.c.l.b16 %v1236_v34  ;;  %v1232_v18 = vpack.c.bf16 %v6175_v17, %v6175_v17 }
 0x2dc   : > { %v2003_v17 = vunpack.c.l.b16 %v1231_v26 }
 0x2dd   : > { %v6245_v45 = vpack.c.b16 %v2215_v53, %v2214_v38  ;;  %v1869_v38 = vadd.f32 %v1868_v10, %v6222_v47  ;;  %v2006_v10 = vunpack.c.l.b16 %v1234_v44 }
 0x2de   : > { %v1837_v41 = vpop.f32.mrf.mxu2 }
 0x2df   : > { %v1838_v2 = vadd.f32 %v1837_v41, %v6219_v12 }
 0x2e0   : > { %v1100_v42 = vpop.f32.mrf.mxu0 }
 0x2e1   : > { %v1238_v21 = vpack.c.bf16 %v1100_v42, %v1100_v42  ;;  %v2007_v42 = vunpack.c.l.b16 %v1235_v56  ;;  %v6256_v14 = vpack.c.bf16 %v1867_v52, %v1838_v2  ;;  %v2005_v56 = vunpack.c.l.b16 %v1233_v24 }
 0x2e3   : > { %v2010_v39 = vunpack.c.l.b16 %v1238_v21  ;;  %v2017_v21 = vpack.c.b16 %v2008_v46, %v2007_v42  ;;  %v2016_v52 = vpack.c.b16 %v2006_v10, %v2005_v56 }
 0x2e5   : > { %v2018_v28 = vpack.c.b16 %v2010_v39, %v2009_v43  ;;  %v2216_v43 = vunpack.c.h.b16 %v6256_v14  ;;  %v2004_v39 = vunpack.c.l.b16 %v1232_v18  ;;  %v1283_v18 = vpack.c.bf16 %v6121_v15, %v6121_v15  ;;  %v4837_v15 = vld [vmem:[%s7361_s5 + $0x88] sm:$0xff] }
 0x2e6   : > { %v1839_v53 = vpop.f32.mrf.mxu2 }
 0x2e7   : > { %v1840_v41 = vadd.f32 %v1839_v53, %v6219_v12  ;;  %2027 = vmatpush.bf16.msrb.mxu3 %v2018_v28 }
 0x2e8   : > { %v1103_v32 = vpop.f32.mrf.mxu0 }
 0x2e9   : > { %v6264_v34 = vpack.c.bf16 %v1869_v38, %v1840_v41  ;;  %v1239_v44 = vpack.c.bf16 %v1103_v32, %v1103_v32  ;;  %v1873_v38 = vpop.f32.mrf.mxu3  ;;  %v2015_v41 = vpack.c.b16 %v2004_v39, %v2003_v17  ;;  %v1284_v32 = vpack.c.bf16 %v6129_v5, %v6129_v5 }
 0x2ea   : > { %v1874_v26 = vadd.f32 %v1873_v38, %v6222_v47  ;;  %v2758_v5 = vunpack.c.l.b16 %v1283_v18 }
 0x2eb   : > { %v2217_v2 = vunpack.c.h.b16 %v6264_v34  ;;  %1142 = vmatmul.bf16.gmra.mxu0 %v4836_v20  ;;  %2028 = vmatpush.bf16.msrb.mxu3 %v2017_v21  ;;  %v6272_v1 = vunpack.c.l.b16 %v1239_v44  ;;  %v1872_v20 = vadd.f32 %v1871_v63, %v6222_v47 }
 0x2ed   : > { %v6270_v28 = vpack.c.b16 %v2217_v2, %v2216_v43  ;;  %v2759_v2 = vunpack.c.l.b16 %v1284_v32 }
 0x2ee   : > { %v1842_v53 = vpop.f32.mrf.mxu2 }
 0x2ef   : > { %2029 = vmatpush.bf16.msrb.mxu3 %v2016_v52  ;;  %v1843_v24 = vadd.f32 %v1842_v53, %v6219_v12  ;;  %v2768_v6 = vpack.c.b16 %v2759_v2, %v2758_v5 }
 0x2f0   : > { %v1105_v46 = vpop.f32.mrf.mxu0 }
 0x2f1   : > { %v1240_v42 = vpack.c.bf16 %v1105_v46, %v1105_v46  ;;  %v6285_v56 = vpack.c.bf16 %v1872_v20, %v1843_v24  ;;  %v1876_v52 = vpop.f32.mrf.mxu3  ;;  %v7390_v46 = vpack.c.b16 %v6137_v29, %v6135_v27  ;;  %v7391_v27 = vpack.c.b16 %v6125_v4, %v6123_v3  ;;  %v4838_v4 = vld [vmem:[%s7361_s5 + $0x90] sm:$0xff] }
 0x2f2   : > { %v1877_v59 = vadd.f32 %v1876_v52, %v6222_v47  ;;  %v2384_v52 = vunpack.c.h.b16 %v6224_v62  ;;  %v1965_v62 = vunpack.c.l.b16 %v6256_v14 }
 0x2f3   : > { %v6275_v40 = vunpack.c.l.b16 %v1240_v42  ;;  %2030 = vmatpush.bf16.msrb.mxu3 %v2015_v41  ;;  %v2218_v53 = vunpack.c.h.b16 %v6285_v56  ;;  %v2389_v42 = vunpack.c.h.b16 %v6190_v55  ;;  %v1964_v41 = vunpack.c.l.b16 %v6241_v7 }
 0x2f4   : > { %v2387_v55 = vunpack.c.h.b16 %v6203_v9  ;;  %v2385_v9 = vunpack.c.h.b16 %v6216_v61  ;;  %v1966_v61 = vunpack.c.l.b16 %v6264_v34  ;;  %v4839_v34 = vld [vmem:[%s7361_s5 + $0x98] sm:$0xff] }
 0x2f5   : > { %v2262_v10 = vpack.c.b16 %v6275_v40, %v6272_v1  ;;  %v1971_v7 = vpack.c.b16 %v1964_v41, %v1963_v22 }
 0x2f6   : > { %v1844_v21 = vpop.f32.mrf.mxu2 }
 0x2f7   : > { %v1845_v43 = vadd.f32 %v1844_v21, %v6219_v12  ;;  %2031 = vmatpush.bf16.msrb.mxu3 %v2014_v31  ;;  %v2390_v31 = vunpack.c.h.b16 %v6200_v16  ;;  %v2386_v21 = vunpack.c.h.b16 %v6208_v13 }
 0x2f8   : > { %v1108_v63 = vpop.f32.mrf.mxu0 }
 0x2f9   : > { %v6294_v39 = vpack.c.bf16 %v1874_v26, %v1845_v43  ;;  %v1241_v38 = vpack.c.bf16 %v1108_v63, %v1108_v63  ;;  %v1878_v29 = vpop.f32.mrf.mxu3  ;;  %v2393_v43 = vpack.c.b16 %v2388_v49, %v2387_v55  ;;  %v2392_v13 = vpack.c.b16 %v2386_v21, %v2385_v9  ;;  %v4840_v55 = vld [vmem:[%s7361_s5 + $0xa0] sm:$0xff] }
 0x2fb   : > { %v2219_v17 = vunpack.c.h.b16 %v6294_v39  ;;  %1147 = vmatmul.bf16.gmra.mxu0 %v4837_v15  ;;  %2032 = vmatpush.bf16.msrb.mxu3 %v2013_v23  ;;  %v2394_v23 = vpack.c.b16 %v2390_v31, %v2389_v42  ;;  %v6311_v18 = vunpack.c.l.b16 %v1241_v38  ;;  %v1879_v15 = vadd.f32 %v1878_v29, %v6222_v47 }
 0x2fc   : > { %v2383_v47 = vunpack.c.h.b16 %v6227_v8  ;;  %v7392_v42 = vpack.c.b16 %v6146_v19, %v6141_v57  ;;  %v1972_v8 = vpack.c.b16 %v1966_v61, %v1965_v62  ;;  %v1968_v19 = vunpack.c.l.b16 %v6294_v39  ;;  %v4844_v62 = vld [vmem:[%s7361_s5 + $0xc0] sm:$0xff] }
 0x2fd   : > { %v6301_v36 = vpack.c.b16 %v2219_v17, %v2218_v53 }
 0x2fe   : > { %v1847_v44 = vpop.f32.mrf.mxu2 }
 0x2ff   : > { %2033 = vmatpush.bf16.msrb.mxu3 %v7390_v46  ;;  %v1848_v16 = vadd.f32 %v1847_v44, %v6219_v12 }
 0x300   : > { %v1110_v24 = vpop.f32.mrf.mxu0 }
 0x301   : > { %v1242_v20 = vpack.c.bf16 %v1110_v24, %v1110_v24  ;;  %v1951_v63 = vpack.c.bf16 %v1877_v59, %v1848_v16 }
 0x303   : > { %v6314_v32 = vunpack.c.l.b16 %v1242_v20  ;;  %2034 = vmatpush.bf16.msrb.mxu3 %v7391_v27  ;;  %v2220_v53 = vunpack.c.h.b16 %v1951_v63 }
 0x305   : > { %v2263_v60 = vpack.c.b16 %v6314_v32, %v6311_v18  ;;  %v2643_v18 = vunpack.c.l.b16 %v5909_v50  ;;  %v2642_v32 = vunpack.c.l.b16 %v5903_v58  ;;  %v4847_v58 = vld [vmem:[%s7361_s5 + $0xd8] sm:$0xff] }
 0x306   : > { %v1849_v26 = vpop.f32.mrf.mxu2  ;;  %2035 = vmatmul.bf16.vlgmr.msrb.gmra.mxu3 %v1971_v7 }
 0x307   : > { %2415 = vmatpush.bf16.msra.mxu3 %v2394_v23  ;;  %v1850_v3 = vadd.f32 %v1849_v26, %v6219_v12  ;;  %v2391_v12 = vpack.c.b16 %v2384_v52, %v2383_v47  ;;  %v1967_v23 = vunpack.c.l.b16 %v6285_v56  ;;  %v1969_v26 = vunpack.c.l.b16 %v1951_v63  ;;  %v4841_v56 = vld [vmem:[%s7361_s5 + $0xa8] sm:$0xff]  ;;  %v4843_v63 = vld [vmem:[%s7361_s5 + $0xb8] sm:$0xff] }
 0x308   : > { %v1113_v5 = vpop.f32.mrf.mxu0 }
 0x309   : > { %v1953_v2 = vpack.c.bf16 %v1879_v15, %v1850_v3  ;;  %v1243_v44 = vpack.c.bf16 %v1113_v5, %v1113_v5  ;;  %v4842_v3 = vld [vmem:[%s7361_s5 + $0xb0] sm:$0xff] }
 0x30b   : > { %2416 = vmatpush.bf16.msra.mxu3 %v2393_v43  ;;  %v2221_v17 = vunpack.c.h.b16 %v1953_v2  ;;  %1152 = vmatmul.bf16.gmra.mxu0 %v4838_v4  ;;  %v6339_v41 = vunpack.c.l.b16 %v1243_v44  ;;  %v1970_v59 = vunpack.c.l.b16 %v1953_v2 }
 0x30d   : > { %v6332_v31 = vpack.c.b16 %v2221_v17, %v2220_v53  ;;  %v1974_v43 = vpack.c.b16 %v1970_v59, %v1969_v26  ;;  %v2646_v26 = vunpack.c.l.b16 %v5919_v11 }
 0x30f   : > { %2417 = vmatpush.bf16.msra.mxu3 %v2392_v13 }
 0x310   : > { %v1115_v38 = vpop.f32.mrf.mxu0 }
 0x311   : > { %v1244_v46 = vpack.c.bf16 %v1115_v38, %v1115_v38 }
 0x313   : > { %2418 = vmatpush.bf16.msra.mxu3 %v2391_v12  ;;  %v6341_v24 = vunpack.c.l.b16 %v1244_v46 }
 0x315   : > { %v2264_v20 = vpack.c.b16 %v6341_v24, %v6339_v41  ;;  %v2645_v41 = vunpack.c.l.b16 %v5917_v48  ;;  %v2644_v24 = vunpack.c.l.b16 %v5911_v51  ;;  %v2641_v48 = vunpack.c.l.b16 %v5899_v0 }
 0x316   : > { %2040 = vmatmul.bf16.gmra.mxu3 %v1972_v8 }
 0x317   : > { %2778 = vmatpush.bf16.msrb.mxu3 %v7392_v42  ;;  %v2650_v40 = vpack.c.b16 %v2644_v24, %v2643_v18  ;;  %v2649_v51 = vpack.c.b16 %v2642_v32, %v2641_v48 }
 0x318   : > { %v1118_v49 = vpop.f32.mrf.mxu0 }
 0x319   : > { %v1245_v57 = vpack.c.bf16 %v1118_v49, %v1118_v49 }
 0x31b   : > { %2779 = vmatpush.bf16.msrb.mxu3 %v2768_v6  ;;  %1157 = vmatmul.bf16.gmra.mxu0 %v4839_v34  ;;  %v2252_v16 = vunpack.c.l.b16 %v1245_v57  ;;  %v1973_v6 = vpack.c.b16 %v1968_v19, %v1967_v23 }
 0x320   : > { %v1120_v14 = vpop.f32.mrf.mxu0 }
 0x321   : > { %v1246_v22 = vpack.c.bf16 %v1120_v14, %v1120_v14 }
 0x323   : > { %v2253_v27 = vunpack.c.l.b16 %v1246_v22 }
 0x325   : > { %v2265_v29 = vpack.c.b16 %v2253_v27, %v2252_v16 }
 0x326   : > { %2045 = vmatmul.bf16.gmra.mxu3 %v1973_v6 }
 0x328   : > { %v1123_v7 = vpop.f32.mrf.mxu0 }
 0x329   : > { %v1247_v19 = vpack.c.bf16 %v1123_v7, %v1123_v7  ;;  %v2648_v7 = vunpack.c.l.b16 %v5927_v33  ;;  %v2651_v33 = vpack.c.b16 %v2646_v26, %v2645_v41 }
 0x32b   : > { %1162 = vmatmul.bf16.gmra.mxu0 %v4840_v55  ;;  %v2254_v16 = vunpack.c.l.b16 %v1247_v19  ;;  %v4845_v55 = vld [vmem:[%s7361_s5 + $0xc8] sm:$0xff] }
 0x330   : > { %v1125_v21 = vpop.f32.mrf.mxu0 }
 0x331   : > { %v1248_v34 = vpack.c.bf16 %v1125_v21, %v1125_v21  ;;  %v2647_v21 = vunpack.c.l.b16 %v5925_v30  ;;  %v4846_v30 = vld [vmem:[%s7361_s5 + $0xd0] sm:$0xff] }
 0x333   : > { %v2255_v22 = vunpack.c.l.b16 %v1248_v34 }
 0x335   : > { %v2266_v6 = vpack.c.b16 %v2255_v22, %v2254_v16 }
 0x336   : > { %2050 = vmatmul.bf16.gmra.mxu3 %v1974_v43  ;;  %v2652_v43 = vpack.c.b16 %v2648_v7, %v2647_v21 }
 0x338   : > { %v1128_v39 = vpop.f32.mrf.mxu0 }
 0x339   : > { %v1249_v46 = vpack.c.bf16 %v1128_v39, %v1128_v39 }
 0x33b   : > { %1167 = vmatmul.bf16.gmra.mxu0 %v4841_v56  ;;  %v2256_v14 = vunpack.c.l.b16 %v1249_v46 }
 0x340   : > { %v1130_v15 = vpop.f32.mrf.mxu0 }
 0x341   : > { %v1250_v44 = vpack.c.bf16 %v1130_v15, %v1130_v15 }
 0x343   : > { %v2257_v49 = vunpack.c.l.b16 %v1250_v44 }
 0x345   : > { %v2267_v23 = vpack.c.b16 %v2257_v49, %v2256_v14 }
 0x348   : > { %v1133_v4 = vpop.f32.mrf.mxu0 }
 0x349   : > { %v1251_v17 = vpack.c.bf16 %v1133_v4, %v1133_v4 }
 0x34b   : > { %1172 = vmatmul.bf16.gmra.mxu0 %v4842_v3  ;;  %v2258_v42 = vunpack.c.l.b16 %v1251_v17 }
 0x350   : > { %v1135_v9 = vpop.f32.mrf.mxu0 }
 0x351   : > { %v1252_v13 = vpack.c.bf16 %v1135_v9, %v1135_v9 }
 0x353   : > { %v2259_v38 = vunpack.c.l.b16 %v1252_v13  ;;  %v6419_v13 = vpop.f32.mrf.mxu2 }
 0x355   : > { %v2268_v57 = vpack.c.b16 %v2259_v38, %v2258_v42 }
 0x358   : > { %v1138_v5 = vpop.f32.mrf.mxu0 }
 0x359   : > { %v1253_v2 = vpack.c.bf16 %v1138_v5, %v1138_v5 }
 0x35b   : > { %1177 = vmatmul.bf16.gmra.mxu0 %v4843_v63  ;;  %v2260_v47 = vunpack.c.l.b16 %v1253_v2  ;;  %v4849_v2 = vld [vmem:[%s7361_s5 + $0xe8] sm:$0xff]  ;;  %v6421_v17 = vpop.f32.mrf.mxu2 }
 0x360   : > { %v1140_v52 = vpop.f32.mrf.mxu0 }
 0x361   : > { %v1254_v53 = vpack.c.bf16 %v1140_v52, %v1140_v52 }
 0x363   : > { %v2261_v12 = vunpack.c.l.b16 %v1254_v53  ;;  %v6427_v38 = vpop.f32.mrf.mxu2 }
 0x365   : > { %v2269_v61 = vpack.c.b16 %v2261_v12, %v2260_v47 }
 0x367   : > { %2278 = vmatpush.bf16.msra.mxu2 %v2269_v61 }
 0x368   : > { %v6365_v8 = vpop.f32.mrf.mxu0 }
 0x36b   : > { %2279 = vmatpush.bf16.msra.mxu2 %v2268_v57  ;;  %1182 = vmatmul.bf16.gmra.mxu0 %v4844_v62  ;;  %v6431_v19 = vpop.f32.mrf.mxu2 }
 0x36f   : > { %2280 = vmatpush.bf16.msra.mxu2 %v2267_v23 }
 0x370   : > { %v6367_v27 = vpop.f32.mrf.mxu0 }
 0x371   : > { %v1256_v47 = vpack.c.bf16 %v6367_v27, %v6367_v27 }
 0x373   : > { %2281 = vmatpush.bf16.msra.mxu2 %v2266_v6  ;;  %v6433_v7 = vpop.f32.mrf.mxu2 }
 0x377   : > { %2282 = vmatpush.bf16.msra.mxu2 %v2265_v29 }
 0x378   : > { %v6372_v59 = vpop.f32.mrf.mxu0 }
 0x379   : > { %v1257_v42 = vpack.c.bf16 %v6372_v59, %v6372_v59 }
 0x37b   : > { %2283 = vmatpush.bf16.msra.mxu2 %v2264_v20  ;;  %1187 = vmatmul.bf16.gmra.mxu0 %v4845_v55  ;;  %v2498_v34 = vunpack.c.l.b16 %v1257_v42 }
 0x37f   : > { %2284 = vmatpush.bf16.msra.mxu2 %v2263_v60 }
 0x380   : > { %v1150_v29 = vpop.f32.mrf.mxu0 }
 0x381   : > { %v1258_v62 = vpack.c.bf16 %v1150_v29, %v1150_v29 }
 0x383   : > { %2285 = vmatpush.bf16.msra.mxu2 %v2262_v10  ;;  %v2499_v49 = vunpack.c.l.b16 %v1258_v62 }
 0x386   : > { %2286 = vmatmul.bf16.vlgmr.msra.gmra.mxu2 %v6245_v45 }
 0x387   : > { %2673 = vmatpush.bf16.msrb.mxu2 %v2652_v43 }
 0x388   : > { %v1153_v11 = vpop.f32.mrf.mxu0 }
 0x389   : > { %v1259_v1 = vpack.c.bf16 %v1153_v11, %v1153_v11 }
 0x38b   : > { %2674 = vmatpush.bf16.msrb.mxu2 %v2651_v33  ;;  %1192 = vmatmul.bf16.gmra.mxu0 %v4846_v30  ;;  %v6395_v45 = vunpack.c.l.b16 %v1259_v1  ;;  %v6435_v1 = vpop.f32.mrf.mxu2 }
 0x38f   : > { %2675 = vmatpush.bf16.msrb.mxu2 %v2650_v40 }
 0x390   : > { %v1155_v10 = vpop.f32.mrf.mxu0 }
 0x391   : > { %v1260_v60 = vpack.c.bf16 %v1155_v10, %v1155_v10 }
 0x393   : > { %2676 = vmatpush.bf16.msrb.mxu2 %v2649_v51  ;;  %v6397_v20 = vunpack.c.l.b16 %v1260_v60 }
 0x395   : > { %v2514_v50 = vpack.c.b16 %v6397_v20, %v6395_v45 }
 0x396   : > { %2291 = vmatmul.bf16.gmra.mxu2 %v6270_v28  ;;  %v4848_v28 = vld [vmem:[%s7361_s5 + $0xe0] sm:$0xff] }
 0x398   : > { %v1158_v0 = vpop.f32.mrf.mxu0 }
 0x399   : > { %v1261_v56 = vpack.c.bf16 %v1158_v0, %v1158_v0 }
 0x39b   : > { %1197 = vmatmul.bf16.gmra.mxu0 %v4847_v58  ;;  %v6405_v15 = vunpack.c.l.b16 %v1261_v56 }
 0x3a0   : > { %v1160_v39 = vpop.f32.mrf.mxu0 }
 0x3a1   : > { %v1262_v3 = vpack.c.bf16 %v1160_v39, %v1160_v39 }
 0x3a3   : > { %v6407_v4 = vunpack.c.l.b16 %v1262_v3 }
 0x3a5   : > { %v2515_v9 = vpack.c.b16 %v6407_v4, %v6405_v15  ;;  %v6443_v15 = vpop.f32.mrf.mxu2 }
 0x3a6   : > { %2296 = vmatmul.bf16.gmra.mxu2 %v6301_v36  ;;  %v1255_v36 = vpack.c.bf16 %v6365_v8, %v6365_v8  ;;  %v2513_v8 = vpack.c.b16 %v2499_v49, %v2498_v34 }
 0x3a8   : > { %v1163_v63 = vpop.f32.mrf.mxu0  ;;  %v2496_v44 = vunpack.c.l.b16 %v1255_v36 }
 0x3a9   : > { %v1263_v41 = vpack.c.bf16 %v1163_v63, %v1163_v63 }
 0x3ab   : > { %1202 = vmatmul.bf16.gmra.mxu0 %v4848_v28  ;;  %v2504_v32 = vunpack.c.l.b16 %v1263_v41 }
 0x3ad   : > { %v6448_v63 = vpop.f32.mrf.mxu2 }
 0x3b0   : > { %v1165_v5 = vpop.f32.mrf.mxu0 }
 0x3b1   : > { %v1264_v24 = vpack.c.bf16 %v1165_v5, %v1165_v5  ;;  %v6450_v5 = vpop.f32.mrf.mxu3 }
 0x3b3   : > { %v2505_v40 = vunpack.c.l.b16 %v1264_v24 }
 0x3b5   : > { %v2516_v10 = vpack.c.b16 %v2505_v40, %v2504_v32 }
 0x3b6   : > { %2301 = vmatmul.bf16.gmra.mxu2 %v6332_v31  ;;  %v2497_v31 = vunpack.c.l.b16 %v1256_v47 }
 0x3b8   : > { %v1168_v52 = vpop.f32.mrf.mxu0  ;;  %v2512_v46 = vpack.c.b16 %v2497_v31, %v2496_v44  ;;  %v2057_v31 = vsel %vm2056_vm8, %v6450_v5, -inf }
 0x3b9   : > { %v1265_v55 = vpack.c.bf16 %v1168_v52, %v1168_v52 }
 0x3bb   : > { %1207 = vmatmul.bf16.gmra.mxu0 %v4849_v2  ;;  %v2506_v33 = vunpack.c.l.b16 %v1265_v55 }
 0x3c0   : > { %v1170_v53 = vpop.f32.mrf.mxu0 }
 0x3c1   : > { %v1266_v21 = vpack.c.bf16 %v1170_v53, %v1170_v53 }
 0x3c3   : > { %v2507_v30 = vunpack.c.l.b16 %v1266_v21 }
 0x3c5   : > { %v2517_v48 = vpack.c.b16 %v2507_v30, %v2506_v33 }
 0x3c8   : > { %v1173_v12 = vpop.f32.mrf.mxu0 }
 0x3c9   : > { %v1267_v22 = vpack.c.bf16 %v1173_v12, %v1173_v12 }
 0x3cb   : > { %v2508_v26 = vunpack.c.l.b16 %v1267_v22 }
 0x3d0   : > { %v1175_v61 = vpop.f32.mrf.mxu0 }
 0x3d1   : > { %v1268_v23 = vpack.c.bf16 %v1175_v61, %v1175_v61 }
 0x3d3   : > { %v2509_v43 = vunpack.c.l.b16 %v1268_v23 }
 0x3d5   : > { %v2518_v18 = vpack.c.b16 %v2509_v43, %v2508_v26 }
 0x3d8   : > { %v1178_v57 = vpop.f32.mrf.mxu0 }
 0x3d9   : > { %v1269_v14 = vpack.c.bf16 %v1178_v57, %v1178_v57 }
 0x3db   : > { %v2510_v27 = vunpack.c.l.b16 %v1269_v14 }
 0x3e0   : > { %v1180_v16 = vpop.f32.mrf.mxu0 }
 0x3e1   : > { %v1270_v6 = vpack.c.bf16 %v1180_v16, %v1180_v16 }
 0x3e3   : > { %v2511_v59 = vunpack.c.l.b16 %v1270_v6 }
 0x3e5   : > { %v2519_v29 = vpack.c.b16 %v2511_v59, %v2510_v27 }
 0x3e7   : > { %2528 = vmatpush.bf16.msra.mxu1 %v2519_v29 }
 0x3e8   : > { %v1183_v11 = vpop.f32.mrf.mxu0 }
 0x3e9   : > { %v1271_v51 = vpack.c.bf16 %v1183_v11, %v1183_v11 }
 0x3eb   : > { %2529 = vmatpush.bf16.msra.mxu1 %v2518_v18  ;;  %v6437_v58 = vunpack.c.l.b16 %v1271_v51 }
 0x3ef   : > { %2530 = vmatpush.bf16.msra.mxu1 %v2517_v48 }
 0x3f0   : > { %v1185_v60 = vpop.f32.mrf.mxu0 }
 0x3f1   : > { %v1272_v0 = vpack.c.bf16 %v1185_v60, %v1185_v60 }
 0x3f3   : > { %2531 = vmatpush.bf16.msra.mxu1 %v2516_v10  ;;  %v6439_v56 = vunpack.c.l.b16 %v1272_v0 }
 0x3f5   : > { %v2762_v39 = vpack.c.b16 %v6439_v56, %v6437_v58 }
 0x3f7   : > { %2532 = vmatpush.bf16.msra.mxu1 %v2515_v9 }
 0x3f8   : > { %v1188_v3 = vpop.f32.mrf.mxu0 }
 0x3f9   : > { %v1273_v4 = vpack.c.bf16 %v1188_v3, %v1188_v3 }
 0x3fb   : > { %2533 = vmatpush.bf16.msra.mxu1 %v2514_v50  ;;  %v6452_v2 = vunpack.c.l.b16 %v1273_v4  ;;  %v6464_v50 = vpop.f32.mrf.mxu3 }
 0x3fc   : > { %v2060_v34 = vsel %vm2056_vm8, %v6464_v50, -inf }
 0x3ff   : > { %2534 = vmatpush.bf16.msra.mxu1 %v2513_v8 }
 0x400   : > { %v1190_v28 = vpop.f32.mrf.mxu0 }
 0x401   : > { %v1274_v52 = vpack.c.bf16 %v1190_v28, %v1190_v28 }
 0x403   : > { %2535 = vmatpush.bf16.msra.mxu1 %v2512_v46  ;;  %v6454_v53 = vunpack.c.l.b16 %v1274_v52  ;;  %v6474_v61 = vpop.f32.mrf.mxu3 }
 0x404   : > { %v2063_v22 = vsel %vm2056_vm8, %v6474_v61, -inf }
 0x405   : > { %v2763_v9 = vpack.c.b16 %v6454_v53, %v6452_v2 }
 0x408   : > { %v6458_v36 = vpop.f32.mrf.mxu0 }
 0x409   : > { %v6460_v45 = vpop.f32.mrf.mxu2 }
 0x40a   : > { %v2307_v20 = vsel %vm2056_vm8, %v6460_v45, -inf }
 0x40b   : > { %2308 = vmax.xlane.f32.xlu2 %v2307_v20  ;;  %v6482_v49 = vpop.f32.mrf.mxu3 }
 0x40c   : > { %v2066_v55 = vsel %vm2056_vm8, %v6482_v49, -inf }
 0x410   : > { %v6466_v47 = vpop.f32.mrf.mxu0 }
 0x411   : > { %v6468_v12 = vpop.f32.mrf.mxu2 }
 0x412   : > { %v2310_v44 = vsel %vm2056_vm8, %v6468_v12, -inf }
 0x413   : > { %2311 = vmax.xlane.f32.xlu0 %v2310_v44  ;;  %2058 = vmax.xlane.f32.xlu2 %v2057_v31  ;;  %v6490_v16 = vpop.f32.mrf.mxu3 }
 0x414   : > { %v2069_v59 = vsel %vm2056_vm8, %v6490_v16, -inf }
 0x418   : > { %v1198_v46 = vpop.f32.mrf.mxu0 }
 0x419   : > { %v6476_v42 = vpop.f32.mrf.mxu2  ;;  %v1277_v0 = vpack.c.bf16 %v1198_v46, %v1198_v46  ;;  %v1276_v46 = vpack.c.bf16 %v6466_v47, %v6466_v47 }
 0x41a   : > { %v2313_v62 = vsel %vm2056_vm8, %v6476_v42, -inf }
 0x41b   : > { %2314 = vmax.xlane.f32.xlu2 %v2313_v62  ;;  %2061 = vmax.xlane.f32.xlu0 %v2060_v34  ;;  %v6504_v29 = vpop.f32.mrf.mxu3  ;;  %v1275_v62 = vpack.c.bf16 %v6458_v36, %v6458_v36 }
 0x41c   : > { %v2072_v30 = vsel %vm2056_vm8, %v6504_v29, -inf }
 0x420   : > { %v1200_v57 = vpop.f32.mrf.mxu0 }
 0x421   : > { %v6484_v8 = vpop.f32.mrf.mxu2  ;;  %v1278_v28 = vpack.c.bf16 %v1200_v57, %v1200_v57 }
 0x422   : > { %v2316_v14 = vsel %vm2056_vm8, %v6484_v8, -inf }
 0x423   : > { %2317 = vmax.xlane.f32.xlu0 %v2316_v14  ;;  %2064 = vmax.xlane.f32.xlu2 %v2063_v22  ;;  %v6512_v18 = vpop.f32.mrf.mxu3  ;;  %v2752_v14 = vunpack.c.l.b16 %v1277_v0  ;;  %v2753_v22 = vunpack.c.l.b16 %v1278_v28 }
 0x424   : > { %v2075_v4 = vsel %vm2056_vm8, %v6512_v18, -inf }
 0x428   : > { %v1203_v23 = vpop.f32.mrf.mxu0 }
 0x429   : > { %v6492_v27 = vpop.f32.mrf.mxu2  ;;  %v1279_v32 = vpack.c.bf16 %v1203_v23, %v1203_v23 }
 0x42a   : > { %v2319_v6 = vsel %vm2056_vm8, %v6492_v27, -inf }
 0x42b   : > { %2320 = vmax.xlane.f32.xlu2 %v2319_v6  ;;  %2067 = vmax.xlane.f32.xlu0 %v2066_v55  ;;  %v2754_v52 = vunpack.c.l.b16 %v1279_v32  ;;  %v6522_v34 = vpop.f32.mrf.mxu3  ;;  %v2750_v6 = vunpack.c.l.b16 %v1275_v62  ;;  %v2751_v55 = vunpack.c.l.b16 %v1276_v46 }
 0x42c   : > { %v2078_v57 = vsel %vm2056_vm8, %v6522_v34, -inf }
 0x430   : > { %v1205_v21 = vpop.f32.mrf.mxu0 }
 0x431   : > { %v6498_v26 = vpop.f32.mrf.mxu2  ;;  %v1280_v40 = vpack.c.bf16 %v1205_v21, %v1205_v21  ;;  %v2765_v21 = vpack.c.b16 %v2753_v22, %v2752_v14 }
 0x432   : > { %v2322_v43 = vsel %vm2056_vm8, %v6498_v26, -inf }
 0x433   : > { %2323 = vmax.xlane.f32.xlu0 %v2322_v43  ;;  %2070 = vmax.xlane.f32.xlu2 %v2069_v59  ;;  %v2755_v20 = vunpack.c.l.b16 %v1280_v40  ;;  %v2764_v43 = vpack.c.b16 %v2751_v55, %v2750_v6 }
 0x435   : > { %v2766_v23 = vpack.c.b16 %v2755_v20, %v2754_v52 }
 0x438   : > { %v1208_v41 = vpop.f32.mrf.mxu0 }
 0x439   : > { %v6506_v24 = vpop.f32.mrf.mxu2  ;;  %v1281_v11 = vpack.c.bf16 %v1208_v41, %v1208_v41 }
 0x43a   : > { %v2325_v33 = vsel %vm2056_vm8, %v6506_v24, -inf }
 0x43b   : > { %2326 = vmax.xlane.f32.xlu2 %v2325_v33  ;;  %2073 = vmax.xlane.f32.xlu0 %v2072_v30  ;;  %v2756_v10 = vunpack.c.l.b16 %v1281_v11 }
 0x440   : > { %v1210_v48 = vpop.f32.mrf.mxu0 }
 0x441   : > { %v6514_v51 = vpop.f32.mrf.mxu2  ;;  %v1282_v60 = vpack.c.bf16 %v1210_v48, %v1210_v48 }
 0x442   : > { %v2328_v3 = vsel %vm2056_vm8, %v6514_v51, -inf }
 0x443   : > { %2329 = vmax.xlane.f32.xlu0 %v2328_v3  ;;  %2076 = vmax.xlane.f32.xlu2 %v2075_v4  ;;  %v2757_v44 = vunpack.c.l.b16 %v1282_v60 }
 0x445   : > { %v2767_v31 = vpack.c.b16 %v2757_v44, %v2756_v10 }
 0x447   : > { %2780 = vmatpush.bf16.msrb.mxu3 %v2767_v31 }
 0x44b   : > { %2079 = vmax.xlane.f32.xlu0 %v2078_v57  ;;  %2781 = vmatpush.bf16.msrb.mxu3 %v2766_v23 }
 0x44f   : > { %2782 = vmatpush.bf16.msrb.mxu3 %v2765_v21  ;;  %v1890_v21 = vpop.f32.mrf.mxu1 }
 0x453   : > { %2783 = vmatpush.bf16.msrb.mxu3 %v2764_v43 }
 0x457   : > { %2784 = vmatpush.bf16.msrb.mxu3 %v2763_v9 }
 0x45b   : > { %2785 = vmatpush.bf16.msrb.mxu3 %v2762_v39 }
 0x47e   : > { %v2309_v36 = vpop.xlane.xlu2 %2308 }
 0x47f   : > { %v2331_v47 = vsub.f32 %v6460_v45, %v2309_v36 }
 0x481   : > { %v2339_v59 = vmul.f32 1.442695, %v2331_v47 }
 0x483   : > { %5028 = vpow2.f32 %v2339_v59 }
 0x486   : > { %v2312_v41 = vpop.xlane.xlu0 %2311  ;;  %v2059_v33 = vpop.xlane.xlu2 %2058 }
 0x487   : > { %v2332_v30 = vsub.f32 %v6468_v12, %v2312_v41  ;;  %v2081_v32 = vsub.f32 %v6450_v5, %v2059_v33 }
 0x489   : > { %v2341_v11 = vmul.f32 1.442695, %v2332_v30  ;;  %v2089_v53 = vmul.f32 1.442695, %v2081_v32  ;;  %v6538_v58 = vpop.eup %5028  ;;  %v1892_v32 = vpop.f32.mrf.mxu1 }
 0x48b   : > { %5030 = vpow2.f32 %v2341_v11 }
 0x48c   : > { %5032 = vpow2.f32 %v2089_v53 }
 0x48e   : > { %v2315_v40 = vpop.xlane.xlu2 %2314  ;;  %v2062_v2 = vpop.xlane.xlu0 %2061 }
 0x48f   : > { %v2082_v9 = vsub.f32 %v6464_v50, %v2062_v2  ;;  %v2333_v12 = vsub.f32 %v6476_v42, %v2315_v40 }
 0x491   : > { %v6540_v56 = vpop.eup %5030  ;;  %v2091_v39 = vmul.f32 1.442695, %v2082_v9  ;;  %v2343_v5 = vmul.f32 1.442695, %v2333_v12 }
 0x492   : > { %v2379_v45 = vpack.c.bf16 %v6540_v56, %v6538_v58  ;;  %v6547_v50 = vpop.eup %5032 }
 0x493   : > { %5034 = vpow2.f32 %v2091_v39 }
 0x494   : > { %4604 = vmatmul.msk.bf16.vlgmr.msra.gmra.mxu3 %vm2056_vm8, %v2379_v45  ;;  %5036 = vpow2.f32 %v2343_v5 }
 0x496   : > { %v2318_v48 = vpop.xlane.xlu0 %2317  ;;  %v2065_v10 = vpop.xlane.xlu2 %2064 }
 0x497   : > { %v2334_v60 = vsub.f32 %v6484_v8, %v2318_v48  ;;  %v2083_v42 = vsub.f32 %v6474_v61, %v2065_v10  ;;  %v5188_v10 = vld [vmem:[%s7360_s4] sm:$0xf] }
 0x499   : > { %v2345_v0 = vmul.f32 1.442695, %v2334_v60  ;;  %v6549_v3 = vpop.eup %5034  ;;  %v2093_v20 = vmul.f32 1.442695, %v2083_v42  ;;  %v1658_v60 = vperm.slane %v5188_v10, 3 }
 0x49a   : > { %v2129_v4 = vpack.c.bf16 %v6549_v3, %v6547_v50  ;;  %v6557_v44 = vpop.eup %5036 }
 0x49b   : > { %5038 = vpow2.f32 %v2345_v0  ;;  %v1657_v0 = vperm.slane %v5188_v10, 2  ;;  %v1935_v10 = vadd.f32 %v6443_v15, %v1658_v60 }
 0x49c   : > { %4600 = vmatmul.msk.bf16.vlgmr.msrb.gmra.mxu1 %vm2056_vm8, %v2129_v4  ;;  %5040 = vpow2.f32 %v2093_v20 }
 0x49d   : > { %2915 = vmatpush.bf16.msrb.mxu1 %v5931_v37  ;;  %v1893_v42 = vadd.f32 %v1892_v32, %v1657_v0  ;;  %v1891_v20 = vadd.f32 %v1890_v21, %v1657_v0 }
 0x49e   : > { %v2321_v28 = vpop.xlane.xlu2 %2320  ;;  %v2068_v52 = vpop.xlane.xlu0 %2067 }
 0x49f   : > { %v2084_v8 = vsub.f32 %v6482_v49, %v2068_v52  ;;  %v2335_v46 = vsub.f32 %v6492_v27, %v2321_v28  ;;  %v1920_v28 = vadd.f32 %v6419_v13, %v1658_v60 }
 0x4a1   : > { %v6559_v31 = vpop.eup %5038  ;;  %v2095_v62 = vmul.f32 1.442695, %v2084_v8  ;;  %2916 = vmatpush.bf16.msrb.mxu1 %v5923_v25  ;;  %v2347_v37 = vmul.f32 1.442695, %v2335_v46  ;;  %v1940_v46 = vpack.c.bf16 %v1920_v28, %v1891_v20 }
 0x4a2   : > { %v2380_v61 = vpack.c.bf16 %v6559_v31, %v6557_v44  ;;  %v6568_v23 = vpop.eup %5040 }
 0x4a3   : > { %5042 = vpow2.f32 %v2095_v62 }
 0x4a4   : > { %4605 = vmatmul.msk.bf16.gmra.mxu3 %vm2056_vm8, %v2380_v61  ;;  %5044 = vpow2.f32 %v2347_v37 }
 0x4a5   : > { %2917 = vmatpush.bf16.msrb.mxu1 %v5915_v54 }
 0x4a6   : > { %v2324_v49 = vpop.xlane.xlu0 %2323  ;;  %v2071_v14 = vpop.xlane.xlu2 %2070 }
 0x4a7   : > { %v2336_v22 = vsub.f32 %v6498_v26, %v2324_v49  ;;  %v2085_v25 = vsub.f32 %v6490_v16, %v2071_v14  ;;  %v2714_v49 = vunpack.c.h.b16 %v1940_v46 }
 0x4a9   : > { %v2349_v57 = vmul.f32 1.442695, %v2336_v22  ;;  %v6570_v27 = vpop.eup %5042  ;;  %2918 = vmatpush.bf16.msrb.mxu1 %v5907_v35  ;;  %v2097_v26 = vmul.f32 1.442695, %v2085_v25  ;;  %v1925_v25 = vadd.f32 %v6427_v38, %v1658_v60 }
 0x4aa   : > { %v2130_v6 = vpack.c.bf16 %v6570_v27, %v6568_v23  ;;  %v6578_v36 = vpop.eup %5044 }
 0x4ab   : > { %5046 = vpow2.f32 %v2349_v57 }
 0x4ac   : > { %4601 = vmatmul.msk.bf16.gmra.mxu1 %vm2056_vm8, %v2130_v6  ;;  %5048 = vpow2.f32 %v2097_v26  ;;  %v2464_v6 = vunpack.c.l.b16 %v1940_v46 }
 0x4ae   : > { %v2327_v54 = vpop.xlane.xlu2 %2326  ;;  %v2074_v55 = vpop.xlane.xlu0 %2073 }
 0x4af   : > { %v2086_v43 = vsub.f32 %v6504_v29, %v2074_v55  ;;  %v2337_v35 = vsub.f32 %v6506_v24, %v2327_v54 }
 0x4b1   : > { %v6580_v47 = vpop.eup %5046  ;;  %v2099_v59 = vmul.f32 1.442695, %v2086_v43  ;;  %v2351_v41 = vmul.f32 1.442695, %v2337_v35 }
 0x4b2   : > { %v2381_v16 = vpack.c.bf16 %v6580_v47, %v6578_v36  ;;  %v6587_v29 = vpop.eup %5048 }
 0x4b3   : > { %5050 = vpow2.f32 %v2099_v59 }
 0x4b4   : > { %4606 = vmatmul.msk.bf16.gmra.mxu3 %vm2056_vm8, %v2381_v16  ;;  %5052 = vpow2.f32 %v2351_v41  ;;  %v1932_v41 = vadd.f32 %v6435_v1, %v1658_v60 }
 0x4b6   : > { %v2330_v33 = vpop.xlane.xlu0 %2329  ;;  %v2077_v11 = vpop.xlane.xlu2 %2076 }
 0x4b7   : > { %v2338_v30 = vsub.f32 %v6514_v51, %v2330_v33  ;;  %v2087_v24 = vsub.f32 %v6512_v18, %v2077_v11  ;;  %v1895_v18 = vpop.f32.mrf.mxu1 }
 0x4b8   : > { %v1896_v54 = vadd.f32 %v1895_v18, %v1657_v0 }
 0x4b9   : > { %v2353_v40 = vmul.f32 1.442695, %v2338_v30  ;;  %v6589_v2 = vpop.eup %5050  ;;  %v2101_v9 = vmul.f32 1.442695, %v2087_v24  ;;  %v1930_v30 = vadd.f32 %v6433_v7, %v1658_v60 }
 0x4ba   : > { %v2131_v53 = vpack.c.bf16 %v6589_v2, %v6587_v29  ;;  %v6596_v45 = vpop.eup %5052  ;;  %v1944_v26 = vpack.c.bf16 %v1925_v25, %v1896_v54 }
 0x4bb   : > { %5054 = vpow2.f32 %v2353_v40 }
 0x4bc   : > { %4602 = vmatmul.msk.bf16.gmra.mxu1 %vm2056_vm8, %v2131_v53  ;;  %5056 = vpow2.f32 %v2101_v9  ;;  %v2716_v59 = vunpack.c.h.b16 %v1944_v26  ;;  %v2466_v11 = vunpack.c.l.b16 %v1944_v26 }
 0x4be   : > { %v2080_v39 = vpop.xlane.xlu0 %2079 }
 0x4bf   : > { %v2088_v51 = vsub.f32 %v6522_v34, %v2080_v39  ;;  %v1922_v34 = vadd.f32 %v6421_v17, %v1658_v60  ;;  %v1897_v61 = vpop.f32.mrf.mxu1  ;;  %v1927_v17 = vadd.f32 %v6431_v19, %v1658_v60 }
 0x4c0   : > { %v1898_v13 = vadd.f32 %v1897_v61, %v1657_v0 }
 0x4c1   : > { %v6598_v12 = vpop.eup %5054  ;;  %v2103_v5 = vmul.f32 1.442695, %v2088_v51  ;;  %v1942_v8 = vpack.c.bf16 %v1922_v34, %v1893_v42 }
 0x4c2   : > { %v2382_v48 = vpack.c.bf16 %v6598_v12, %v6596_v45  ;;  %v6607_v4 = vpop.eup %5056  ;;  %v1946_v55 = vpack.c.bf16 %v1927_v17, %v1898_v13 }
 0x4c3   : > { %5058 = vpow2.f32 %v2103_v5  ;;  %v2715_v37 = vunpack.c.h.b16 %v1942_v8  ;;  %v2465_v57 = vunpack.c.l.b16 %v1942_v8 }
 0x4c4   : > { %4607 = vmatmul.msk.bf16.gmra.mxu3 %vm2056_vm8, %v2382_v48  ;;  %v2717_v43 = vunpack.c.h.b16 %v1946_v55  ;;  %v2467_v33 = vunpack.c.l.b16 %v1946_v55  ;;  %v1937_v48 = vadd.f32 %v6448_v63, %v1658_v60 }
 0x4c5   : > { %v2722_v14 = vpack.c.b16 %v2715_v37, %v2714_v49  ;;  %v2472_v21 = vpack.c.b16 %v2465_v57, %v2464_v6 }
 0x4c6   : > { %v2723_v16 = vpack.c.b16 %v2717_v43, %v2716_v59  ;;  %v2473_v24 = vpack.c.b16 %v2467_v33, %v2466_v11 }
 0x4c7   : > { %v1900_v22 = vpop.f32.mrf.mxu1 }
 0x4c8   : > { %v1901_v32 = vadd.f32 %v1900_v22, %v1657_v0 }
 0x4c9   : > { %v6610_v52 = vpop.eup %5058 }
 0x4ca   : > { %v2132_v62 = vpack.c.bf16 %v6610_v52, %v6607_v4  ;;  %v1948_v53 = vpack.c.bf16 %v1930_v30, %v1901_v32 }
 0x4cc   : > { %4603 = vmatmul.msk.bf16.gmra.mxu1 %vm2056_vm8, %v2132_v62  ;;  %v2718_v39 = vunpack.c.h.b16 %v1948_v53  ;;  %v2468_v34 = vunpack.c.l.b16 %v1948_v53 }
 0x4cf   : > { %v1902_v35 = vpop.f32.mrf.mxu1 }
 0x4d0   : > { %v1903_v19 = vadd.f32 %v1902_v35, %v1657_v0 }
 0x4d2   : > { %v1950_v38 = vpack.c.bf16 %v1932_v41, %v1903_v19 }
 0x4d4   : > { %2786 = vmatmul.bf16.vlgmr.msrb.gmra.mxu3 %v2722_v14  ;;  %v2719_v9 = vunpack.c.h.b16 %v1950_v38  ;;  %v2469_v18 = vunpack.c.l.b16 %v1950_v38 }
 0x4d6   : > { %v2724_v51 = vpack.c.b16 %v2719_v9, %v2718_v39  ;;  %v2474_v28 = vpack.c.b16 %v2469_v18, %v2468_v34 }
 0x4d7   : > { %v1905_v40 = vpop.f32.mrf.mxu1 }
 0x4d8   : > { %v1906_v7 = vadd.f32 %v1905_v40, %v1657_v0 }
 0x4da   : > { %v1952_v20 = vpack.c.bf16 %v1935_v10, %v1906_v7 }
 0x4dc   : > { %2536 = vmatmul.bf16.vlgmr.msra.gmra.mxu1 %v2472_v21  ;;  %v2720_v62 = vunpack.c.h.b16 %v1952_v20  ;;  %v2470_v37 = vunpack.c.l.b16 %v1952_v20 }
 0x4df   : > { %v1907_v5 = vpop.f32.mrf.mxu1 }
 0x4e0   : > { %v1908_v1 = vadd.f32 %v1907_v5, %v1657_v0 }
 0x4e2   : > { %v1954_v42 = vpack.c.bf16 %v1937_v48, %v1908_v1 }
 0x4e4   : > { %2791 = vmatmul.bf16.gmra.mxu3 %v2723_v16  ;;  %v2721_v8 = vunpack.c.h.b16 %v1954_v42  ;;  %v2471_v61 = vunpack.c.l.b16 %v1954_v42 }
 0x4e6   : > { %v2725_v46 = vpack.c.b16 %v2721_v8, %v2720_v62  ;;  %v2475_v49 = vpack.c.b16 %v2471_v61, %v2470_v37 }
 0x4ec   : > { %2541 = vmatmul.bf16.gmra.mxu1 %v2473_v24 }
 0x4f4   : > { %2796 = vmatmul.bf16.gmra.mxu3 %v2724_v51 }
 0x4fc   : > { %2546 = vmatmul.bf16.gmra.mxu1 %v2474_v28 }
 0x504   : > { %2801 = vmatmul.bf16.gmra.mxu3 %v2725_v46 }
 0x50c   : > { %2551 = vmatmul.bf16.gmra.mxu1 %v2475_v49 }
 0x517   : > { %v6621_v14 = vpop.f32.mrf.mxu3 }
 0x519   : > { %v6623_v63 = vpop.f32.mrf.mxu1 }
 0x51f   : > { %v6625_v17 = vpop.f32.mrf.mxu3 }
 0x521   : > { %v6627_v15 = vpop.f32.mrf.mxu1 }
 0x527   : > { %v6629_v60 = vpop.f32.mrf.mxu3 }
 0x529   : > { %v6631_v0 = vpop.f32.mrf.mxu1 }
 0x52f   : > { %v6633_v22 = vpop.f32.mrf.mxu3 }
 0x531   : > { %v6635_v57 = vpop.f32.mrf.mxu1 }
 0x537   : > { %v6637_v13 = vpop.f32.mrf.mxu3 }
 0x539   : > { %v6639_v25 = vpop.f32.mrf.mxu1 }
 0x53f   : > { %v6641_v6 = vpop.f32.mrf.mxu3 }
 0x541   : > { %v6643_v54 = vpop.f32.mrf.mxu1 }
 0x547   : > { %v6645_v55 = vpop.f32.mrf.mxu3 }
 0x549   : > { %v6647_v21 = vpop.f32.mrf.mxu1 }
 0x54f   : > { %v6649_v26 = vpop.f32.mrf.mxu3 }
 0x551   : > { %v6651_v43 = vpop.f32.mrf.mxu1 }
 0x557   : > { %v6653_v59 = vpop.f32.mrf.mxu3 }
 0x558   : > { %v2807_v19 = vsel %vm2056_vm8, %v6653_v59, -inf }
 0x559   : > { %v6655_v35 = vpop.f32.mrf.mxu1 }
 0x55a   : > { %v2557_v16 = vsel %vm2056_vm8, %v6655_v35, -inf }
 0x55b   : > { %2558 = vmax.xlane.f32.xlu2 %v2557_v16  ;;  %v2105_v16 = vsel %vm2056_vm8, %v6547_v50, 0.0  ;;  %v2123_v50 = vsel %vm2056_vm8, %v6607_v4, 0.0 }
 0x55f   : > { %v6659_v41 = vpop.f32.mrf.mxu3 }
 0x560   : > { %v2810_v38 = vsel %vm2056_vm8, %v6659_v41, -inf }
 0x561   : > { %v6661_v33 = vpop.f32.mrf.mxu1 }
 0x562   : > { %v2560_v30 = vsel %vm2056_vm8, %v6661_v33, -inf }
 0x563   : > { %2808 = vmax.xlane.f32.xlu2 %v2807_v19  ;;  %2561 = vmax.xlane.f32.xlu0 %v2560_v30  ;;  %v2108_v19 = vsel %vm2056_vm8, %v6549_v3, 0.0  ;;  %v2111_v30 = vsel %vm2056_vm8, %v6568_v23, 0.0  ;;  %v2126_v3 = vsel %vm2056_vm8, %v6610_v52, 0.0  ;;  %v2355_v23 = vsel %vm2056_vm8, %v6538_v58, 0.0 }
 0x567   : > { %v6667_v11 = vpop.f32.mrf.mxu3 }
 0x568   : > { %v2813_v9 = vsel %vm2056_vm8, %v6667_v11, -inf }
 0x569   : > { %v6669_v32 = vpop.f32.mrf.mxu1 }
 0x56a   : > { %v2563_v40 = vsel %vm2056_vm8, %v6669_v32, -inf }
 0x56b   : > { %2811 = vmax.xlane.f32.xlu0 %v2810_v38  ;;  %2564 = vmax.xlane.f32.xlu2 %v2563_v40  ;;  %v2114_v38 = vsel %vm2056_vm8, %v6570_v27, 0.0  ;;  %v2117_v40 = vsel %vm2056_vm8, %v6587_v29, 0.0  ;;  %v2358_v27 = vsel %vm2056_vm8, %v6540_v56, 0.0 }
 0x56f   : > { %v6675_v24 = vpop.f32.mrf.mxu3 }
 0x570   : > { %v2816_v48 = vsel %vm2056_vm8, %v6675_v24, -inf }
 0x571   : > { %v6677_v53 = vpop.f32.mrf.mxu1 }
 0x572   : > { %v2566_v39 = vsel %vm2056_vm8, %v6677_v53, -inf }
 0x573   : > { %2814 = vmax.xlane.f32.xlu2 %v2813_v9  ;;  %2567 = vmax.xlane.f32.xlu0 %v2566_v39  ;;  %v2120_v9 = vsel %vm2056_vm8, %v6589_v2, 0.0 }
 0x577   : > { %v6683_v51 = vpop.f32.mrf.mxu3 }
 0x578   : > { %v2819_v34 = vsel %vm2056_vm8, %v6683_v51, -inf }
 0x579   : > { %v6685_v5 = vpop.f32.mrf.mxu1 }
 0x57a   : > { %v2569_v18 = vsel %vm2056_vm8, %v6685_v5, -inf }
 0x57b   : > { %2817 = vmax.xlane.f32.xlu0 %v2816_v48  ;;  %2570 = vmax.xlane.f32.xlu2 %v2569_v18 }
 0x57f   : > { %v6691_v1 = vpop.f32.mrf.mxu3 }
 0x580   : > { %v2822_v20 = vsel %vm2056_vm8, %v6691_v1, -inf }
 0x581   : > { %v6693_v10 = vpop.f32.mrf.mxu1 }
 0x582   : > { %v2572_v7 = vsel %vm2056_vm8, %v6693_v10, -inf }
 0x583   : > { %2820 = vmax.xlane.f32.xlu2 %v2819_v34  ;;  %2573 = vmax.xlane.f32.xlu0 %v2572_v7 }
 0x587   : > { %v6699_v42 = vpop.f32.mrf.mxu3 }
 0x588   : > { %v2825_v61 = vsel %vm2056_vm8, %v6699_v42, -inf }
 0x589   : > { %v6701_v28 = vpop.f32.mrf.mxu1 }
 0x58a   : > { %v2575_v8 = vsel %vm2056_vm8, %v6701_v28, -inf }
 0x58b   : > { %2823 = vmax.xlane.f32.xlu0 %v2822_v20  ;;  %2576 = vmax.xlane.f32.xlu2 %v2575_v8 }
 0x58f   : > { %v6707_v62 = vpop.f32.mrf.mxu3 }
 0x590   : > { %v2828_v37 = vsel %vm2056_vm8, %v6707_v62, -inf }
 0x591   : > { %v6709_v46 = vpop.f32.mrf.mxu1 }
 0x592   : > { %v2578_v49 = vsel %vm2056_vm8, %v6709_v46, -inf }
 0x593   : > { %2826 = vmax.xlane.f32.xlu0 %v2825_v61  ;;  %2829 = vmax.xlane.f32.xlu2 %v2828_v37 }
 0x594   : > { %2579 = vmax.xlane.f32.xlu1 %v2578_v49 }
 0x59b   : > { %2106 = vadd.xlane.f32.xlu0 %v2105_v16  ;;  %2109 = vadd.xlane.f32.xlu2 %v2108_v19 }
 0x5a3   : > { %2112 = vadd.xlane.f32.xlu0 %v2111_v30  ;;  %2115 = vadd.xlane.f32.xlu2 %v2114_v38 }
 0x5ab   : > { %2118 = vadd.xlane.f32.xlu0 %v2117_v40  ;;  %2121 = vadd.xlane.f32.xlu2 %v2120_v9 }
 0x5b3   : > { %2124 = vadd.xlane.f32.xlu0 %v2123_v50  ;;  %2127 = vadd.xlane.f32.xlu2 %v2126_v3  ;;  %v4922_v50 = vld [vmem:[%s7364_s8 + $0x30] sm:$0xff] }
 0x5bb   : > { %2356 = vadd.xlane.f32.xlu0 %v2355_v23  ;;  %2359 = vadd.xlane.f32.xlu2 %v2358_v27 }
 0x5ce   : > { %v2559_v29 = vpop.xlane.xlu2 %2558 }
 0x5cf   : > { %v2581_v2 = vsub.f32 %v6655_v35, %v2559_v29 }
 0x5d1   : > { %v2589_v39 = vmul.f32 1.442695, %v2581_v2  ;;  %v2364_v2 = vsel %vm2056_vm8, %v6559_v31, 0.0  ;;  %v4920_v31 = vld [vmem:[%s7364_s8 + $0x20] sm:$0xff] }
 0x5d3   : > { %5060 = vpow2.f32 %v2589_v39 }
 0x5d6   : > { %v2809_v48 = vpop.xlane.xlu2 %2808  ;;  %v2562_v4 = vpop.xlane.xlu0 %2561 }
 0x5d7   : > { %v2582_v18 = vsub.f32 %v6661_v33, %v2562_v4  ;;  %v2831_v7 = vsub.f32 %v6653_v59, %v2809_v48  ;;  %v2361_v33 = vsel %vm2056_vm8, %v6557_v44, 0.0 }
 0x5d9   : > { %v5061_v52 = vpop.eup %5060  ;;  %v2591_v34 = vmul.f32 1.442695, %v2582_v18  ;;  %v2839_v56 = vmul.f32 1.442695, %v2831_v7 }
 0x5da   : > { %v2605_v58 = vsel %vm2056_vm8, %v5061_v52, 0.0 }
 0x5db   : > { %2606 = vadd.xlane.f32.xlu0 %v2605_v58  ;;  %5062 = vpow2.f32 %v2591_v34 }
 0x5dc   : > { %5064 = vpow2.f32 %v2839_v56 }
 0x5de   : > { %v2812_v20 = vpop.xlane.xlu0 %2811  ;;  %v2565_v8 = vpop.xlane.xlu2 %2564 }
 0x5df   : > { %v2832_v61 = vsub.f32 %v6659_v41, %v2812_v20  ;;  %v2583_v35 = vsub.f32 %v6669_v32, %v2565_v8  ;;  %v4923_v41 = vld [vmem:[%s7364_s8 + $0x38] sm:$0xff] }
 0x5e0   : > { %3232 = vmatpush.bf16.msra.mxu2 %v4923_v41  ;;  %v2367_v41 = vsel %vm2056_vm8, %v6578_v36, 0.0  ;;  %v4930_v36 = vld [vmem:[%s7364_s8 + $0x70] sm:$0xff] }
 0x5e1   : > { %v2841_v37 = vmul.f32 1.442695, %v2832_v61  ;;  %v2593_v49 = vmul.f32 1.442695, %v2583_v35  ;;  %v5063_v16 = vpop.eup %5062 }
 0x5e2   : > { %v2629_v19 = vpack.c.bf16 %v5063_v16, %v5061_v52  ;;  %v2608_v59 = vsel %vm2056_vm8, %v5063_v16, 0.0  ;;  %v5065_v40 = vpop.eup %5064  ;;  %v4918_v16 = vld [vmem:[%s7364_s8 + $0x10] sm:$0xff] }
 0x5e3   : > { %5066 = vpow2.f32 %v2841_v37  ;;  %2362 = vadd.xlane.f32.xlu0 %v2361_v33  ;;  %2609 = vadd.xlane.f32.xlu2 %v2608_v59  ;;  %v2855_v34 = vsel %vm2056_vm8, %v5065_v40, 0.0  ;;  %v4931_v33 = vld [vmem:[%s7364_s8 + $0x78] sm:$0xff] }
 0x5e4   : > { %5068 = vpow2.f32 %v2593_v49  ;;  %4608 = vmatmul.msk.bf16.vlgmr.msrb.gmra.mxu2 %vm2056_vm8, %v2629_v19  ;;  %3261 = vmatpush.bf16.msra.mxu3 %v4931_v33 }
 0x5e5   : > { %3233 = vmatpush.bf16.msra.mxu2 %v4922_v50 }
 0x5e6   : > { %v2815_v32 = vpop.xlane.xlu2 %2814  ;;  %v2568_v30 = vpop.xlane.xlu0 %2567 }
 0x5e7   : > { %v2584_v38 = vsub.f32 %v6677_v53, %v2568_v30  ;;  %v2833_v27 = vsub.f32 %v6667_v11, %v2815_v32  ;;  %v4921_v53 = vld [vmem:[%s7364_s8 + $0x28] sm:$0xff] }
 0x5e8   : > { %v4917_v32 = vld [vmem:[%s7364_s8 + $0x8] sm:$0xff]  ;;  %3262 = vmatpush.bf16.msra.mxu3 %v4930_v36 }
 0x5e9   : > { %v5067_v44 = vpop.eup %5066  ;;  %v2595_v9 = vmul.f32 1.442695, %v2584_v38  ;;  %v2843_v39 = vmul.f32 1.442695, %v2833_v27  ;;  %3234 = vmatpush.bf16.msra.mxu2 %v4921_v53  ;;  %v2370_v27 = vsel %vm2056_vm8, %v6580_v47, 0.0 }
 0x5ea   : > { %v5069_v3 = vpop.eup %5068  ;;  %v2879_v23 = vpack.c.bf16 %v5067_v44, %v5065_v40 }
 0x5eb   : > { %v2611_v29 = vsel %vm2056_vm8, %v5069_v3, 0.0  ;;  %5070 = vpow2.f32 %v2595_v9  ;;  %2365 = vadd.xlane.f32.xlu2 %v2364_v2 }
 0x5ec   : > { %2612 = vadd.xlane.f32.xlu0 %v2611_v29  ;;  %4612 = vmatmul.msk.bf16.vlgmr.msrb.gmra.mxu1 %vm2056_vm8, %v2879_v23  ;;  %5072 = vpow2.f32 %v2843_v39 }
 0x5ed   : > { %3235 = vmatpush.bf16.msra.mxu2 %v4920_v31 }
 0x5ee   : > { %v2818_v48 = vpop.xlane.xlu0 %2817  ;;  %v2571_v4 = vpop.xlane.xlu2 %2570 }
 0x5ef   : > { %v2834_v11 = vsub.f32 %v6675_v24, %v2818_v48  ;;  %v2585_v7 = vsub.f32 %v6685_v5, %v2571_v4  ;;  %v4919_v24 = vld [vmem:[%s7364_s8 + $0x18] sm:$0xff]  ;;  %v4928_v4 = vld [vmem:[%s7364_s8 + $0x60] sm:$0xff] }
 0x5f1   : > { %v2845_v18 = vmul.f32 1.442695, %v2834_v11  ;;  %v5071_v52 = vpop.eup %5070  ;;  %v2597_v61 = vmul.f32 1.442695, %v2585_v7  ;;  %3236 = vmatpush.bf16.msra.mxu2 %v4919_v24 }
 0x5f2   : > { %v2614_v58 = vsel %vm2056_vm8, %v5071_v52, 0.0  ;;  %v2630_v56 = vpack.c.bf16 %v5071_v52, %v5069_v3  ;;  %v5073_v37 = vpop.eup %5072  ;;  %v4929_v3 = vld [vmem:[%s7364_s8 + $0x68] sm:$0xff] }
 0x5f3   : > { %5074 = vpow2.f32 %v2845_v18  ;;  %2615 = vadd.xlane.f32.xlu2 %v2614_v58  ;;  %3263 = vmatpush.bf16.msra.mxu3 %v4929_v3 }
 0x5f4   : > { %2856 = vadd.xlane.f32.xlu0 %v2855_v34  ;;  %4609 = vmatmul.msk.bf16.gmra.mxu2 %vm2056_vm8, %v2630_v56  ;;  %5076 = vpow2.f32 %v2597_v61 }
 0x5f5   : > { %3237 = vmatpush.bf16.msra.mxu2 %v4918_v16 }
 0x5f6   : > { %v2821_v20 = vpop.xlane.xlu2 %2820  ;;  %v2574_v8 = vpop.xlane.xlu0 %2573 }
 0x5f7   : > { %v2586_v35 = vsub.f32 %v6693_v10, %v2574_v8  ;;  %v2835_v19 = vsub.f32 %v6683_v51, %v2821_v20  ;;  %v2858_v10 = vsel %vm2056_vm8, %v5067_v44, 0.0  ;;  %v4916_v44 = vld [vmem:[%s7364_s8] sm:$0xff]  ;;  %3264 = vmatpush.bf16.msra.mxu3 %v4928_v4 }
 0x5f9   : > { %v5075_v5 = vpop.eup %5074  ;;  %v2599_v49 = vmul.f32 1.442695, %v2586_v35  ;;  %v2847_v30 = vmul.f32 1.442695, %v2835_v19  ;;  %3238 = vmatpush.bf16.msra.mxu2 %v4917_v32  ;;  %v2373_v32 = vsel %vm2056_vm8, %v6596_v45, 0.0  ;;  %v2376_v45 = vsel %vm2056_vm8, %v6598_v12, 0.0 }
 0x5fa   : > { %v2880_v59 = vpack.c.bf16 %v5075_v5, %v5073_v37  ;;  %v5077_v9 = vpop.eup %5076  ;;  %v2864_v24 = vsel %vm2056_vm8, %v5075_v5, 0.0 }
 0x5fb   : > { %5078 = vpow2.f32 %v2599_v49  ;;  %2859 = vadd.xlane.f32.xlu2 %v2858_v10  ;;  %v2617_v56 = vsel %vm2056_vm8, %v5077_v9, 0.0  ;;  %v4925_v49 = vld [vmem:[%s7364_s8 + $0x48] sm:$0xff] }
 0x5fc   : > { %2368 = vadd.xlane.f32.xlu0 %v2367_v41  ;;  %4613 = vmatmul.msk.bf16.gmra.mxu1 %vm2056_vm8, %v2880_v59  ;;  %5080 = vpow2.f32 %v2847_v30  ;;  %v4924_v41 = vld [vmem:[%s7364_s8 + $0x40] sm:$0xff] }
 0x5fd   : > { %3239 = vmatpush.bf16.msra.mxu2 %v4916_v44 }
 0x5fe   : > { %v2824_v51 = vpop.xlane.xlu0 %2823  ;;  %v2577_v38 = vpop.xlane.xlu2 %2576 }
 0x5ff   : > { %v2836_v40 = vsub.f32 %v6691_v1, %v2824_v51  ;;  %v2861_v1 = vsel %vm2056_vm8, %v5073_v37, 0.0  ;;  %v2587_v2 = vsub.f32 %v6701_v28, %v2577_v38  ;;  %v4927_v28 = vld [vmem:[%s7364_s8 + $0x58] sm:$0xff] }
 0x600   : > { %3265 = vmatpush.bf16.msra.mxu3 %v4927_v28 }
 0x601   : > { %v2849_v50 = vmul.f32 1.442695, %v2836_v40  ;;  %v5079_v23 = vpop.eup %5078  ;;  %v2601_v18 = vmul.f32 1.442695, %v2587_v2 }
 0x602   : > { %v2631_v29 = vpack.c.bf16 %v5079_v23, %v5077_v9  ;;  %v5081_v11 = vpop.eup %5080  ;;  %v2620_v5 = vsel %vm2056_vm8, %v5079_v23, 0.0 }
 0x603   : > { %5082 = vpow2.f32 %v2849_v50  ;;  %2371 = vadd.xlane.f32.xlu2 %v2370_v27  ;;  %v2867_v37 = vsel %vm2056_vm8, %v5081_v11, 0.0 }
 0x604   : > { %2862 = vadd.xlane.f32.xlu0 %v2861_v1  ;;  %4610 = vmatmul.msk.bf16.gmra.mxu2 %vm2056_vm8, %v2631_v29  ;;  %5084 = vpow2.f32 %v2601_v18 }
 0x606   : > { %v2827_v53 = vpop.xlane.xlu0 %2826  ;;  %v2830_v39 = vpop.xlane.xlu2 %2829 }
 0x607   : > { %v2580_v48 = vpop.xlane.xlu1 %2579  ;;  %v2837_v52 = vsub.f32 %v6699_v42, %v2827_v53  ;;  %v2838_v34 = vsub.f32 %v6707_v62, %v2830_v39  ;;  %v4926_v62 = vld [vmem:[%s7364_s8 + $0x50] sm:$0xff] }
 0x608   : > { %v2588_v47 = vsub.f32 %v6709_v46, %v2580_v48  ;;  %3266 = vmatpush.bf16.msra.mxu3 %v4926_v62  ;;  %v4943_v62 = vld [vmem:[%s7364_s8 + $0xd8] sm:$0xff] }
 0x609   : > { %v5083_v31 = vpop.eup %5082  ;;  %v2851_v46 = vmul.f32 1.442695, %v2837_v52  ;;  %v2853_v42 = vmul.f32 1.442695, %v2838_v34 }
 0x60a   : > { %v2603_v7 = vmul.f32 1.442695, %v2588_v47  ;;  %v2881_v58 = vpack.c.bf16 %v5083_v31, %v5081_v11  ;;  %v5085_v61 = vpop.eup %5084  ;;  %v2870_v30 = vsel %vm2056_vm8, %v5083_v31, 0.0  ;;  %v4939_v47 = vld [vmem:[%s7364_s8 + $0xb8] sm:$0xff] }
 0x60b   : > { %2865 = vadd.xlane.f32.xlu2 %v2864_v24  ;;  %v2623_v29 = vsel %vm2056_vm8, %v5085_v61, 0.0  ;;  %3290 = vmatpush.bf16.msra.mxu1 %v4939_v47 }
 0x60c   : > { %2618 = vadd.xlane.f32.xlu0 %v2617_v56  ;;  %5086 = vpow2.f32 %v2603_v7  ;;  %4614 = vmatmul.msk.bf16.gmra.mxu1 %vm2056_vm8, %v2881_v58 }
 0x60d   : > { %5088 = vpow2.f32 %v2851_v46  ;;  %3267 = vmatpush.bf16.msra.mxu3 %v4925_v49  ;;  %v4936_v46 = vld [vmem:[%s7364_s8 + $0xa0] sm:$0xff]  ;;  %v4942_v49 = vld [vmem:[%s7364_s8 + $0xd0] sm:$0xff] }
 0x60e   : > { %v2107_v20 = vpop.xlane.xlu0 %2106  ;;  %v2110_v8 = vpop.xlane.xlu2 %2109  ;;  %5090 = vpow2.f32 %v2853_v42  ;;  %v4945_v42 = vld [vmem:[%s7364_s8 + $0xe8] sm:$0xff] }
 0x60f   : > { %5092 = vrcp.f32 %v2107_v20  ;;  %v4935_v20 = vld [vmem:[%s7364_s8 + $0x98] sm:$0xff] }
 0x610   : > { %5094 = vrcp.f32 %v2110_v8 }
 0x611   : > { %3268 = vmatpush.bf16.msra.mxu3 %v4924_v41 }
 0x612   : > { %v5087_v35 = vpop.eup %5086 }
 0x613   : > { %2621 = vadd.xlane.f32.xlu2 %v2620_v5  ;;  %v2632_v16 = vpack.c.bf16 %v5087_v35, %v5085_v61  ;;  %v5089_v59 = vpop.eup %5088  ;;  %v2626_v4 = vsel %vm2056_vm8, %v5087_v35, 0.0 }
 0x614   : > { %2868 = vadd.xlane.f32.xlu0 %v2867_v37  ;;  %v5091_v10 = vpop.eup %5090  ;;  %v2873_v3 = vsel %vm2056_vm8, %v5089_v59, 0.0  ;;  %v4933_v37 = vld [vmem:[%s7364_s8 + $0x88] sm:$0xff] }
 0x615   : > { %4611 = vmatmul.msk.bf16.gmra.mxu2 %vm2056_vm8, %v2632_v16  ;;  %v2882_v51 = vpack.c.bf16 %v5091_v10, %v5089_v59  ;;  %v5093_v38 = vpop.eup %5092  ;;  %v2876_v2 = vsel %vm2056_vm8, %v5091_v10, 0.0  ;;  %v4941_v59 = vld [vmem:[%s7364_s8 + $0xc8] sm:$0xff] }
 0x616   : > { %v2113_v33 = vpop.xlane.xlu0 %2112  ;;  %v2116_v19 = vpop.xlane.xlu2 %2115  ;;  %v2206_v9 = vmul.f32 %v5093_v38, %v6623_v63 }
 0x617   : > { %v5095_v40 = vpop.eup %5094  ;;  %5096 = vrcp.f32 %v2113_v33 }
 0x618   : > { %v2207_v50 = vmul.f32 %v5095_v40, %v6627_v15  ;;  %5098 = vrcp.f32 %v2116_v19  ;;  %v4932_v19 = vld [vmem:[%s7364_s8 + $0x80] sm:$0xff] }
 0x61a   : > { %v2956_v23 = vpack.c.bf16 %v2207_v50, %v2206_v9 }
 0x61b   : > { %2871 = vadd.xlane.f32.xlu2 %v2870_v30 }
 0x61c   : > { %2374 = vadd.xlane.f32.xlu0 %v2373_v32  ;;  %4615 = vmatmul.msk.bf16.gmra.mxu1 %vm2056_vm8, %v2882_v51 }
 0x61d   : > { %v5097_v63 = vpop.eup %5096 }
 0x61e   : > { %v2119_v36 = vpop.xlane.xlu0 %2118  ;;  %v2122_v44 = vpop.xlane.xlu2 %2121  ;;  %v2208_v12 = vmul.f32 %v5097_v63, %v6631_v0  ;;  %v4938_v0 = vld [vmem:[%s7364_s8 + $0xb0] sm:$0xff] }
 0x61f   : > { %v5099_v15 = vpop.eup %5098  ;;  %3291 = vmatpush.bf16.msra.mxu1 %v4938_v0 }
 0x620   : > { %v2209_v48 = vmul.f32 %v5099_v15, %v6635_v57  ;;  %v4947_v57 = vld [vmem:[%s7364_s8 + $0xf8] sm:$0xff] }
 0x621   : > { %3319 = vmatpush.bf16.msrb.mxu2 %v4947_v57 }
 0x622   : > { %v2960_v11 = vpack.c.bf16 %v2209_v48, %v2208_v12 }
 0x623   : > { %2377 = vadd.xlane.f32.xlu2 %v2376_v45 }
 0x624   : > { %2874 = vadd.xlane.f32.xlu0 %v2873_v3 }
 0x625   : > { %3240 = vmatmul.bf16.vlgmr.msra.gmra.mxu2 %v2956_v23 }
 0x626   : > { %v2125_v1 = vpop.xlane.xlu0 %2124  ;;  %v2128_v27 = vpop.xlane.xlu2 %2127 }
 0x62b   : > { %2877 = vadd.xlane.f32.xlu2 %v2876_v2 }
 0x62c   : > { %2624 = vadd.xlane.f32.xlu0 %v2623_v29 }
 0x62e   : > { %v2357_v53 = vpop.xlane.xlu0 %2356  ;;  %v2360_v39 = vpop.xlane.xlu2 %2359 }
 0x62f   : > { %5100 = vrcp.f32 %v2357_v53 }
 0x630   : > { %5102 = vrcp.f32 %v2360_v39 }
 0x631   : > { %5104 = vrcp.f32 %v2119_v36 }
 0x632   : > { %5106 = vrcp.f32 %v2122_v44 }
 0x633   : > { %2627 = vadd.xlane.f32.xlu2 %v2626_v4  ;;  %5108 = vrcp.f32 %v2125_v1 }
 0x634   : > { %5110 = vrcp.f32 %v2128_v27 }
 0x635   : > { %v5101_v18 = vpop.eup %5100  ;;  %3245 = vmatmul.bf16.gmra.mxu2 %v2960_v11 }
 0x636   : > { %v5103_v31 = vpop.eup %5102  ;;  %v2448_v52 = vmul.f32 %v5101_v18, %v6621_v14  ;;  %v4937_v14 = vld [vmem:[%s7364_s8 + $0xa8] sm:$0xff] }
 0x637   : > { %v2449_v28 = vmul.f32 %v5103_v31, %v6625_v17  ;;  %v5105_v7 = vpop.eup %5104  ;;  %3292 = vmatpush.bf16.msra.mxu1 %v4937_v14  ;;  %v4946_v17 = vld [vmem:[%s7364_s8 + $0xf0] sm:$0xff] }
 0x638   : > { %v5107_v58 = vpop.eup %5106  ;;  %v2210_v56 = vmul.f32 %v5105_v7, %v6639_v25  ;;  %3320 = vmatpush.bf16.msrb.mxu2 %v4946_v17  ;;  %v4944_v25 = vld [vmem:[%s7364_s8 + $0xe0] sm:$0xff] }
 0x639   : > { %v2957_v34 = vpack.c.bf16 %v2449_v28, %v2448_v52  ;;  %v2211_v24 = vmul.f32 %v5107_v58, %v6643_v54  ;;  %v4934_v54 = vld [vmem:[%s7364_s8 + $0x90] sm:$0xff]  ;;  %v5109_v61 = vpop.eup %5108 }
 0x63a   : > { %v5111_v35 = vpop.eup %5110  ;;  %v2212_v16 = vmul.f32 %v5109_v61, %v6647_v21  ;;  %v4940_v21 = vld [vmem:[%s7364_s8 + $0xc0] sm:$0xff] }
 0x63b   : > { %3269 = vmatmul.bf16.vlgmr.msra.gmra.mxu3 %v2957_v34  ;;  %3293 = vmatpush.bf16.msra.mxu1 %v4936_v46  ;;  %v2964_v8 = vpack.c.bf16 %v2211_v24, %v2210_v56  ;;  %v2213_v33 = vmul.f32 %v5111_v35, %v6651_v43 }
 0x63c   : > { %3321 = vmatpush.bf16.msrb.mxu2 %v4945_v42 }
 0x63d   : > { %v2968_v41 = vpack.c.bf16 %v2213_v33, %v2212_v16 }
 0x63f   : > { %3294 = vmatpush.bf16.msra.mxu1 %v4935_v20 }
 0x640   : > { %3322 = vmatpush.bf16.msrb.mxu2 %v4944_v25 }
 0x643   : > { %3295 = vmatpush.bf16.msra.mxu1 %v4934_v54 }
 0x644   : > { %3323 = vmatpush.bf16.msrb.mxu2 %v4943_v62 }
 0x645   : > { %3250 = vmatmul.bf16.gmra.mxu2 %v2964_v8 }
 0x647   : > { %3296 = vmatpush.bf16.msra.mxu1 %v4933_v37 }
 0x648   : > { %3324 = vmatpush.bf16.msrb.mxu2 %v4942_v49 }
 0x64b   : > { %3297 = vmatpush.bf16.msra.mxu1 %v4932_v19 }
 0x64c   : > { %3325 = vmatpush.bf16.msrb.mxu2 %v4941_v59 }
 0x64e   : > { %v2607_v5 = vpop.xlane.xlu0 %2606 }
 0x650   : > { %3326 = vmatpush.bf16.msrb.mxu2 %v4940_v21 }
 0x655   : > { %3255 = vmatmul.bf16.gmra.mxu2 %v2968_v41 }
 0x656   : > { %v2363_v10 = vpop.xlane.xlu0 %2362  ;;  %v2610_v32 = vpop.xlane.xlu2 %2609 }
 0x657   : > { %5112 = vrcp.f32 %v2363_v10 }
 0x65d   : > { %v5113_v51 = vpop.eup %5112 }
 0x65e   : > { %v2366_v30 = vpop.xlane.xlu2 %2365  ;;  %v2450_v9 = vmul.f32 %v5113_v51, %v6629_v60 }
 0x65f   : > { %v2613_v43 = vpop.xlane.xlu0 %2612  ;;  %5114 = vrcp.f32 %v2366_v30 }
 0x660   : > { %5116 = vrcp.f32 %v2607_v5 }
 0x661   : > { %5118 = vrcp.f32 %v2610_v32 }
 0x665   : > { %v5115_v38 = vpop.eup %5114 }
 0x666   : > { %v2616_v36 = vpop.xlane.xlu2 %2615  ;;  %v2451_v50 = vmul.f32 %v5115_v38, %v6633_v22  ;;  %v5117_v23 = vpop.eup %5116 }
 0x667   : > { %v2857_v40 = vpop.xlane.xlu0 %2856  ;;  %v2678_v44 = vpop.f32.mrf.mxu2 }
 0x668   : > { %v2961_v45 = vpack.c.bf16 %v2451_v50, %v2450_v9  ;;  %5120 = vrcp.f32 %v2857_v40  ;;  %v5119_v29 = vpop.eup %5118  ;;  %v2706_v63 = vmul.f32 %v5117_v23, %v2678_v44 }
 0x669   : > { %v2920_v3 = vpop.f32.mrf.mxu1 }
 0x66a   : > { %3274 = vmatmul.bf16.gmra.mxu3 %v2961_v45 }
 0x66e   : > { %v2860_v27 = vpop.xlane.xlu2 %2859  ;;  %v5121_v12 = vpop.eup %5120 }
 0x66f   : > { %v2369_v1 = vpop.xlane.xlu0 %2368  ;;  %v2680_v2 = vpop.f32.mrf.mxu2  ;;  %5122 = vrcp.f32 %v2860_v27  ;;  %v2948_v4 = vmul.f32 %v5121_v12, %v2920_v3 }
 0x670   : > { %v2707_v15 = vmul.f32 %v5119_v29, %v2680_v2  ;;  %5124 = vrcp.f32 %v2369_v1 }
 0x671   : > { %v2922_v53 = vpop.f32.mrf.mxu1  ;;  %5126 = vrcp.f32 %v2613_v43 }
 0x672   : > { %v2958_v39 = vpack.c.bf16 %v2707_v15, %v2706_v63 }
 0x674   : > { %3298 = vmatmul.bf16.vlgmr.msra.gmra.mxu1 %v2958_v39 }
 0x675   : > { %v5123_v60 = vpop.eup %5122 }
 0x676   : > { %v2372_v48 = vpop.xlane.xlu2 %2371  ;;  %v2949_v11 = vmul.f32 %v5123_v60, %v2922_v53  ;;  %v5125_v52 = vpop.eup %5124 }
 0x677   : > { %v2863_v22 = vpop.xlane.xlu0 %2862  ;;  %v2683_v18 = vpop.f32.mrf.mxu2  ;;  %5128 = vrcp.f32 %v2372_v48  ;;  %v2452_v58 = vmul.f32 %v5125_v52, %v6637_v13 }
 0x678   : > { %5130 = vrcp.f32 %v2616_v36  ;;  %v2959_v47 = vpack.c.bf16 %v2949_v11, %v2948_v4  ;;  %v5127_v28 = vpop.eup %5126 }
 0x679   : > { %v2925_v31 = vpop.f32.mrf.mxu1  ;;  %5132 = vrcp.f32 %v2863_v22  ;;  %v2708_v56 = vmul.f32 %v5127_v28, %v2683_v18 }
 0x67a   : > { %3327 = vmatmul.bf16.vlgmr.msrb.gmra.mxu2 %v2959_v47 }
 0x67d   : > { %v5129_v0 = vpop.eup %5128 }
 0x67e   : > { %v2866_v34 = vpop.xlane.xlu2 %2865  ;;  %v5131_v14 = vpop.eup %5130  ;;  %v2453_v17 = vmul.f32 %v5129_v0, %v6641_v6 }
 0x67f   : > { %v2619_v57 = vpop.xlane.xlu0 %2618  ;;  %v2685_v7 = vpop.f32.mrf.mxu2  ;;  %5134 = vrcp.f32 %v2866_v34 }
 0x680   : > { %v2709_v24 = vmul.f32 %v5131_v14, %v2685_v7  ;;  %v2965_v42 = vpack.c.bf16 %v2453_v17, %v2452_v58  ;;  %v5133_v8 = vpop.eup %5132  ;;  %5136 = vrcp.f32 %v2619_v57  ;;  %v6906_v7 = vld [vmem:[%s7365_s9] ss:$0 sm:$0xff] }
 0x681   : > { %v2927_v46 = vpop.f32.mrf.mxu1  ;;  %v2950_v61 = vmul.f32 %v5133_v8, %v2925_v31 }
 0x682   : > { %v2962_v20 = vpack.c.bf16 %v2709_v24, %v2708_v56  ;;  %3279 = vmatmul.bf16.gmra.mxu3 %v2965_v42 }
 0x684   : > { %3303 = vmatmul.bf16.gmra.mxu1 %v2962_v20 }
 0x685   : > { %v5135_v25 = vpop.eup %5134 }
 0x686   : > { %v2622_v62 = vpop.xlane.xlu2 %2621  ;;  %v2951_v35 = vmul.f32 %v5135_v25, %v2927_v46  ;;  %v5137_v6 = vpop.eup %5136 }
 0x687   : > { %v2869_v54 = vpop.xlane.xlu0 %2868  ;;  %v2688_v37 = vpop.f32.mrf.mxu2  ;;  %5138 = vrcp.f32 %v2622_v62 }
 0x688   : > { %v2963_v5 = vpack.c.bf16 %v2951_v35, %v2950_v61  ;;  %5140 = vrcp.f32 %v2869_v54  ;;  %v2710_v59 = vmul.f32 %v5137_v6, %v2688_v37  ;;  %v5189_v54 = vld [vmem:[%s5332_s29] sm:$0xff] }
 0x689   : > { %v2930_v13 = vpop.f32.mrf.mxu1 }
 0x68a   : > { %3332 = vmatmul.bf16.gmra.mxu2 %v2963_v5 }
 0x68d   : > { %v5139_v33 = vpop.eup %5138 }
 0x68e   : > { %v2872_v16 = vpop.xlane.xlu2 %2871  ;;  %v5141_v21 = vpop.eup %5140 }
 0x68f   : > { %v2375_v49 = vpop.xlane.xlu0 %2374  ;;  %v2690_v19 = vpop.f32.mrf.mxu2  ;;  %5142 = vrcp.f32 %v2872_v16  ;;  %v2952_v51 = vmul.f32 %v5141_v21, %v2930_v13  ;;  %v5190_v16 = vld [vmem:[%s5332_s29 + $0x8] sm:$0xff] }
 0x690   : > { %v2711_v41 = vmul.f32 %v5139_v33, %v2690_v19  ;;  %5144 = vrcp.f32 %v2375_v49 }
 0x691   : > { %v2932_v32 = vpop.f32.mrf.mxu1 }
 0x692   : > { %v2966_v10 = vpack.c.bf16 %v2711_v41, %v2710_v59 }
 0x694   : > { %3308 = vmatmul.bf16.gmra.mxu1 %v2966_v10 }
 0x695   : > { %v5143_v43 = vpop.eup %5142 }
 0x696   : > { %v2378_v30 = vpop.xlane.xlu2 %2377  ;;  %v2953_v38 = vmul.f32 %v5143_v43, %v2932_v32  ;;  %v5145_v9 = vpop.eup %5144 }
 0x697   : > { %v2875_v40 = vpop.xlane.xlu0 %2874  ;;  %5146 = vrcp.f32 %v2378_v30  ;;  %v2454_v23 = vmul.f32 %v5145_v9, %v6645_v55 }
 0x698   : > { %v2967_v36 = vpack.c.bf16 %v2953_v38, %v2952_v51  ;;  %v2693_v44 = vpop.f32.mrf.mxu2  ;;  %5148 = vrcp.f32 %v2875_v40  ;;  %v5191_v51 = vld [vmem:[%s5332_s29 + $0x10] sm:$0xff] }
 0x699   : > { %v2935_v50 = vpop.f32.mrf.mxu1 }
 0x69a   : > { %3337 = vmatmul.bf16.gmra.mxu2 %v2967_v36 }
 0x69d   : > { %v5147_v3 = vpop.eup %5146 }
 0x69e   : > { %v2878_v45 = vpop.xlane.xlu2 %2877  ;;  %v2455_v1 = vmul.f32 %v5147_v3, %v6649_v26  ;;  %v5149_v2 = vpop.eup %5148 }
 0x69f   : > { %5150 = vrcp.f32 %v2878_v45  ;;  %v2625_v29 = vpop.xlane.xlu0 %2624  ;;  %v2954_v12 = vmul.f32 %v5149_v2, %v2935_v50 }
 0x6a0   : > { %v2969_v27 = vpack.c.bf16 %v2455_v1, %v2454_v23  ;;  %5152 = vrcp.f32 %v2625_v29  ;;  %v2695_v63 = vpop.f32.mrf.mxu2 }
 0x6a1   : > { %v2937_v53 = vpop.f32.mrf.mxu1 }
 0x6a2   : > { %3284 = vmatmul.bf16.gmra.mxu3 %v2969_v27  ;;  %v5192_v27 = vld [vmem:[%s5332_s29 + $0x18] sm:$0xff] }
 0x6a5   : > { %v5151_v15 = vpop.eup %5150 }
 0x6a6   : > { %v2628_v39 = vpop.xlane.xlu2 %2627  ;;  %v2955_v60 = vmul.f32 %v5151_v15, %v2937_v53  ;;  %v5153_v48 = vpop.eup %5152 }
 0x6a7   : > { %5154 = vrcp.f32 %v2628_v39  ;;  %v2712_v55 = vmul.f32 %v5153_v48, %v2693_v44 }
 0x6a8   : > { %v2971_v22 = vpack.c.bf16 %v2955_v60, %v2954_v12  ;;  %v3241_v26 = vpop.f32.mrf.mxu2 }
 0x6a9   : > { %v3242_v17 = vadd.f32 %v6906_v7, %v3241_v26 }
 0x6aa   : > { %3342 = vmatmul.bf16.gmra.mxu2 %v2971_v22  ;;  %v5193_v22 = vld [vmem:[%s5332_s29 + $0x20] sm:$0xff] }
 0x6ad   : > { %v5155_v4 = vpop.eup %5154 }
 0x6ae   : > { %v2713_v11 = vmul.f32 %v5155_v4, %v2695_v63 }
 0x6b0   : > { %v2970_v18 = vpack.c.bf16 %v2713_v11, %v2712_v55  ;;  %v3243_v47 = vpop.f32.mrf.mxu2 }
 0x6b1   : > { %v3244_v25 = vadd.f32 %v6906_v7, %v3243_v47 }
 0x6b2   : > { %3313 = vmatmul.bf16.gmra.mxu1 %v2970_v18 }
 0x6b8   : > { %v3246_v31 = vpop.f32.mrf.mxu2 }
 0x6b9   : > { %v3247_v49 = vadd.f32 %v6906_v7, %v3246_v31 }
 0x6be   : > { %v3270_v34 = vpop.f32.mrf.mxu3 }
 0x6bf   : > { %v3271_v24 = vadd.f32 %v3270_v34, %v3242_v17 }
 0x6c0   : > { %v3248_v52 = vpop.f32.mrf.mxu2 }
 0x6c1   : > { %v3249_v30 = vadd.f32 %v6906_v7, %v3248_v52  ;;  %v5194_v52 = vld [vmem:[%s5332_s29 + $0x28] sm:$0xff] }
 0x6c6   : > { %v3272_v46 = vpop.f32.mrf.mxu3 }
 0x6c7   : > { %v3273_v61 = vadd.f32 %v3272_v46, %v3244_v25 }
 0x6c8   : > { %v3251_v28 = vpop.f32.mrf.mxu2 }
 0x6c9   : > { %v3252_v1 = vadd.f32 %v6906_v7, %v3251_v28 }
 0x6d0   : > { %v3253_v0 = vpop.f32.mrf.mxu2 }
 0x6d1   : > { %v3254_v60 = vadd.f32 %v6906_v7, %v3253_v0 }
 0x6d8   : > { %v6901_v57 = vpop.f32.mrf.mxu2 }
 0x6d9   : > { %v3257_v34 = vadd.f32 %v6906_v7, %v6901_v57 }
 0x6e0   : > { %v6908_v58 = vpop.f32.mrf.mxu2 }
 0x6ed   : > { %v3275_v35 = vpop.f32.mrf.mxu3 }
 0x6ee   : > { %v3276_v59 = vadd.f32 %v3275_v35, %v3247_v49  ;;  %v4954_v49 = vld [vmem:[%s7368_s12 + $0x30] sm:$0xff] }
 0x6f1   : > { %v3299_v14 = vpop.f32.mrf.mxu1 }
 0x6f2   : > { %v3300_v42 = vadd.f32 %v3299_v14, %v3271_v24 }
 0x6f5   : > { %v3277_v41 = vpop.f32.mrf.mxu3 }
 0x6f6   : > { %v3278_v36 = vadd.f32 %v3277_v41, %v3249_v30  ;;  %v4951_v41 = vld [vmem:[%s7368_s12 + $0x18] sm:$0xff]  ;;  %v4949_v30 = vld [vmem:[%s7368_s12 + $0x8] sm:$0xff] }
 0x6f9   : > { %v3301_v56 = vpop.f32.mrf.mxu1 }
 0x6fa   : > { %v3302_v5 = vadd.f32 %v3301_v56, %v3273_v61 }
 0x6fd   : > { %v3328_v20 = vpop.f32.mrf.mxu2 }
 0x6fe   : > { %v3329_v8 = vadd.f32 %v3328_v20, %v3300_v42  ;;  %v3259_v20 = vadd.f32 %v6906_v7, %v6908_v58  ;;  %v4955_v58 = vld [vmem:[%s7368_s12 + $0x38] sm:$0xff] }
 0x6ff   : > { %3628 = vmatpush.bf16.msrb.mxu3 %v4955_v58 }
 0x700   : > { %v6913_v62 = vadd.f32 %v5189_v54, %v3329_v8  ;;  %v5195_v8 = vld [vmem:[%s5332_s29 + $0x30] sm:$0xff] }
 0x701   : > { %v3304_v37 = vpop.f32.mrf.mxu1 }
 0x702   : > { %3358 = vadd.xlane.f32.xlu0 %v6913_v62  ;;  %v3374_v19 = vmul.f32 %v6913_v62, %v6913_v62  ;;  %v3305_v10 = vadd.f32 %v3304_v37, %v3276_v59 }
 0x703   : > { %3629 = vmatpush.bf16.msrb.mxu3 %v4954_v49  ;;  %v7025_v49 = vld [vmem:[%s7366_s10] ss:$0 sm:$0xff] }
 0x705   : > { %v3330_v13 = vpop.f32.mrf.mxu2  ;;  %v3280_v50 = vpop.f32.mrf.mxu3 }
 0x706   : > { %v3331_v6 = vadd.f32 %v3330_v13, %v3302_v5  ;;  %v3281_v2 = vadd.f32 %v3280_v50, %v3252_v1  ;;  %v5196_v13 = vld [vmem:[%s5332_s29 + $0x38] sm:$0xff] }
 0x708   : > { %v6918_v33 = vadd.f32 %v5190_v16, %v3331_v6  ;;  %v4953_v16 = vld [vmem:[%s7368_s12 + $0x28] sm:$0xff] }
 0x709   : > { %v3306_v32 = vpop.f32.mrf.mxu1  ;;  %3630 = vmatpush.bf16.msrb.mxu3 %v4953_v16 }
 0x70a   : > { %3382 = vadd.xlane.f32.xlu0 %v3374_v19  ;;  %3360 = vadd.xlane.f32.xlu2 %v6918_v33  ;;  %v3375_v40 = vmul.f32 %v6918_v33, %v6918_v33  ;;  %v3307_v9 = vadd.f32 %v3306_v32, %v3278_v36  ;;  %v4952_v19 = vld [vmem:[%s7368_s12 + $0x20] sm:$0xff] }
 0x70d   : > { %v3333_v21 = vpop.f32.mrf.mxu2  ;;  %v3282_v12 = vpop.f32.mrf.mxu3  ;;  %3631 = vmatpush.bf16.msrb.mxu3 %v4952_v19 }
 0x70e   : > { %v3334_v43 = vadd.f32 %v3333_v21, %v3305_v10  ;;  %v3283_v55 = vadd.f32 %v3282_v12, %v3254_v60  ;;  %v4950_v10 = vld [vmem:[%s7368_s12 + $0x10] sm:$0xff] }
 0x710   : > { %v6925_v38 = vadd.f32 %v5191_v51, %v3334_v43 }
 0x711   : > { %v3309_v23 = vpop.f32.mrf.mxu1  ;;  %3632 = vmatpush.bf16.msrb.mxu3 %v4951_v41 }
 0x712   : > { %3362 = vadd.xlane.f32.xlu0 %v6925_v38  ;;  %3384 = vadd.xlane.f32.xlu2 %v3375_v40  ;;  %v3376_v44 = vmul.f32 %v6925_v38, %v6925_v38  ;;  %v3310_v15 = vadd.f32 %v3309_v23, %v3281_v2 }
 0x714   : > { %3386 = vadd.xlane.f32.xlu1 %v3376_v44  ;;  %v4948_v44 = vld [vmem:[%s7368_s12] sm:$0xff] }
 0x715   : > { %v3335_v3 = vpop.f32.mrf.mxu2  ;;  %3633 = vmatpush.bf16.msrb.mxu3 %v4950_v10 }
 0x716   : > { %v3336_v45 = vadd.f32 %v3335_v3, %v3307_v9 }
 0x718   : > { %v6934_v29 = vadd.f32 %v5192_v27, %v3336_v45 }
 0x719   : > { %v3311_v4 = vpop.f32.mrf.mxu1  ;;  %3634 = vmatpush.bf16.msrb.mxu3 %v4949_v30 }
 0x71a   : > { %3364 = vadd.xlane.f32.xlu2 %v6934_v29  ;;  %v3377_v63 = vmul.f32 %v6934_v29, %v6934_v29  ;;  %v3312_v26 = vadd.f32 %v3311_v4, %v3283_v55 }
 0x71c   : > { %3388 = vadd.xlane.f32.xlu0 %v3377_v63 }
 0x71d   : > { %v3338_v53 = vpop.f32.mrf.mxu2  ;;  %3635 = vmatpush.bf16.msrb.mxu3 %v4948_v44 }
 0x71e   : > { %v3339_v39 = vadd.f32 %v3338_v53, %v3310_v15 }
 0x720   : > { %v6941_v48 = vadd.f32 %v5193_v22, %v3339_v39 }
 0x722   : > { %3366 = vadd.xlane.f32.xlu2 %v6941_v48  ;;  %v3378_v11 = vmul.f32 %v6941_v48, %v6941_v48 }
 0x724   : > { %3390 = vadd.xlane.f32.xlu0 %v3378_v11 }
 0x725   : > { %v3340_v18 = vpop.f32.mrf.mxu2  ;;  %v3285_v31 = vpop.f32.mrf.mxu3 }
 0x726   : > { %v3341_v47 = vadd.f32 %v3340_v18, %v3312_v26  ;;  %v3286_v14 = vadd.f32 %v3285_v31, %v3257_v34 }
 0x728   : > { %v6947_v28 = vadd.f32 %v5194_v52, %v3341_v47 }
 0x72a   : > { %3368 = vadd.xlane.f32.xlu1 %v6947_v28  ;;  %v3379_v0 = vmul.f32 %v6947_v28, %v6947_v28 }
 0x72c   : > { %3392 = vadd.xlane.f32.xlu2 %v3379_v0 }
 0x72d   : > { %v3343_v17 = vpop.f32.mrf.mxu2  ;;  %v3287_v42 = vpop.f32.mrf.mxu3 }
 0x72e   : > { %v3288_v54 = vadd.f32 %v3287_v42, %v3259_v20 }
 0x72f   : > { %v3314_v56 = vpop.f32.mrf.mxu1 }
 0x730   : > { %v3315_v24 = vadd.f32 %v3314_v56, %v3286_v14 }
 0x732   : > { %v3344_v46 = vadd.f32 %v3343_v17, %v3315_v24 }
 0x734   : > { %v6957_v25 = vadd.f32 %v5195_v8, %v3344_v46 }
 0x735   : > { %v3345_v37 = vpop.f32.mrf.mxu2 }
 0x736   : > { %3370 = vadd.xlane.f32.xlu1 %v6957_v25  ;;  %v3380_v57 = vmul.f32 %v6957_v25, %v6957_v25 }
 0x737   : > { %v3316_v61 = vpop.f32.mrf.mxu1 }
 0x738   : > { %v3317_v35 = vadd.f32 %v3316_v61, %v3288_v54  ;;  %3394 = vadd.xlane.f32.xlu2 %v3380_v57 }
 0x73a   : > { %v3346_v5 = vadd.f32 %v3345_v37, %v3317_v35 }
 0x73c   : > { %v6963_v6 = vadd.f32 %v5196_v13, %v3346_v5 }
 0x73e   : > { %3372 = vadd.xlane.f32.xlu0 %v6963_v6  ;;  %v3381_v7 = vmul.f32 %v6963_v6, %v6963_v6 }
 0x740   : > { %3396 = vadd.xlane.f32.xlu1 %v3381_v7 }
 0x775   : > { %v3359_v59 = vpop.xlane.xlu0 %3358 }
 0x776   : > { %v6986_v32 = vmul.f32 0.125, %v3359_v59 }
 0x778   : > { %v3414_v51 = vmul.f32 %v6986_v32, %v6986_v32  ;;  %v3430_v5 = vsub.f32 %v6913_v62, %v6986_v32 }
 0x77d   : > { %v3383_v21 = vpop.xlane.xlu0 %3382  ;;  %v3361_v43 = vpop.xlane.xlu2 %3360 }
 0x77e   : > { %v3406_v40 = vmul.f32 0.125, %v3383_v21  ;;  %v6996_v50 = vmul.f32 0.125, %v3361_v43 }
 0x780   : > { %v3422_v36 = vsub.f32 %v3406_v40, %v3414_v51  ;;  %v3415_v23 = vmul.f32 %v6996_v50, %v6996_v50  ;;  %v3431_v32 = vsub.f32 %v6918_v33, %v6996_v50 }
 0x782   : > { %v3438_v9 = vadd.f32 1e-05, %v3422_v36 }
 0x784   : > { %5156 = vrsqrt.f32 %v3438_v9  ;;  %vm3452_vm10 = vweird.f32 %v3438_v9 }
 0x785   : > { %v3363_v3 = vpop.xlane.xlu0 %3362  ;;  %v3385_v45 = vpop.xlane.xlu2 %3384 }
 0x786   : > { %v7000_v1 = vmul.f32 0.125, %v3363_v3  ;;  %v3407_v27 = vmul.f32 0.125, %v3385_v45 }
 0x787   : > { %v3387_v2 = vpop.xlane.xlu1 %3386 }
 0x788   : > { %v3416_v63 = vmul.f32 %v7000_v1, %v7000_v1  ;;  %v3423_v15 = vsub.f32 %v3407_v27, %v3415_v23  ;;  %v3408_v53 = vmul.f32 0.125, %v3387_v2 }
 0x78a   : > { %v5157_v39 = vpop.eup %5156  ;;  %v3439_v12 = vadd.f32 1e-05, %v3423_v15  ;;  %v3424_v60 = vsub.f32 %v3408_v53, %v3416_v63 }
 0x78b   : > { %v3447_v22 = vmul.f32 %v5157_v39, %v3438_v9  ;;  %vm3453_vm9 = vweird.f32 %v5157_v39  ;;  %v7038_v9 = vld [vmem:[%s7367_s11] ss:$0 sm:$0xff] }
 0x78c   : > { %5158 = vrsqrt.f32 %v3439_v12  ;;  %v7004_v4 = vadd.f32 1e-05, %v3424_v60  ;;  %vm3454_vm11 = vmor %vm3452_vm10, %vm3453_vm9  ;;  %vm3462_vm13 = vweird.f32 %v3439_v12 }
 0x78d   : > { %v3448_v55 = vmul.f32 %v5157_v39, %v3447_v22  ;;  %v3365_v11 = vpop.xlane.xlu2 %3364 }
 0x78e   : > { %5160 = vrsqrt.f32 %v7004_v4  ;;  %v7007_v26 = vmul.f32 0.125, %v3365_v11  ;;  %vm3472_vm1 = vweird.f32 %v7004_v4 }
 0x78f   : > { %v3449_v18 = vmul.f32 0.5, %v3448_v55  ;;  %v3389_v47 = vpop.xlane.xlu0 %3388 }
 0x790   : > { %v3417_v31 = vmul.f32 %v7007_v26, %v7007_v26  ;;  %v3409_v52 = vmul.f32 0.125, %v3389_v47 }
 0x791   : > { %v3450_v0 = vsub.f32 1.5, %v3449_v18 }
 0x792   : > { %v5159_v34 = vpop.eup %5158  ;;  %v3425_v14 = vsub.f32 %v3409_v52, %v3417_v31  ;;  %v3433_v52 = vsub.f32 %v6934_v29, %v7007_v26 }
 0x793   : > { %v3451_v17 = vmul.f32 %v5157_v39, %v3450_v0  ;;  %v3457_v56 = vmul.f32 %v5159_v34, %v3439_v12  ;;  %vm3463_vm12 = vweird.f32 %v5159_v34 }
 0x794   : > { %v7011_v24 = vpop.eup %5160  ;;  %v3441_v46 = vadd.f32 1e-05, %v3425_v14  ;;  %vm3464_vm14 = vmor %vm3462_vm13, %vm3463_vm12  ;;  %v3432_v14 = vsub.f32 %v6925_v38, %v7000_v1 }
 0x795   : > { %v3458_v42 = vmul.f32 %v5159_v34, %v3457_v56  ;;  %v3467_v20 = vmul.f32 %v7011_v24, %v7004_v4  ;;  %v3367_v8 = vpop.xlane.xlu2 %3366  ;;  %v3455_v57 = vsel %vm3454_vm11, %v5157_v39, %v3451_v17  ;;  %vm3473_vm15 = vweird.f32 %v7011_v24 }
 0x796   : > { %5162 = vrsqrt.f32 %v3441_v46  ;;  %v7015_v54 = vmul.f32 0.125, %v3367_v8  ;;  %v3526_v16 = vmul.f32 %v3455_v57, %v3430_v5  ;;  %vm7050_vm2 = vmor %vm3472_vm1, %vm3473_vm15  ;;  %vm3482_vm3 = vweird.f32 %v3441_v46 }
 0x797   : > { %v3459_v61 = vmul.f32 0.5, %v3458_v42  ;;  %v3468_v35 = vmul.f32 %v7011_v24, %v3467_v20  ;;  %v3391_v37 = vpop.xlane.xlu0 %3390 }
 0x798   : > { %v3418_v13 = vmul.f32 %v7015_v54, %v7015_v54  ;;  %v3410_v7 = vmul.f32 0.125, %v3391_v37  ;;  %v3537_v40 = vmul.f32 %v7025_v49, %v3526_v16 }
 0x799   : > { %v3460_v58 = vsub.f32 1.5, %v3459_v61  ;;  %v3469_v41 = vmul.f32 0.5, %v3468_v35 }
 0x79a   : > { %v3426_v19 = vsub.f32 %v3410_v7, %v3418_v13  ;;  %v3548_v53 = vadd.f32 %v7038_v9, %v3537_v40 }
 0x79b   : > { %v3461_v59 = vmul.f32 %v5159_v34, %v3460_v58  ;;  %v3470_v3 = vsub.f32 1.5, %v3469_v41 }
 0x79c   : > { %v5163_v10 = vpop.eup %5162  ;;  %v7029_v21 = vadd.f32 1e-05, %v3426_v19 }
 0x79d   : > { %v3465_v43 = vsel %vm3464_vm14, %v5159_v34, %v3461_v59  ;;  %v3477_v30 = vmul.f32 %v5163_v10, %v3441_v46  ;;  %v3369_v51 = vpop.xlane.xlu1 %3368  ;;  %v3471_v12 = vmul.f32 %v7011_v24, %v3470_v3  ;;  %vm3483_vm0 = vweird.f32 %v5163_v10 }
 0x79e   : > { %v3527_v36 = vmul.f32 %v3465_v43, %v3431_v32  ;;  %5164 = vrsqrt.f32 %v7029_v21  ;;  %v7033_v44 = vmul.f32 0.125, %v3369_v51  ;;  %vm3484_vm4 = vmor %vm3482_vm3, %vm3483_vm0  ;;  %vm3492_vm7 = vweird.f32 %v7029_v21 }
 0x79f   : > { %v3478_v50 = vmul.f32 %v5163_v10, %v3477_v30  ;;  %v3393_v45 = vpop.xlane.xlu2 %3392  ;;  %v3475_v4 = vsel %vm7050_vm2, %v7011_v24, %v3471_v12 }
 0x7a0   : > { %v3538_v23 = vmul.f32 %v7025_v49, %v3527_v36  ;;  %v3419_v27 = vmul.f32 %v7033_v44, %v7033_v44  ;;  %v3411_v2 = vmul.f32 0.125, %v3393_v45  ;;  %v3528_v26 = vmul.f32 %v3475_v4, %v3432_v14 }
 0x7a1   : > { %v3479_v63 = vmul.f32 0.5, %v3478_v50  ;;  %v3435_v45 = vsub.f32 %v6947_v28, %v7033_v44 }
 0x7a2   : > { %v3427_v15 = vsub.f32 %v3411_v2, %v3419_v27  ;;  %v3549_v39 = vadd.f32 %v7038_v9, %v3538_v23  ;;  %v3539_v13 = vmul.f32 %v7025_v49, %v3528_v26 }
 0x7a3   : > { %v3480_v60 = vsub.f32 1.5, %v3479_v63  ;;  %v3434_v63 = vsub.f32 %v6941_v48, %v7015_v54 }
 0x7a4   : > { %v7047_v22 = vpop.eup %5164  ;;  %v3443_v55 = vadd.f32 1e-05, %v3427_v15  ;;  %v3556_v11 = vpack.c.bf16 %v3549_v39, %v3548_v53  ;;  %v3550_v32 = vadd.f32 %v7038_v9, %v3539_v13 }
 0x7a5   : > { %v3481_v47 = vmul.f32 %v5163_v10, %v3480_v60  ;;  %v3487_v31 = vmul.f32 %v7047_v22, %v7029_v21  ;;  %vm3493_vm5 = vweird.f32 %v7047_v22 }
 0x7a6   : > { %5166 = vrsqrt.f32 %v3443_v55  ;;  %3636 = vmatmul.bf16.vlgmr.msrb.gmra.mxu3 %v3556_v11  ;;  %vm7075_vm8 = vmor %vm3492_vm7, %vm3493_vm5  ;;  %vm3502_vm9 = vweird.f32 %v3443_v55 }
 0x7a7   : > { %v3485_v0 = vsel %vm3484_vm4, %v5163_v10, %v3481_v47  ;;  %v3488_v34 = vmul.f32 %v7047_v22, %v3487_v31 }
 0x7a8   : > { %v3529_v56 = vmul.f32 %v3485_v0, %v3433_v52 }
 0x7a9   : > { %v3371_v17 = vpop.xlane.xlu1 %3370  ;;  %v3489_v42 = vmul.f32 0.5, %v3488_v34 }
 0x7aa   : > { %v7064_v46 = vmul.f32 0.125, %v3371_v17  ;;  %v3540_v24 = vmul.f32 %v7025_v49, %v3529_v56 }
 0x7ab   : > { %v3395_v20 = vpop.xlane.xlu2 %3394  ;;  %v3490_v5 = vsub.f32 1.5, %v3489_v42 }
 0x7ac   : > { %v3420_v8 = vmul.f32 %v7064_v46, %v7064_v46  ;;  %v3412_v57 = vmul.f32 0.125, %v3395_v20  ;;  %v5167_v61 = vpop.eup %5166  ;;  %v3551_v16 = vadd.f32 %v7038_v9, %v3540_v24  ;;  %v3436_v17 = vsub.f32 %v6957_v25, %v7064_v46  ;;  %v7100_v46 = vld [vmem:[%s7369_s13] ss:$0 sm:$0xff] }
 0x7ad   : > { %v3497_v35 = vmul.f32 %v5167_v61, %v3443_v55  ;;  %v3491_v41 = vmul.f32 %v7047_v22, %v3490_v5  ;;  %vm3503_vm6 = vweird.f32 %v5167_v61 }
 0x7ae   : > { %v3428_v37 = vsub.f32 %v3412_v57, %v3420_v8  ;;  %v3557_v40 = vpack.c.bf16 %v3551_v16, %v3550_v32  ;;  %vm3504_vm10 = vmor %vm3502_vm9, %vm3503_vm6 }
 0x7af   : > { %v3498_v1 = vmul.f32 %v5167_v61, %v3497_v35  ;;  %v3495_v27 = vsel %vm7075_vm8, %v7047_v22, %v3491_v41 }
 0x7b0   : > { %v3444_v7 = vadd.f32 1e-05, %v3428_v37  ;;  %v3530_v12 = vmul.f32 %v3495_v27, %v3434_v63 }
 0x7b1   : > { %v3373_v58 = vpop.xlane.xlu0 %3372  ;;  %v3499_v19 = vmul.f32 0.5, %v3498_v1 }
 0x7b2   : > { %5168 = vrsqrt.f32 %v3444_v7  ;;  %v3405_v59 = vmul.f32 0.125, %v3373_v58  ;;  %v3541_v55 = vmul.f32 %v7025_v49, %v3530_v12  ;;  %vm3512_vm12 = vweird.f32 %v3444_v7 }
 0x7b3   : > { %v3397_v10 = vpop.xlane.xlu1 %3396  ;;  %v3500_v43 = vsub.f32 1.5, %v3499_v19 }
 0x7b4   : > { %v3421_v30 = vmul.f32 %v3405_v59, %v3405_v59  ;;  %v3413_v51 = vmul.f32 0.125, %v3397_v10  ;;  %v3552_v52 = vadd.f32 %v7038_v9, %v3541_v55  ;;  %v3437_v42 = vsub.f32 %v6963_v6, %v3405_v59  ;;  %v4963_v59 = vld [vmem:[%s7370_s14 + $0x38] sm:$0xff]  ;;  %v4961_v55 = vld [vmem:[%s7370_s14 + $0x28] sm:$0xff] }
 0x7b5   : > { %v3501_v3 = vmul.f32 %v5167_v61, %v3500_v43  ;;  %4081 = vmatpush.bf16.msrb.mxu1 %v4963_v59 }
 0x7b6   : > { %v3429_v50 = vsub.f32 %v3413_v51, %v3421_v30  ;;  %3641 = vmatmul.bf16.gmra.mxu3 %v3557_v40  ;;  %v4962_v40 = vld [vmem:[%s7370_s14 + $0x30] sm:$0xff] }
 0x7b7   : > { %v3505_v2 = vsel %vm3504_vm10, %v5167_v61, %v3501_v3 }
 0x7b8   : > { %v5169_v23 = vpop.eup %5168  ;;  %v3445_v21 = vadd.f32 1e-05, %v3429_v50  ;;  %v3531_v53 = vmul.f32 %v3505_v2, %v3435_v45 }
 0x7b9   : > { %v3507_v15 = vmul.f32 %v5169_v23, %v3444_v7  ;;  %vm3513_vm11 = vweird.f32 %v5169_v23  ;;  %4082 = vmatpush.bf16.msrb.mxu1 %v4962_v40 }
 0x7ba   : > { %5170 = vrsqrt.f32 %v3445_v21  ;;  %v3542_v44 = vmul.f32 %v7025_v49, %v3531_v53  ;;  %vm3514_vm13 = vmor %vm3512_vm12, %vm3513_vm11  ;;  %vm3522_vm15 = vweird.f32 %v3445_v21 }
 0x7bb   : > { %v3508_v39 = vmul.f32 %v5169_v23, %v3507_v15 }
 0x7bc   : > { %v3553_v22 = vadd.f32 %v7038_v9, %v3542_v44 }
 0x7bd   : > { %v3509_v60 = vmul.f32 0.5, %v3508_v39  ;;  %4083 = vmatpush.bf16.msrb.mxu1 %v4961_v55 }
 0x7be   : > { %v3558_v0 = vpack.c.bf16 %v3553_v22, %v3552_v52 }
 0x7bf   : > { %v3510_v18 = vsub.f32 1.5, %v3509_v60 }
 0x7c0   : > { %v5171_v11 = vpop.eup %5170 }
 0x7c1   : > { %v3517_v47 = vmul.f32 %v5171_v11, %v3445_v21  ;;  %v3511_v4 = vmul.f32 %v5169_v23, %v3510_v18  ;;  %vm3523_vm14 = vweird.f32 %v5171_v11 }
 0x7c2   : > { %vm3524_vm0 = vmor %vm3522_vm15, %vm3523_vm14 }
 0x7c3   : > { %v3518_v31 = vmul.f32 %v5171_v11, %v3517_v47  ;;  %v3515_v14 = vsel %vm3514_vm13, %v5169_v23, %v3511_v4 }
 0x7c4   : > { %v3532_v26 = vmul.f32 %v3515_v14, %v3436_v17 }
 0x7c5   : > { %v3519_v54 = vmul.f32 0.5, %v3518_v31 }
 0x7c6   : > { %3646 = vmatmul.bf16.gmra.mxu3 %v3558_v0  ;;  %v3543_v61 = vmul.f32 %v7025_v49, %v3532_v26 }
 0x7c7   : > { %v3520_v34 = vsub.f32 1.5, %v3519_v54 }
 0x7c8   : > { %v3554_v35 = vadd.f32 %v7038_v9, %v3543_v61 }
 0x7c9   : > { %v3521_v56 = vmul.f32 %v5171_v11, %v3520_v34  ;;  %v4960_v34 = vld [vmem:[%s7370_s14 + $0x20] sm:$0xff] }
 0x7ca   : > { %4084 = vmatpush.bf16.msrb.mxu1 %v4960_v34 }
 0x7cb   : > { %v3525_v20 = vsel %vm3524_vm0, %v5171_v11, %v3521_v56 }
 0x7cc   : > { %v3533_v8 = vmul.f32 %v3525_v20, %v3437_v42 }
 0x7ce   : > { %v3544_v57 = vmul.f32 %v7025_v49, %v3533_v8 }
 0x7d0   : > { %v3555_v24 = vadd.f32 %v7038_v9, %v3544_v57 }
 0x7d2   : > { %v3559_v37 = vpack.c.bf16 %v3555_v24, %v3554_v35 }
 0x7d6   : > { %3651 = vmatmul.bf16.gmra.mxu3 %v3559_v37 }
 0x829   : > { %v3637_v5 = vpop.f32.mrf.mxu3 }
 0x82a   : > { %v7103_v13 = vadd.f32 %v7100_v46, %v3637_v5 }
 0x82c   : > { %v7106_v1 = vmul.f32 0.70710677, %v7103_v13 }
 0x82e   : > { %v3673_v49 = vmul.f32 %v7106_v1, %v7106_v1 }
 0x830   : > { %v3674_v7 = vmin.f32 %v3673_v49, 16.0 }
 0x831   : > { %v3639_v58 = vpop.f32.mrf.mxu3 }
 0x832   : > { %v3675_v9 = vmul.f32 2.1237322e-06, %v3674_v7  ;;  %v3686_v16 = vmul.f32 3.8918573e-05, %v3674_v7  ;;  %v7111_v19 = vadd.f32 %v7100_v46, %v3639_v58 }
 0x834   : > { %v3676_v41 = vadd.f32 0.00028619796, %v3675_v9  ;;  %v3687_v10 = vadd.f32 0.001143296, %v3686_v16  ;;  %v7117_v32 = vmul.f32 0.70710677, %v7111_v19 }
 0x836   : > { %v3677_v43 = vmul.f32 %v3676_v41, %v3674_v7  ;;  %v3688_v30 = vmul.f32 %v3687_v10, %v3674_v7  ;;  %v3713_v51 = vmul.f32 %v7117_v32, %v7117_v32 }
 0x838   : > { %v3678_v36 = vadd.f32 0.0036580483, %v3677_v43  ;;  %v3689_v3 = vadd.f32 0.014752088, %v3688_v30  ;;  %v7124_v50 = vmin.f32 %v3713_v51, 16.0 }
 0x839   : > { %v3642_v45 = vpop.f32.mrf.mxu3 }
 0x83a   : > { %v3679_v23 = vmul.f32 %v3678_v36, %v3674_v7  ;;  %v3690_v27 = vmul.f32 %v3689_v3, %v3674_v7  ;;  %v7127_v2 = vadd.f32 %v7100_v46, %v3642_v45  ;;  %v3715_v21 = vmul.f32 2.1237322e-06, %v7124_v50 }
 0x83b   : > { %v3726_v63 = vmul.f32 3.8918573e-05, %v7124_v50 }
 0x83c   : > { %v3680_v15 = vadd.f32 0.05243302, %v3679_v23  ;;  %v3691_v53 = vadd.f32 0.112945676, %v3690_v27  ;;  %v3716_v39 = vadd.f32 0.00028619796, %v3715_v21 }
 0x83d   : > { %v3727_v12 = vadd.f32 0.001143296, %v3726_v63  ;;  %v7132_v60 = vmul.f32 0.70710677, %v7127_v2 }
 0x83e   : > { %v3692_v44 = vmul.f32 %v3691_v53, %v3674_v7  ;;  %v3717_v11 = vmul.f32 %v3716_v39, %v7124_v50  ;;  %v3681_v31 = vmul.f32 %v3680_v15, %v3674_v7 }
 0x83f   : > { %v3728_v18 = vmul.f32 %v3727_v12, %v7124_v50  ;;  %v3753_v47 = vmul.f32 %v7132_v60, %v7132_v60 }
 0x840   : > { %v3693_v22 = vadd.f32 0.4994258, %v3692_v44  ;;  %v3718_v52 = vadd.f32 0.0036580483, %v3717_v11  ;;  %v3682_v61 = vadd.f32 0.18741608, %v3681_v31 }
 0x841   : > { %v3729_v4 = vadd.f32 0.014752088, %v3728_v18  ;;  %v7141_v54 = vmin.f32 %v3753_v47, 16.0  ;;  %v3644_v0 = vpop.f32.mrf.mxu3  ;;  %v4959_v18 = vld [vmem:[%s7370_s14 + $0x18] sm:$0xff] }
 0x842   : > { %v3694_v14 = vmul.f32 %v3693_v22, %v3674_v7  ;;  %v7147_v17 = vadd.f32 %v7100_v46, %v3644_v0  ;;  %v3719_v56 = vmul.f32 %v3718_v52, %v7124_v50  ;;  %v3683_v16 = vmul.f32 %v3682_v61, %v3674_v7  ;;  %4085 = vmatpush.bf16.msrb.mxu1 %v4959_v18 }
 0x843   : > { %v3730_v42 = vmul.f32 %v3729_v4, %v7124_v50  ;;  %v3755_v20 = vmul.f32 2.1237322e-06, %v7141_v54  ;;  %v3766_v8 = vmul.f32 3.8918573e-05, %v7141_v54 }
 0x844   : > { %v3695_v26 = vadd.f32 1.0, %v3694_v14  ;;  %v7154_v57 = vmul.f32 0.70710677, %v7147_v17  ;;  %v3720_v37 = vadd.f32 0.05243302, %v3719_v56 }
 0x845   : > { %v3731_v24 = vadd.f32 0.112945676, %v3730_v42  ;;  %v3756_v35 = vadd.f32 0.00028619796, %v3755_v20  ;;  %v3767_v58 = vadd.f32 0.001143296, %v3766_v8 }
 0x846   : > { %5172 = vrcp.f32 %v3695_v26  ;;  %v3793_v9 = vmul.f32 %v7154_v57, %v7154_v57  ;;  %v3721_v10 = vmul.f32 %v3720_v37, %v7124_v50  ;;  %v3684_v7 = vadd.f32 1.1283791, %v3683_v16  ;;  %v4958_v20 = vld [vmem:[%s7370_s14 + $0x10] sm:$0xff] }
 0x847   : > { %v3732_v5 = vmul.f32 %v3731_v24, %v7124_v50  ;;  %v3757_v49 = vmul.f32 %v3756_v35, %v7141_v54  ;;  %v3768_v30 = vmul.f32 %v3767_v58, %v7141_v54  ;;  %v3705_v55 = vand.u32 2147483647, %v3695_v26  ;;  %4086 = vmatpush.bf16.msrb.mxu1 %v4958_v20 }
 0x848   : > { %v7162_v51 = vmin.f32 %v3793_v9, 16.0  ;;  %v3722_v15 = vadd.f32 0.18741608, %v3721_v10  ;;  %v3707_v47 = vand.u32 2147483648, %v3695_v26  ;;  %v3685_v34 = vmul.f32 %v3684_v7, %v7106_v1  ;;  %v4957_v10 = vld [vmem:[%s7370_s14 + $0x8] sm:$0xff] }
 0x849   : > { %v3733_v59 = vadd.f32 0.4994258, %v3732_v5  ;;  %v3647_v41 = vpop.f32.mrf.mxu3  ;;  %v3758_v43 = vadd.f32 0.0036580483, %v3757_v49  ;;  %v3769_v45 = vadd.f32 0.014752088, %v3768_v30  ;;  %vm3701_vm2 = vweird.f32 %v3695_v26 }
 0x84a   : > { %v3795_v23 = vmul.f32 2.1237322e-06, %v7162_v51  ;;  %v3806_v27 = vmul.f32 3.8918573e-05, %v7162_v51  ;;  %v7173_v11 = vadd.f32 %v7100_v46, %v3647_v41  ;;  %v3723_v14 = vmul.f32 %v3722_v15, %v7124_v50 }
 0x84b   : > { %v3734_v40 = vmul.f32 %v3733_v59, %v7124_v50  ;;  %v3759_v3 = vmul.f32 %v3758_v43, %v7141_v54  ;;  %v3770_v53 = vmul.f32 %v3769_v45, %v7141_v54  ;;  %vm3706_vm4 = vcmp.eq.f32.partialorder %v3705_v55, 8.507059e+37  ;;  %4087 = vmatpush.bf16.msrb.mxu1 %v4957_v10 }
 0x84c   : > { %v5173_v36 = vpop.eup %5172  ;;  %v3796_v39 = vadd.f32 0.00028619796, %v3795_v23  ;;  %v3807_v12 = vadd.f32 0.001143296, %v3806_v27  ;;  %v7187_v35 = vmul.f32 0.70710677, %v7173_v11 }
 0x84d   : > { %v3697_v21 = vmul.f32 %v5173_v36, %v3695_v26  ;;  %v7168_v63 = vadd.f32 1.0, %v3734_v40  ;;  %v3760_v22 = vadd.f32 0.05243302, %v3759_v3  ;;  %v3771_v31 = vadd.f32 0.112945676, %v3770_v53 }
 0x84e   : > { %vm3702_vm1 = vweird.f32 %v5173_v36  ;;  %v3797_v4 = vmul.f32 %v3796_v39, %v7162_v51  ;;  %v3808_v0 = vmul.f32 %v3807_v12, %v7162_v51  ;;  %v3708_v37 = vor.u32 1.1754944e-38, %v3707_v47  ;;  %v4956_v47 = vld [vmem:[%s7370_s14] sm:$0xff] }
 0x84f   : > { %v3698_v44 = vsub.f32 1.0, %v3697_v21  ;;  %5174 = vrcp.f32 %v7168_v63  ;;  %v3772_v56 = vmul.f32 %v3771_v31, %v7141_v54  ;;  %vm3703_vm3 = vmor %vm3701_vm2, %vm3702_vm1  ;;  %v3761_v1 = vmul.f32 %v3760_v22, %v7141_v54  ;;  %4088 = vmatpush.bf16.msrb.mxu1 %v4956_v47 }
 0x850   : > { %v3798_v61 = vadd.f32 0.0036580483, %v3797_v4  ;;  %v3809_v24 = vadd.f32 0.014752088, %v3808_v0  ;;  %v3833_v9 = vmul.f32 %v7187_v35, %v7187_v35  ;;  %v3724_v59 = vadd.f32 1.1283791, %v3723_v14 }
 0x851   : > { %v3699_v52 = vmul.f32 %v5173_v36, %v3698_v44  ;;  %v3649_v42 = vpop.f32.mrf.mxu3  ;;  %v3773_v26 = vadd.f32 0.4994258, %v3772_v56  ;;  %v3745_v45 = vand.u32 2147483647, %v7168_v63  ;;  %v3747_v23 = vand.u32 2147483648, %v7168_v63 }
 0x852   : > { %v3799_v49 = vmul.f32 %v3798_v61, %v7162_v51  ;;  %v3810_v58 = vmul.f32 %v3809_v24, %v7162_v51  ;;  %v7204_v27 = vmin.f32 %v3833_v9, 16.0  ;;  %v3762_v7 = vadd.f32 0.18741608, %v3761_v1 }
 0x853   : > { %v3700_v8 = vadd.f32 %v5173_v36, %v3699_v52  ;;  %v3774_v30 = vmul.f32 %v3773_v26, %v7141_v54  ;;  %v3725_v22 = vmul.f32 %v3724_v59, %v7117_v32  ;;  %vm3741_vm6 = vweird.f32 %v7168_v63 }
 0x854   : > { %v3811_v40 = vadd.f32 0.112945676, %v3810_v58  ;;  %v3800_v15 = vadd.f32 0.05243302, %v3799_v49  ;;  %v3835_v12 = vmul.f32 2.1237322e-06, %v7204_v27  ;;  %v3763_v20 = vmul.f32 %v3762_v7, %v7141_v54 }
 0x855   : > { %v5175_v50 = vpop.eup %5174  ;;  %v3704_v5 = vsel %vm3703_vm3, %v5173_v36, %v3700_v8  ;;  %v7200_v36 = vadd.f32 %v7100_v46, %v3649_v42  ;;  %v7206_v21 = vadd.f32 1.0, %v3774_v30  ;;  %v3846_v44 = vmul.f32 3.8918573e-05, %v7204_v27 }
 0x856   : > { %v3709_v16 = vsel %vm3706_vm4, %v3708_v37, %v3704_v5  ;;  %v3737_v41 = vmul.f32 %v5175_v50, %v7168_v63  ;;  %v3812_v53 = vmul.f32 %v3811_v40, %v7162_v51  ;;  %vm3742_vm5 = vweird.f32 %v5175_v50 }
 0x857   : > { %v3710_v43 = vmul.f32 %v3709_v16, %v3685_v34  ;;  %5176 = vrcp.f32 %v7206_v21  ;;  %v7213_v18 = vmul.f32 0.70710677, %v7200_v36  ;;  %vm3743_vm7 = vmor %vm3741_vm6, %vm3742_vm5  ;;  %v3748_v0 = vor.u32 1.1754944e-38, %v3747_v23 }
 0x858   : > { %v3738_v3 = vsub.f32 1.0, %v3737_v41  ;;  %v3813_v52 = vadd.f32 0.4994258, %v3812_v53  ;;  %v3801_v34 = vmul.f32 %v3800_v15, %v7162_v51  ;;  %v3836_v14 = vadd.f32 0.00028619796, %v3835_v12 }
 0x859   : > { %v4776_v55 = vclamps-f32 %v3710_v43, 1.0  ;;  %v3652_v4 = vpop.f32.mrf.mxu3  ;;  %v3847_v56 = vadd.f32 0.001143296, %v3846_v44  ;;  %vm3746_vm8 = vcmp.eq.f32.partialorder %v3745_v45, 8.507059e+37  ;;  %v3873_v63 = vmul.f32 %v7213_v18, %v7213_v18 }
 0x85a   : > { %v3739_v39 = vmul.f32 %v5175_v50, %v3738_v3  ;;  %v3814_v8 = vmul.f32 %v3813_v52, %v7162_v51  ;;  %v3837_v26 = vmul.f32 %v3836_v14, %v7204_v27  ;;  %v3802_v49 = vadd.f32 0.18741608, %v3801_v34 }
 0x85b   : > { %v3993_v61 = vadd.f32 1.0, %v4776_v55  ;;  %v3848_v24 = vmul.f32 %v3847_v56, %v7204_v27  ;;  %v7230_v54 = vmin.f32 %v3873_v63, 16.0  ;;  %v3658_v9 = vmul.f32 0.5, %v7111_v19 }
 0x85c   : > { %v3740_v31 = vadd.f32 %v5175_v50, %v3739_v39  ;;  %v7226_v1 = vadd.f32 1.0, %v3814_v8  ;;  %v3764_v59 = vadd.f32 1.1283791, %v3763_v20  ;;  %v3785_v43 = vand.u32 2147483647, %v7206_v21 }
 0x85d   : > { %v5177_v5 = vpop.eup %5176  ;;  %v3849_v58 = vadd.f32 0.014752088, %v3848_v24  ;;  %v3787_v30 = vand.u32 2147483648, %v7206_v21  ;;  %v3803_v23 = vmul.f32 %v3802_v49, %v7162_v51  ;;  %v3875_v19 = vmul.f32 2.1237322e-06, %v7230_v54 }
 0x85e   : > { %v3744_v42 = vsel %vm3743_vm7, %v5175_v50, %v3740_v31  ;;  %v3657_v50 = vmul.f32 0.5, %v7103_v13  ;;  %v3777_v41 = vmul.f32 %v5177_v5, %v7206_v21  ;;  %5178 = vrcp.f32 %v7226_v1 }
 0x85f   : > { %v3749_v32 = vsel %vm3746_vm8, %v3748_v0, %v3744_v42  ;;  %v3838_v13 = vadd.f32 0.0036580483, %v3837_v26  ;;  %v3850_v45 = vmul.f32 %v3849_v58, %v7204_v27  ;;  %v3886_v7 = vmul.f32 3.8918573e-05, %v7230_v54 }
 0x860   : > { %v3750_v37 = vmul.f32 %v3749_v32, %v3725_v22  ;;  %v4001_v10 = vmul.f32 %v3993_v61, %v3657_v50  ;;  %v3778_v3 = vsub.f32 1.0, %v3777_v41  ;;  %v7242_v15 = vadd.f32 %v7100_v46, %v3652_v4 }
 0x861   : > { %vm3782_vm9 = vweird.f32 %v5177_v5  ;;  %v3851_v12 = vadd.f32 0.112945676, %v3850_v45  ;;  %v3654_v44 = vpop.f32.mrf.mxu3  ;;  %vm3781_vm10 = vweird.f32 %v7206_v21  ;;  %vm7245_vm11 = vcmp.eq.f32.partialorder %v3785_v43, 8.507059e+37 }
 0x862   : > { %v4777_v16 = vclamps-f32 %v3750_v37, 1.0  ;;  %v3779_v39 = vmul.f32 %v5177_v5, %v3778_v3  ;;  %v3876_v47 = vadd.f32 0.00028619796, %v3875_v19  ;;  %v3887_v51 = vadd.f32 0.001143296, %v3886_v7  ;;  %vm3783_vm12 = vmor %vm3781_vm10, %vm3782_vm9 }
 0x863   : > { %v3839_v52 = vmul.f32 %v3838_v13, %v7204_v27  ;;  %v3852_v4 = vmul.f32 %v3851_v12, %v7204_v27  ;;  %v7254_v21 = vmul.f32 0.70710677, %v7242_v15  ;;  %v7257_v56 = vadd.f32 %v7100_v46, %v3654_v44 }
 0x864   : > { %v3994_v40 = vadd.f32 1.0, %v4777_v16  ;;  %v3780_v31 = vadd.f32 %v5177_v5, %v3779_v39  ;;  %v5179_v0 = vpop.eup %5178  ;;  %v3877_v34 = vmul.f32 %v3876_v47, %v7230_v54  ;;  %v3888_v14 = vmul.f32 %v3887_v51, %v7230_v54 }
 0x865   : > { %v3788_v20 = vor.u32 1.1754944e-38, %v3787_v30  ;;  %v3804_v8 = vadd.f32 1.1283791, %v3803_v23  ;;  %v3817_v61 = vmul.f32 %v5179_v0, %v7226_v1  ;;  %v3765_v32 = vmul.f32 %v3764_v59, %v7132_v60 }
 0x866   : > { %v4002_v53 = vmul.f32 %v3994_v40, %v3658_v9  ;;  %v3784_v42 = vsel %vm3783_vm12, %v5177_v5, %v3780_v31  ;;  %v3853_v24 = vadd.f32 0.4994258, %v3852_v4  ;;  %v3878_v63 = vadd.f32 0.0036580483, %v3877_v34 }
 0x867   : > { %v3889_v37 = vadd.f32 0.014752088, %v3888_v14  ;;  %v3789_v26 = vsel %vm7245_vm11, %v3788_v20, %v3784_v42  ;;  %v3818_v50 = vsub.f32 1.0, %v3817_v61  ;;  %v3827_v49 = vand.u32 2147483648, %v7226_v1 }
 0x868   : > { %v4009_v22 = vpack.c.bf16 %v4002_v53, %v4001_v10  ;;  %v3913_v46 = vmul.f32 %v7254_v21, %v7254_v21  ;;  %v3840_v5 = vadd.f32 0.05243302, %v3839_v52  ;;  %v3854_v58 = vmul.f32 %v3853_v24, %v7204_v27 }
 0x869   : > { %v3890_v9 = vmul.f32 %v3889_v37, %v7230_v54  ;;  %v7269_v16 = vmul.f32 0.70710677, %v7257_v56  ;;  %v3819_v60 = vmul.f32 %v5179_v0, %v3818_v50  ;;  %vm3822_vm13 = vweird.f32 %v5179_v0 }
 0x86a   : > { %4089 = vmatmul.bf16.vlgmr.msrb.gmra.mxu1 %v4009_v22  ;;  %v3825_v59 = vand.u32 2147483647, %v7226_v1  ;;  %v7272_v41 = vmin.f32 %v3913_v46, 16.0  ;;  %v3790_v10 = vmul.f32 %v3789_v26, %v3765_v32  ;;  %v7274_v43 = vadd.f32 1.0, %v3854_v58 }
 0x86b   : > { %v3879_v30 = vmul.f32 %v3878_v63, %v7230_v54  ;;  %v3891_v40 = vadd.f32 0.112945676, %v3890_v9  ;;  %v3805_v3 = vmul.f32 %v3804_v8, %v7154_v57  ;;  %v3820_v13 = vadd.f32 %v5179_v0, %v3819_v60 }
 0x86c   : > { %vm3821_vm14 = vweird.f32 %v7226_v1  ;;  %v3828_v45 = vor.u32 1.1754944e-38, %v3827_v49  ;;  %v3841_v23 = vmul.f32 %v3840_v5, %v7204_v27  ;;  %5180 = vrcp.f32 %v7274_v43 }
 0x86d   : > { %vm3823_vm15 = vmor %vm3821_vm14, %vm3822_vm13  ;;  %v3953_v19 = vmul.f32 %v7269_v16, %v7269_v16  ;;  %vm3826_vm0 = vcmp.eq.f32.partialorder %v3825_v59, 8.507059e+37  ;;  %v3892_v53 = vmul.f32 %v3891_v40, %v7230_v54  ;;  %v3915_v39 = vmul.f32 2.1237322e-06, %v7272_v41 }
 0x86e   : > { %v3824_v7 = vsel %vm3823_vm15, %v5179_v0, %v3820_v13  ;;  %v4778_v12 = vclamps-f32 %v3790_v10, 1.0  ;;  %v3880_v44 = vadd.f32 0.05243302, %v3879_v30  ;;  %v3926_v47 = vmul.f32 3.8918573e-05, %v7272_v41 }
 0x86f   : > { %v3829_v57 = vsel %vm3826_vm0, %v3828_v45, %v3824_v7  ;;  %v3893_v1 = vadd.f32 0.4994258, %v3892_v53  ;;  %v3842_v51 = vadd.f32 0.18741608, %v3841_v23  ;;  %v7286_v22 = vmin.f32 %v3953_v19, 16.0 }
 0x870   : > { %v3830_v55 = vmul.f32 %v3829_v57, %v3805_v3  ;;  %v3916_v4 = vadd.f32 0.00028619796, %v3915_v39  ;;  %v3927_v0 = vadd.f32 0.001143296, %v3926_v47  ;;  %v3995_v14 = vadd.f32 1.0, %v4778_v12 }
 0x871   : > { %v3894_v52 = vmul.f32 %v3893_v1, %v7230_v54  ;;  %v3881_v42 = vmul.f32 %v3880_v44, %v7230_v54  ;;  %v3955_v20 = vmul.f32 2.1237322e-06, %v7286_v22  ;;  %v3966_v8 = vmul.f32 3.8918573e-05, %v7286_v22 }
 0x872   : > { %v4779_v31 = vclamps-f32 %v3830_v55, 1.0  ;;  %v5181_v34 = vpop.eup %5180  ;;  %v3660_v61 = vmul.f32 0.5, %v7147_v17  ;;  %v3659_v63 = vmul.f32 0.5, %v7127_v2  ;;  %v3928_v26 = vmul.f32 %v3927_v0, %v7272_v41 }
 0x873   : > { %v3857_v24 = vmul.f32 %v5181_v34, %v7274_v43  ;;  %v7295_v37 = vadd.f32 1.0, %v3894_v52  ;;  %v3956_v50 = vadd.f32 0.00028619796, %v3955_v20  ;;  %v3917_v5 = vmul.f32 %v3916_v4, %v7272_v41 }
 0x874   : > { %v3996_v32 = vadd.f32 1.0, %v4779_v31  ;;  %v3967_v58 = vadd.f32 0.001143296, %v3966_v8  ;;  %v4003_v9 = vmul.f32 %v3995_v14, %v3659_v63  ;;  %v3843_v60 = vmul.f32 %v3842_v51, %v7204_v27 }
 0x875   : > { %v3858_v46 = vsub.f32 1.0, %v3857_v24  ;;  %v3882_v59 = vadd.f32 0.18741608, %v3881_v42  ;;  %5182 = vrcp.f32 %v7295_v37  ;;  %vm3862_vm1 = vweird.f32 %v5181_v34 }
 0x876   : > { %v4004_v49 = vmul.f32 %v3996_v32, %v3660_v61  ;;  %v3929_v10 = vadd.f32 0.014752088, %v3928_v26  ;;  %v3957_v2 = vmul.f32 %v3956_v50, %v7286_v22  ;;  %vm3861_vm2 = vweird.f32 %v7274_v43 }
 0x877   : > { %v3859_v17 = vmul.f32 %v5181_v34, %v3858_v46  ;;  %v3867_v30 = vand.u32 2147483648, %v7274_v43  ;;  %v3968_v40 = vmul.f32 %v3967_v58, %v7286_v22  ;;  %v3865_v45 = vand.u32 2147483647, %v7274_v43  ;;  %vm3863_vm3 = vmor %vm3861_vm2, %vm3862_vm1 }
 0x878   : > { %v4010_v3 = vpack.c.bf16 %v4004_v49, %v4003_v9  ;;  %v3918_v23 = vadd.f32 0.0036580483, %v3917_v5  ;;  %v3930_v27 = vmul.f32 %v3929_v10, %v7272_v41  ;;  %v3844_v19 = vadd.f32 1.1283791, %v3843_v60 }
 0x879   : > { %v3860_v13 = vadd.f32 %v5181_v34, %v3859_v17  ;;  %v3969_v7 = vadd.f32 0.014752088, %v3968_v40  ;;  %v3883_v39 = vmul.f32 %v3882_v59, %v7230_v54  ;;  %v3958_v57 = vadd.f32 0.0036580483, %v3957_v2 }
 0x87a   : > { %4094 = vmatmul.bf16.gmra.mxu1 %v4010_v3  ;;  %v3931_v12 = vadd.f32 0.112945676, %v3930_v27  ;;  %v3868_v55 = vor.u32 1.1754944e-38, %v3867_v30  ;;  %vm3866_vm4 = vcmp.eq.f32.partialorder %v3865_v45, 8.507059e+37  ;;  %v3919_v43 = vmul.f32 %v3918_v23, %v7272_v41 }
 0x87b   : > { %v3864_v53 = vsel %vm3863_vm3, %v5181_v34, %v3860_v13  ;;  %v5183_v44 = vpop.eup %5182  ;;  %v3970_v1 = vmul.f32 %v3969_v7, %v7286_v22  ;;  %v3845_v4 = vmul.f32 %v3844_v19, %v7187_v35  ;;  %v3884_v0 = vadd.f32 1.1283791, %v3883_v39 }
 0x87c   : > { %v3897_v47 = vmul.f32 %v5183_v44, %v7295_v37  ;;  %v3869_v51 = vsel %vm3866_vm4, %v3868_v55, %v3864_v53  ;;  %v3932_v31 = vmul.f32 %v3931_v12, %v7272_v41  ;;  %v3959_v54 = vmul.f32 %v3958_v57, %v7286_v22 }
 0x87d   : > { %v3971_v52 = vadd.f32 0.112945676, %v3970_v1  ;;  %v3905_v14 = vand.u32 2147483647, %v7295_v37  ;;  %v3907_v42 = vand.u32 2147483648, %v7295_v37  ;;  %v3870_v61 = vmul.f32 %v3869_v51, %v3845_v4 }
 0x87e   : > { %v3898_v34 = vsub.f32 1.0, %v3897_v47  ;;  %v3933_v20 = vadd.f32 0.4994258, %v3932_v31  ;;  %vm3902_vm5 = vweird.f32 %v5183_v44  ;;  %v3920_v24 = vadd.f32 0.05243302, %v3919_v43 }
 0x87f   : > { %v3972_v8 = vmul.f32 %v3971_v52, %v7286_v22  ;;  %vm3901_vm6 = vweird.f32 %v7295_v37  ;;  %v3960_v35 = vadd.f32 0.05243302, %v3959_v54  ;;  %v3885_v49 = vmul.f32 %v3884_v0, %v7213_v18 }
 0x880   : > { %v3899_v32 = vmul.f32 %v5183_v44, %v3898_v34  ;;  %v3934_v63 = vmul.f32 %v3933_v20, %v7272_v41  ;;  %vm3903_vm7 = vmor %vm3901_vm6, %vm3902_vm5  ;;  %v3908_v46 = vor.u32 1.1754944e-38, %v3907_v42  ;;  %v4780_v9 = vclamps-f32 %v3870_v61, 1.0 }
 0x881   : > { %v3973_v26 = vadd.f32 0.4994258, %v3972_v8  ;;  %vm3906_vm8 = vcmp.eq.f32.partialorder %v3905_v14, 8.507059e+37  ;;  %v3921_v59 = vmul.f32 %v3920_v24, %v7272_v41  ;;  %v3961_v2 = vmul.f32 %v3960_v35, %v7286_v22 }
 0x882   : > { %v3900_v50 = vadd.f32 %v5183_v44, %v3899_v32  ;;  %v3935_v5 = vadd.f32 1.0, %v3934_v63  ;;  %v3997_v37 = vadd.f32 1.0, %v4780_v9  ;;  %v3661_v18 = vmul.f32 0.5, %v7173_v11 }
 0x883   : > { %v3974_v58 = vmul.f32 %v3973_v26, %v7286_v22  ;;  %v3922_v3 = vadd.f32 0.18741608, %v3921_v59  ;;  %v3662_v13 = vmul.f32 0.5, %v7200_v36  ;;  %v3962_v23 = vadd.f32 0.18741608, %v3961_v2 }
 0x884   : > { %v3904_v60 = vsel %vm3903_vm7, %v5183_v44, %v3900_v50  ;;  %5184 = vrcp.f32 %v3935_v5  ;;  %v4005_v19 = vmul.f32 %v3997_v37, %v3661_v18  ;;  %v3947_v1 = vand.u32 2147483648, %v3935_v5 }
 0x885   : > { %v3909_v17 = vsel %vm3906_vm8, %v3908_v46, %v3904_v60  ;;  %v3975_v30 = vadd.f32 1.0, %v3974_v58  ;;  %v3923_v53 = vmul.f32 %v3922_v3, %v7272_v41  ;;  %v3963_v44 = vmul.f32 %v3962_v23, %v7286_v22 }
 0x886   : > { %v3910_v10 = vmul.f32 %v3909_v17, %v3885_v49  ;;  %v3945_v11 = vand.u32 2147483647, %v3935_v5  ;;  %vm3941_vm10 = vweird.f32 %v3935_v5  ;;  %v3948_v41 = vor.u32 1.1754944e-38, %v3947_v1 }
 0x887   : > { %5186 = vrcp.f32 %v3975_v30  ;;  %v3924_v43 = vadd.f32 1.1283791, %v3923_v53  ;;  %v3964_v52 = vadd.f32 1.1283791, %v3963_v44  ;;  %v3987_v4 = vand.u32 2147483648, %v3975_v30 }
 0x888   : > { %v4781_v40 = vclamps-f32 %v3910_v10, 1.0  ;;  %v3985_v34 = vand.u32 2147483647, %v3975_v30  ;;  %vm3946_vm13 = vcmp.eq.f32.partialorder %v3945_v11, 8.507059e+37  ;;  %vm3981_vm14 = vweird.f32 %v3975_v30 }
 0x889   : > { %v3925_v22 = vmul.f32 %v3924_v43, %v7254_v21  ;;  %v3988_v8 = vor.u32 1.1754944e-38, %v3987_v4  ;;  %v3965_v61 = vmul.f32 %v3964_v52, %v7269_v16  ;;  %v3663_v21 = vmul.f32 0.5, %v7242_v15  ;;  %v5011_v16 = vld [vmem:[%s7371_s15] ss:$0 sm:$0xff] }
 0x88a   : > { %v3998_v45 = vadd.f32 1.0, %v4781_v40  ;;  %v5185_v27 = vpop.eup %5184  ;;  %vm3986_vm0 = vcmp.eq.f32.partialorder %v3985_v34, 8.507059e+37  ;;  %v3664_v49 = vmul.f32 0.5, %v7257_v56 }
 0x88b   : > { %v3937_v39 = vmul.f32 %v5185_v27, %v3935_v5  ;;  %vm3942_vm9 = vweird.f32 %v5185_v27 }
 0x88c   : > { %v4006_v7 = vmul.f32 %v3998_v45, %v3662_v13  ;;  %vm3943_vm11 = vmor %vm3941_vm10, %vm3942_vm9 }
 0x88d   : > { %v5187_v12 = vpop.eup %5186  ;;  %v3938_v57 = vsub.f32 1.0, %v3937_v39 }
 0x88e   : > { %v4011_v55 = vpack.c.bf16 %v4006_v7, %v4005_v19  ;;  %v3977_v47 = vmul.f32 %v5187_v12, %v3975_v30  ;;  %vm3982_vm12 = vweird.f32 %v5187_v12 }
 0x88f   : > { %v3939_v51 = vmul.f32 %v5185_v27, %v3938_v57  ;;  %vm3983_vm15 = vmor %vm3981_vm14, %vm3982_vm12 }
 0x890   : > { %4099 = vmatmul.bf16.gmra.mxu1 %v4011_v55  ;;  %v3978_v36 = vsub.f32 1.0, %v3977_v47 }
 0x891   : > { %v3940_v31 = vadd.f32 %v5185_v27, %v3939_v51 }
 0x892   : > { %v3979_v0 = vmul.f32 %v5187_v12, %v3978_v36 }
 0x893   : > { %v3944_v54 = vsel %vm3943_vm11, %v5185_v27, %v3940_v31 }
 0x894   : > { %v3949_v14 = vsel %vm3946_vm13, %v3948_v41, %v3944_v54  ;;  %v3980_v42 = vadd.f32 %v5187_v12, %v3979_v0 }
 0x895   : > { %v3950_v20 = vmul.f32 %v3949_v14, %v3925_v22 }
 0x896   : > { %v3984_v32 = vsel %vm3983_vm15, %v5187_v12, %v3980_v42 }
 0x897   : > { %v4782_v24 = vclamps-f32 %v3950_v20, 1.0  ;;  %v3989_v63 = vsel %vm3986_vm0, %v3988_v8, %v3984_v32 }
 0x898   : > { %v3990_v26 = vmul.f32 %v3989_v63, %v3965_v61 }
 0x899   : > { %v3999_v50 = vadd.f32 1.0, %v4782_v24 }
 0x89a   : > { %v4783_v35 = vclamps-f32 %v3990_v26, 1.0 }
 0x89b   : > { %v4007_v5 = vmul.f32 %v3999_v50, %v3663_v21 }
 0x89c   : > { %v4000_v46 = vadd.f32 1.0, %v4783_v35 }
 0x89e   : > { %v4008_v58 = vmul.f32 %v4000_v46, %v3664_v49 }
 0x8a0   : > { %v4012_v9 = vpack.c.bf16 %v4008_v58, %v4007_v5 }
 0x8a2   : > { %4104 = vmatmul.bf16.gmra.mxu1 %v4012_v9 }
 0x8e7   : > { %v4090_v60 = vpop.f32.mrf.mxu1 }
 0x8e8   : > { %v4091_v59 = vadd.f32 %v5011_v16, %v4090_v60 }
 0x8ea   : > { %v4110_v15 = vadd.f32 %v4091_v59, %v6913_v62 }
 0x8ec   : > { %4118 = vst [vmem:[%s543_s25] sm:$0xff] %v4110_v15 }
 0x8ef   : > { %v4092_v56 = vpop.f32.mrf.mxu1 }
 0x8f0   : > { %v4093_v17 = vadd.f32 %v5011_v16, %v4092_v56 }
 0x8f2   : > { %v4111_v10 = vadd.f32 %v4093_v17, %v6918_v33 }
 0x8f4   : > { %4119 = vst [vmem:[%s543_s25 + $0x8] sm:$0xff] %v4111_v10 }
 0x8f7   : > { %v4095_v2 = vpop.f32.mrf.mxu1 }
 0x8f8   : > { %v4096_v30 = vadd.f32 %v5011_v16, %v4095_v2 }
 0x8fa   : > { %v4112_v37 = vadd.f32 %v4096_v30, %v6925_v38 }
 0x8fc   : > { %4120 = vst [vmem:[%s543_s25 + $0x10] sm:$0xff] %v4112_v37 }
 0x8ff   : > { %v4097_v40 = vpop.f32.mrf.mxu1 }
 0x900   : > { %v4098_v3 = vadd.f32 %v5011_v16, %v4097_v40 }
 0x902   : > { %v4113_v18 = vadd.f32 %v4098_v3, %v6934_v29 }
 0x904   : > { %4121 = vst [vmem:[%s543_s25 + $0x18] sm:$0xff] %v4113_v18 }
 0x90d   : > { %v4100_v13 = vpop.f32.mrf.mxu1 }
 0x90e   : > { %v4101_v45 = vadd.f32 %v5011_v16, %v4100_v13 }
 0x910   : > { %v4114_v62 = vadd.f32 %v4101_v45, %v6941_v48 }
 0x912   : > { %4122 = vst [vmem:[%s543_s25 + $0x20] sm:$0xff] %v4114_v62 }
 0x915   : > { %v4102_v23 = vpop.f32.mrf.mxu1 }
 0x916   : > { %v4103_v27 = vadd.f32 %v5011_v16, %v4102_v23 }
 0x918   : > { %v4115_v33 = vadd.f32 %v4103_v27, %v6947_v28 }
 0x91a   : > { %4123 = vst [vmem:[%s543_s25 + $0x28] sm:$0xff] %v4115_v33 }
 0x91f   : > { %v4105_v19 = vpop.f32.mrf.mxu1 }
 0x920   : > { %v4106_v7 = vadd.f32 %v5011_v16, %v4105_v19 }
 0x922   : > { %v4116_v38 = vadd.f32 %v4106_v7, %v6957_v25 }
 0x924   : > { %4124 = vst [vmem:[%s543_s25 + $0x30] sm:$0xff] %v4116_v38 }
 0x927   : > { %v4107_v53 = vpop.f32.mrf.mxu1 }
 0x928   : > { %v4108_v39 = vadd.f32 %v5011_v16, %v4107_v53 }
 0x92a   : > { %v4117_v29 = vadd.f32 %v4108_v39, %v6963_v6 }
 0x92c   : > { %4125 = vst [vmem:[%s543_s25 + $0x38] sm:$0xff] %v4117_v29 }
 0x92d PF: > { %s26_s23 = sadd.s32 1, %s5219_s23   ;;  %s7400_s21 = smov %s5215_s22 }
 0x92e   : > { %p23_p5 = scmp.ge.s32.totalorder %s26_s23, 4   ;;  %s7401_s22 = smov %s7403_s24 }
 0x930   :  { %25 = sbr.rel (!%p23_p5) target bundleno = 3 (0x3), region = 114 }

</bundles_post_ra>
